<compile_context>
chip_gen: v7x
topology: tpu7x:2x2x1
jax: 0.10.0
libtpu: 0.0.40
codegen_flags: <defaults>
</compile_context>

<pallas_src>
import jax
import jax.numpy as jnp
import numpy as np
from jax.experimental import pallas as pl
from jax.experimental.pallas import tpu as pltpu

LANES = 128


def _round_up(v, m):
    return (v + m - 1) // m * m


# -----------------------------------------------------------------------------
# Fused bottleneck kernel (one batch element per grid step)
# -----------------------------------------------------------------------------
def _bottleneck_kernel(x_ref, w1_ref, s1_ref, w2_ref, s2_ref, w3_ref, b3_ref,
                       o_ref, xpad_ref, col_ref, acc_ref):
    # x_ref   : (1, H, W, Cin)   raw input tile, f32
    # w1_ref  : (9*Cp, Cp)       layer1 3x3 weights, BN-scale folded, chan-padded
    # s1_ref  : (1, Cp)          layer1 folded BN shift (f32)
    # w2_ref  : (9*Cp, Cp)       layer2 weights
    # s2_ref  : (1, Cp)          layer2 shift
    # w3_ref  : (Cp, Cp)         residual 1x1 conv weight, channel padded
    # b3_ref  : (1, Cp)          residual bias
    # o_ref   : (1, H, W, Cp)    output (lane dense; padded channels come out 0)
    # xpad_ref: (H+2, W+2, Cp)   f32 scratch: zero border + channel-padded acts
    # col_ref : (H*W, 9*Cp)      im2col scratch in the compute dtype
    # acc_ref : (H*W, Cp)        f32 residual-path accumulator
    _, H, W, cp = o_ref.shape
    cin = x_ref.shape[3]
    hw = H * W
    cdt = col_ref.dtype                      # matmul dtype (bf16 or f32)

    # ---- stage the input entirely in VMEM: zero border + zero-padded lanes ---
    xpad_ref[...] = jnp.zeros_like(xpad_ref)
    # Widen Cin -> Cp lanes with an identity-embedding matmul so every VMEM
    # store is full-lane-width (no masked partial-lane stores).
    emb = (jax.lax.broadcasted_iota(jnp.int32, (cin, cp), 0)
           == jax.lax.broadcasted_iota(jnp.int32, (cin, cp), 1)
           ).astype(jnp.float32)
    x_flat = x_ref[0].reshape(hw, cin).astype(jnp.float32)
    x_wide = jnp.dot(x_flat, emb, preferred_element_type=jnp.float32)
    xpad_ref[1:1 + H, 1:1 + W, :] = x_wide.reshape(H, W, cp)

    def im2col():
        # Build one (H*W, 9*Cp) column matrix -> a single MXU push per conv.
        for t in range(9):
            dy, dx = divmod(t, 3)
            win = xpad_ref[dy:dy + H, dx:dx + W, :]            # (H, W, Cp)
            col_ref[:, t * cp:(t + 1) * cp] = win.reshape(hw, cp).astype(cdt)

    # ---- layer1: conv3x3 (+ folded BN) + ReLU -------------------------------
    im2col()
    # Residual 1x1 conv reuses the centre-tap column (== channel-padded x);
    # keep it in a VMEM f32 accumulator until the final add.
    acc_ref[...] = (jnp.dot(col_ref[:, 4 * cp:5 * cp], w3_ref[...],
                            preferred_element_type=jnp.float32)
                    + b3_ref[...])
    y1 = jnp.dot(col_ref[...], w1_ref[...], preferred_element_type=jnp.float32)
    y1 = jnp.maximum(y1 + s1_ref[...], 0.0)
    # Write y1 back into the padded activation buffer (border stays zero).
    xpad_ref[1:1 + H, 1:1 + W, :] = y1.reshape(H, W, cp)

    # ---- layer2: conv3x3 (+ folded BN) + ReLU -------------------------------
    im2col()
    y2 = jnp.dot(col_ref[...], w2_ref[...], preferred_element_type=jnp.float32)
    y2 = jnp.maximum(y2 + s2_ref[...], 0.0)

    # ---- residual add, single lane-dense store ------------------------------
    o_ref[...] = (acc_ref[...] + y2).reshape(1, H, W, cp).astype(o_ref.dtype)


# -----------------------------------------------------------------------------
# Wrapper: NCHW in/out, fused pallas_call, channel un-padding
# -----------------------------------------------------------------------------
def quantizable_bottleneck(x_nchw, params):
    x = jnp.transpose(x_nchw, (0, 2, 3, 1)).astype(jnp.float32)   # NCHW -> NHWC
    N, H, W, cin = x.shape
    cp = params["w1"].shape[-1]
    cdt = params["w1"].dtype

    out_padded = pl.pallas_call(
        _bottleneck_kernel,
        out_shape=jax.ShapeDtypeStruct((N, H, W, cp), jnp.float32),
        grid_spec=pltpu.PrefetchScalarGridSpec(
            num_scalar_prefetch=0,
            grid=(N,),
            in_specs=[
                pl.BlockSpec((1, H, W, cin), lambda n: (n, 0, 0, 0)),
                pl.BlockSpec((9 * cp, cp), lambda n: (0, 0)),
                pl.BlockSpec((1, cp), lambda n: (0, 0)),
                pl.BlockSpec((9 * cp, cp), lambda n: (0, 0)),
                pl.BlockSpec((1, cp), lambda n: (0, 0)),
                pl.BlockSpec((cp, cp), lambda n: (0, 0)),
                pl.BlockSpec((1, cp), lambda n: (0, 0)),
            ],
            out_specs=pl.BlockSpec((1, H, W, cp), lambda n: (n, 0, 0, 0)),
            scratch_shapes=[
                pltpu.VMEM((H + 2, W + 2, cp), jnp.float32),   # padded acts
                pltpu.VMEM((H * W, 9 * cp), cdt),              # im2col
                pltpu.VMEM((H * W, cp), jnp.float32),          # residual acc
            ],
        ),
        compiler_params=pltpu.CompilerParams(
            dimension_semantics=("parallel",),
            vmem_limit_bytes=32 * 1024 * 1024,
        ),
    )(x, params["w1"], params["s1"], params["w2"], params["s2"],
      params["w3"], params["b3"])

    out = out_padded[..., :params["cout"]]           # drop the padded channels
    return jnp.transpose(out, (0, 3, 1, 2))          # NHWC -> NCHW


# -----------------------------------------------------------------------------
# Parameter construction (mirrors QuantizableBottleNeck.__init__, eval-mode BN)
# -----------------------------------------------------------------------------
def make_params(key, in_channels, out_channels, compute_dtype=jnp.bfloat16,
                eps=1e-5):
    cp = _round_up(max(in_channels, out_channels), LANES)
    ks = jax.random.split(key, 6)

    def conv_w(k, cin, cout, ksz):
        bound = 1.0 / np.sqrt(cin * ksz * ksz)
        return jax.random.uniform(k, (ksz, ksz, cin, cout), jnp.float32,
                                  -bound, bound)                 # HWIO

    def conv_b(k, cin, cout, ksz):
        bound = 1.0 / np.sqrt(cin * ksz * ksz)
        return jax.random.uniform(k, (cout,), jnp.float32, -bound, bound)

    w1 = conv_w(ks[0], in_channels, out_channels, 3)
    b1 = conv_b(ks[1], in_channels, out_channels, 3)
    w2 = conv_w(ks[2], out_channels, out_channels, 3)
    b2 = conv_b(ks[3], out_channels, out_channels, 3)
    w3 = conv_w(ks[4], in_channels, out_channels, 1)
    b3 = conv_b(ks[5], in_channels, out_channels, 1)

    # BatchNorm2d defaults, eval semantics
    gamma = jnp.ones((out_channels,), jnp.float32)
    beta = jnp.zeros((out_channels,), jnp.float32)
    mean = jnp.zeros((out_channels,), jnp.float32)
    var = jnp.ones((out_channels,), jnp.float32)
    scale = gamma / jnp.sqrt(var + eps)

    def fold(w, b):
        return w * scale[None, None, None, :], beta + (b - mean) * scale

    w1_f, sh1 = fold(w1, b1)
    w2_f, sh2 = fold(w2, b2)

    def pad_w3x3(w, cin):
        wp = jnp.zeros((9, cp, cp), jnp.float32)
        wp = wp.at[:, :cin, :out_channels].set(w.reshape(9, cin, out_channels))
        return wp.reshape(9 * cp, cp).astype(compute_dtype)

    def pad_vec(v):
        return jnp.zeros((1, cp), jnp.float32).at[0, :out_channels].set(v)

    w3p = jnp.zeros((cp, cp), jnp.float32)
    w3p = w3p.at[:in_channels, :out_channels].set(
        w3.reshape(in_channels, out_channels))

    return dict(
        w1=pad_w3x3(w1_f, in_channels), s1=pad_vec(sh1),
        w2=pad_w3x3(w2_f, out_channels), s2=pad_vec(sh2),
        w3=w3p.astype(compute_dtype), b3=pad_vec(b3),
        cout=out_channels,
        raw=dict(w1=w1, b1=b1, w2=w2, b2=b2, w3=w3, b3=b3,
                 gamma=gamma, beta=beta, mean=mean, var=var, eps=eps),
    )


# -----------------------------------------------------------------------------
# Plain-JAX reference built from the raw (unfolded) parameters
# -----------------------------------------------------------------------------
def reference(x_nchw, raw):
    x = jnp.transpose(x_nchw, (0, 2, 3, 1)).astype(jnp.float32)

    def conv(z, w, b, pad):
        y = jax.lax.conv_general_dilated(
            z, w, (1, 1), [(pad, pad), (pad, pad)],
            dimension_numbers=("NHWC", "HWIO", "NHWC"))
        return y + b[None, None, None, :]

    def bn(z):
        s = raw["gamma"] / jnp.sqrt(raw["var"] + raw["eps"])
        return (z - raw["mean"]) * s + raw["beta"]

    y = jnp.maximum(bn(conv(x, raw["w1"], raw["b1"], 1)), 0.0)
    y = jnp.maximum(bn(conv(y, raw["w2"], raw["b2"], 1)), 0.0)
    r = conv(x, raw["w3"], raw["b3"], 0)
    return jnp.transpose(r + y, (0, 3, 1, 2))


if __name__ == "__main__":
    key = jax.random.PRNGKey(0)
    k_x, k_p = jax.random.split(key)

    N, Cin, H, W = 2, 4, 16, 16
    Cout = 8
    x = jax.random.normal(k_x, (N, Cin, H, W), jnp.float32)

    # f32 compute path (v5e-friendly): tight check of the fused structure.
    params_f32 = make_params(k_p, Cin, Cout, compute_dtype=jnp.float32)
    ref = jax.block_until_ready(reference(x, params_f32["raw"]))
    out_f32 = jax.block_until_ready(quantizable_bottleneck(x, params_f32))
    np.testing.assert_allclose(np.asarray(out_f32), np.asarray(ref),
                               rtol=1e-4, atol=1e-4)

    # bf16 compute path (MXU-native on v6e/v7x): f32 accumulation + epilogue.
    params_bf16 = make_params(k_p, Cin, Cout, compute_dtype=jnp.bfloat16)
    out_bf16 = jax.block_until_ready(quantizable_bottleneck(x, params_bf16))
    np.testing.assert_allclose(np.asarray(out_bf16), np.asarray(ref),
                               rtol=3e-2, atol=3e-2)

    print("KERNEL_OK")
</pallas_src>

<mosaic_0001>
module attributes {stable_mosaic.version = 11 : i64} {
  func.func @_bottleneck_kernel(%arg0: i32, %arg1: memref<1x16x16x4xf32, #tpu.memory_space<vmem>>, %arg2: memref<1152x128xf32, #tpu.memory_space<vmem>>, %arg3: memref<1x128xf32, #tpu.memory_space<vmem>>, %arg4: memref<1152x128xf32, #tpu.memory_space<vmem>>, %arg5: memref<1x128xf32, #tpu.memory_space<vmem>>, %arg6: memref<128x128xf32, #tpu.memory_space<vmem>>, %arg7: memref<1x128xf32, #tpu.memory_space<vmem>>, %arg8: memref<1x16x16x128xf32, #tpu.memory_space<vmem>>, %arg9: memref<18x18x128xf32, #tpu.memory_space<vmem>>, %arg10: memref<256x1152xf32, #tpu.memory_space<vmem>>, %arg11: memref<256x128xf32, #tpu.memory_space<vmem>>) attributes {dimension_semantics = [#tpu.dimension_semantics<parallel>], iteration_bounds = array<i64: 2>, scalar_prefetch = 0 : i64, scratch_operands = 3 : i64, tpu.core_type = #tpu.core_type<tc>, window_params = [{transform_indices = @transform_0, window_bounds = array<i64: 1, 16, 16, 4>}, {pipeline_mode = #tpu.pipeline_mode<synchronous>, transform_indices = @transform_1, window_bounds = array<i64: 1152, 128>}, {pipeline_mode = #tpu.pipeline_mode<synchronous>, transform_indices = @transform_2, window_bounds = array<i64: 1, 128>}, {pipeline_mode = #tpu.pipeline_mode<synchronous>, transform_indices = @transform_3, window_bounds = array<i64: 1152, 128>}, {pipeline_mode = #tpu.pipeline_mode<synchronous>, transform_indices = @transform_4, window_bounds = array<i64: 1, 128>}, {pipeline_mode = #tpu.pipeline_mode<synchronous>, transform_indices = @transform_5, window_bounds = array<i64: 128, 128>}, {pipeline_mode = #tpu.pipeline_mode<synchronous>, transform_indices = @transform_6, window_bounds = array<i64: 1, 128>}, {transform_indices = @transform_7, window_bounds = array<i64: 1, 16, 16, 128>}]} {
    %cst = arith.constant 0.000000e+00 : f32
    %0 = vector.broadcast %cst : f32 to vector<18x18x128xf32>
    %c0 = arith.constant 0 : index
    %c0_0 = arith.constant 0 : index
    %c0_1 = arith.constant 0 : index
    %1 = vector.load %arg9[%c0, %c0_0, %c0_1] : memref<18x18x128xf32, #tpu.memory_space<vmem>>, vector<18x18x128xf32>
    tpu.vector_store %arg9[%c0, %c0_0, %c0_1], %0 {strides = array<i32>} : memref<18x18x128xf32, #tpu.memory_space<vmem>>, vector<18x18x128xf32>,
    %2 = tpu.iota {dimensions = array<i32: 0>} : vector<4x128xi32>
    %3 = tpu.iota {dimensions = array<i32: 1>} : vector<4x128xi32>
    %4 = arith.cmpi eq, %2, %3 : vector<4x128xi32>
    %5 = arith.extui %4 : vector<4x128xi1> to vector<4x128xi32>
    %6 = arith.sitofp %5 : vector<4x128xi32> to vector<4x128xf32>
    %c0_2 = arith.constant 0 : index
    %c0_3 = arith.constant 0 : index
    %c0_4 = arith.constant 0 : index
    %c0_5 = arith.constant 0 : index
    %7 = vector.load %arg1[%c0_2, %c0_3, %c0_4, %c0_5] : memref<1x16x16x4xf32, #tpu.memory_space<vmem>>, vector<1x16x16x4xf32>
    %8 = vector.shape_cast %7 : vector<1x16x16x4xf32> to vector<16x16x4xf32>
    %9 = vector.shape_cast %8 : vector<16x16x4xf32> to vector<256x4xf32>
    %cst_6 = arith.constant dense<0.000000e+00> : vector<256x128xf32>
    %10 = tpu.matmul %9, %6, %cst_6 {dimension_numbers = #tpu.dot_dimension_numbers<[1], [0], [0], [1], [0, 0, 1, 1], [], []>} : vector<256x4xf32>, vector<4x128xf32>, vector<256x128xf32> -> vector<256x128xf32>
    %11 = vector.shape_cast %10 : vector<256x128xf32> to vector<16x16x128xf32>
    %c1 = arith.constant 1 : index
    %c1_7 = arith.constant 1 : index
    %c0_8 = arith.constant 0 : index
    %12 = vector.load %arg9[%c1, %c1_7, %c0_8] : memref<18x18x128xf32, #tpu.memory_space<vmem>>, vector<16x16x128xf32>
    tpu.vector_store %arg9[%c1, %c1_7, %c0_8], %11 {strides = array<i32>} : memref<18x18x128xf32, #tpu.memory_space<vmem>>, vector<16x16x128xf32>,
    %c0_9 = arith.constant 0 : index
    %c0_10 = arith.constant 0 : index
    %c0_11 = arith.constant 0 : index
    %13 = vector.load %arg9[%c0_9, %c0_10, %c0_11] : memref<18x18x128xf32, #tpu.memory_space<vmem>>, vector<16x16x128xf32>
    %14 = vector.shape_cast %13 : vector<16x16x128xf32> to vector<256x128xf32>
    %c0_12 = arith.constant 0 : index
    %c0_13 = arith.constant 0 : index
    %15 = vector.load %arg10[%c0_12, %c0_13] : memref<256x1152xf32, #tpu.memory_space<vmem>>, vector<256x128xf32>
    tpu.vector_store %arg10[%c0_12, %c0_13], %14 {strides = array<i32>} : memref<256x1152xf32, #tpu.memory_space<vmem>>, vector<256x128xf32>,
    %c0_14 = arith.constant 0 : index
    %c1_15 = arith.constant 1 : index
    %c0_16 = arith.constant 0 : index
    %16 = vector.load %arg9[%c0_14, %c1_15, %c0_16] : memref<18x18x128xf32, #tpu.memory_space<vmem>>, vector<16x16x128xf32>
    %17 = vector.shape_cast %16 : vector<16x16x128xf32> to vector<256x128xf32>
    %c0_17 = arith.constant 0 : index
    %c128 = arith.constant 128 : index
    %18 = vector.load %arg10[%c0_17, %c128] : memref<256x1152xf32, #tpu.memory_space<vmem>>, vector<256x128xf32>
    tpu.vector_store %arg10[%c0_17, %c128], %17 {strides = array<i32>} : memref<256x1152xf32, #tpu.memory_space<vmem>>, vector<256x128xf32>,
    %c0_18 = arith.constant 0 : index
    %c2 = arith.constant 2 : index
    %c0_19 = arith.constant 0 : index
    %19 = vector.load %arg9[%c0_18, %c2, %c0_19] : memref<18x18x128xf32, #tpu.memory_space<vmem>>, vector<16x16x128xf32>
    %20 = vector.shape_cast %19 : vector<16x16x128xf32> to vector<256x128xf32>
    %c0_20 = arith.constant 0 : index
    %c256 = arith.constant 256 : index
    %21 = vector.load %arg10[%c0_20, %c256] : memref<256x1152xf32, #tpu.memory_space<vmem>>, vector<256x128xf32>
    tpu.vector_store %arg10[%c0_20, %c256], %20 {strides = array<i32>} : memref<256x1152xf32, #tpu.memory_space<vmem>>, vector<256x128xf32>,
    %c1_21 = arith.constant 1 : index
    %c0_22 = arith.constant 0 : index
    %c0_23 = arith.constant 0 : index
    %22 = vector.load %arg9[%c1_21, %c0_22, %c0_23] : memref<18x18x128xf32, #tpu.memory_space<vmem>>, vector<16x16x128xf32>
    %23 = vector.shape_cast %22 : vector<16x16x128xf32> to vector<256x128xf32>
    %c0_24 = arith.constant 0 : index
    %c384 = arith.constant 384 : index
    %24 = vector.load %arg10[%c0_24, %c384] : memref<256x1152xf32, #tpu.memory_space<vmem>>, vector<256x128xf32>
    tpu.vector_store %arg10[%c0_24, %c384], %23 {strides = array<i32>} : memref<256x1152xf32, #tpu.memory_space<vmem>>, vector<256x128xf32>,
    %c1_25 = arith.constant 1 : index
    %c1_26 = arith.constant 1 : index
    %c0_27 = arith.constant 0 : index
    %25 = vector.load %arg9[%c1_25, %c1_26, %c0_27] : memref<18x18x128xf32, #tpu.memory_space<vmem>>, vector<16x16x128xf32>
    %26 = vector.shape_cast %25 : vector<16x16x128xf32> to vector<256x128xf32>
    %c0_28 = arith.constant 0 : index
    %c512 = arith.constant 512 : index
    %27 = vector.load %arg10[%c0_28, %c512] : memref<256x1152xf32, #tpu.memory_space<vmem>>, vector<256x128xf32>
    tpu.vector_store %arg10[%c0_28, %c512], %26 {strides = array<i32>} : memref<256x1152xf32, #tpu.memory_space<vmem>>, vector<256x128xf32>,
    %c1_29 = arith.constant 1 : index
    %c2_30 = arith.constant 2 : index
    %c0_31 = arith.constant 0 : index
    %28 = vector.load %arg9[%c1_29, %c2_30, %c0_31] : memref<18x18x128xf32, #tpu.memory_space<vmem>>, vector<16x16x128xf32>
    %29 = vector.shape_cast %28 : vector<16x16x128xf32> to vector<256x128xf32>
    %c0_32 = arith.constant 0 : index
    %c640 = arith.constant 640 : index
    %30 = vector.load %arg10[%c0_32, %c640] : memref<256x1152xf32, #tpu.memory_space<vmem>>, vector<256x128xf32>
    tpu.vector_store %arg10[%c0_32, %c640], %29 {strides = array<i32>} : memref<256x1152xf32, #tpu.memory_space<vmem>>, vector<256x128xf32>,
    %c2_33 = arith.constant 2 : index
    %c0_34 = arith.constant 0 : index
    %c0_35 = arith.constant 0 : index
    %31 = vector.load %arg9[%c2_33, %c0_34, %c0_35] : memref<18x18x128xf32, #tpu.memory_space<vmem>>, vector<16x16x128xf32>
    %32 = vector.shape_cast %31 : vector<16x16x128xf32> to vector<256x128xf32>
    %c0_36 = arith.constant 0 : index
    %c768 = arith.constant 768 : index
    %33 = vector.load %arg10[%c0_36, %c768] : memref<256x1152xf32, #tpu.memory_space<vmem>>, vector<256x128xf32>
    tpu.vector_store %arg10[%c0_36, %c768], %32 {strides = array<i32>} : memref<256x1152xf32, #tpu.memory_space<vmem>>, vector<256x128xf32>,
    %c2_37 = arith.constant 2 : index
    %c1_38 = arith.constant 1 : index
    %c0_39 = arith.constant 0 : index
    %34 = vector.load %arg9[%c2_37, %c1_38, %c0_39] : memref<18x18x128xf32, #tpu.memory_space<vmem>>, vector<16x16x128xf32>
    %35 = vector.shape_cast %34 : vector<16x16x128xf32> to vector<256x128xf32>
    %c0_40 = arith.constant 0 : index
    %c896 = arith.constant 896 : index
    %36 = vector.load %arg10[%c0_40, %c896] : memref<256x1152xf32, #tpu.memory_space<vmem>>, vector<256x128xf32>
    tpu.vector_store %arg10[%c0_40, %c896], %35 {strides = array<i32>} : memref<256x1152xf32, #tpu.memory_space<vmem>>, vector<256x128xf32>,
    %c2_41 = arith.constant 2 : index
    %c2_42 = arith.constant 2 : index
    %c0_43 = arith.constant 0 : index
    %37 = vector.load %arg9[%c2_41, %c2_42, %c0_43] : memref<18x18x128xf32, #tpu.memory_space<vmem>>, vector<16x16x128xf32>
    %38 = vector.shape_cast %37 : vector<16x16x128xf32> to vector<256x128xf32>
    %c0_44 = arith.constant 0 : index
    %c1024 = arith.constant 1024 : index
    %39 = vector.load %arg10[%c0_44, %c1024] : memref<256x1152xf32, #tpu.memory_space<vmem>>, vector<256x128xf32>
    tpu.vector_store %arg10[%c0_44, %c1024], %38 {strides = array<i32>} : memref<256x1152xf32, #tpu.memory_space<vmem>>, vector<256x128xf32>,
    %c0_45 = arith.constant 0 : index
    %c512_46 = arith.constant 512 : index
    %40 = vector.load %arg10[%c0_45, %c512_46] : memref<256x1152xf32, #tpu.memory_space<vmem>>, vector<256x128xf32>
    %c0_47 = arith.constant 0 : index
    %c0_48 = arith.constant 0 : index
    %41 = vector.load %arg6[%c0_47, %c0_48] : memref<128x128xf32, #tpu.memory_space<vmem>>, vector<128x128xf32>
    %cst_49 = arith.constant dense<0.000000e+00> : vector<256x128xf32>
    %42 = tpu.matmul %40, %41, %cst_49 {dimension_numbers = #tpu.dot_dimension_numbers<[1], [0], [0], [1], [0, 0, 1, 1], [], []>} : vector<256x128xf32>, vector<128x128xf32>, vector<256x128xf32> -> vector<256x128xf32>
    %c0_50 = arith.constant 0 : index
    %c0_51 = arith.constant 0 : index
    %43 = vector.load %arg7[%c0_50, %c0_51] : memref<1x128xf32, #tpu.memory_space<vmem>>, vector<1x128xf32>
    %44 = vector.broadcast %43 : vector<1x128xf32> to vector<256x128xf32>
    %45 = arith.addf %42, %44 : vector<256x128xf32>
    %c0_52 = arith.constant 0 : index
    %c0_53 = arith.constant 0 : index
    %46 = vector.load %arg11[%c0_52, %c0_53] : memref<256x128xf32, #tpu.memory_space<vmem>>, vector<256x128xf32>
    tpu.vector_store %arg11[%c0_52, %c0_53], %45 {strides = array<i32>} : memref<256x128xf32, #tpu.memory_space<vmem>>, vector<256x128xf32>,
    %c0_54 = arith.constant 0 : index
    %c0_55 = arith.constant 0 : index
    %47 = vector.load %arg10[%c0_54, %c0_55] : memref<256x1152xf32, #tpu.memory_space<vmem>>, vector<256x1152xf32>
    %c0_56 = arith.constant 0 : index
    %c0_57 = arith.constant 0 : index
    %48 = vector.load %arg2[%c0_56, %c0_57] : memref<1152x128xf32, #tpu.memory_space<vmem>>, vector<1152x128xf32>
    %cst_58 = arith.constant dense<0.000000e+00> : vector<256x128xf32>
    %49 = tpu.matmul %47, %48, %cst_58 {dimension_numbers = #tpu.dot_dimension_numbers<[1], [0], [0], [1], [0, 0, 1, 1], [], []>} : vector<256x1152xf32>, vector<1152x128xf32>, vector<256x128xf32> -> vector<256x128xf32>
    %c0_59 = arith.constant 0 : index
    %c0_60 = arith.constant 0 : index
    %50 = vector.load %arg3[%c0_59, %c0_60] : memref<1x128xf32, #tpu.memory_space<vmem>>, vector<1x128xf32>
    %51 = vector.broadcast %50 : vector<1x128xf32> to vector<256x128xf32>
    %52 = arith.addf %49, %51 : vector<256x128xf32>
    %cst_61 = arith.constant 0.000000e+00 : f32
    %53 = vector.broadcast %cst_61 : f32 to vector<256x128xf32>
    %54 = arith.maximumf %52, %53 : vector<256x128xf32>
    %55 = vector.shape_cast %54 : vector<256x128xf32> to vector<16x16x128xf32>
    %c1_62 = arith.constant 1 : index
    %c1_63 = arith.constant 1 : index
    %c0_64 = arith.constant 0 : index
    %56 = vector.load %arg9[%c1_62, %c1_63, %c0_64] : memref<18x18x128xf32, #tpu.memory_space<vmem>>, vector<16x16x128xf32>
    tpu.vector_store %arg9[%c1_62, %c1_63, %c0_64], %55 {strides = array<i32>} : memref<18x18x128xf32, #tpu.memory_space<vmem>>, vector<16x16x128xf32>,
    %c0_65 = arith.constant 0 : index
    %c0_66 = arith.constant 0 : index
    %c0_67 = arith.constant 0 : index
    %57 = vector.load %arg9[%c0_65, %c0_66, %c0_67] : memref<18x18x128xf32, #tpu.memory_space<vmem>>, vector<16x16x128xf32>
    %58 = vector.shape_cast %57 : vector<16x16x128xf32> to vector<256x128xf32>
    %c0_68 = arith.constant 0 : index
    %c0_69 = arith.constant 0 : index
    %59 = vector.load %arg10[%c0_68, %c0_69] : memref<256x1152xf32, #tpu.memory_space<vmem>>, vector<256x128xf32>
    tpu.vector_store %arg10[%c0_68, %c0_69], %58 {strides = array<i32>} : memref<256x1152xf32, #tpu.memory_space<vmem>>, vector<256x128xf32>,
    %c0_70 = arith.constant 0 : index
    %c1_71 = arith.constant 1 : index
    %c0_72 = arith.constant 0 : index
    %60 = vector.load %arg9[%c0_70, %c1_71, %c0_72] : memref<18x18x128xf32, #tpu.memory_space<vmem>>, vector<16x16x128xf32>
    %61 = vector.shape_cast %60 : vector<16x16x128xf32> to vector<256x128xf32>
    %c0_73 = arith.constant 0 : index
    %c128_74 = arith.constant 128 : index
    %62 = vector.load %arg10[%c0_73, %c128_74] : memref<256x1152xf32, #tpu.memory_space<vmem>>, vector<256x128xf32>
    tpu.vector_store %arg10[%c0_73, %c128_74], %61 {strides = array<i32>} : memref<256x1152xf32, #tpu.memory_space<vmem>>, vector<256x128xf32>,
    %c0_75 = arith.constant 0 : index
    %c2_76 = arith.constant 2 : index
    %c0_77 = arith.constant 0 : index
    %63 = vector.load %arg9[%c0_75, %c2_76, %c0_77] : memref<18x18x128xf32, #tpu.memory_space<vmem>>, vector<16x16x128xf32>
    %64 = vector.shape_cast %63 : vector<16x16x128xf32> to vector<256x128xf32>
    %c0_78 = arith.constant 0 : index
    %c256_79 = arith.constant 256 : index
    %65 = vector.load %arg10[%c0_78, %c256_79] : memref<256x1152xf32, #tpu.memory_space<vmem>>, vector<256x128xf32>
    tpu.vector_store %arg10[%c0_78, %c256_79], %64 {strides = array<i32>} : memref<256x1152xf32, #tpu.memory_space<vmem>>, vector<256x128xf32>,
    %c1_80 = arith.constant 1 : index
    %c0_81 = arith.constant 0 : index
    %c0_82 = arith.constant 0 : index
    %66 = vector.load %arg9[%c1_80, %c0_81, %c0_82] : memref<18x18x128xf32, #tpu.memory_space<vmem>>, vector<16x16x128xf32>
    %67 = vector.shape_cast %66 : vector<16x16x128xf32> to vector<256x128xf32>
    %c0_83 = arith.constant 0 : index
    %c384_84 = arith.constant 384 : index
    %68 = vector.load %arg10[%c0_83, %c384_84] : memref<256x1152xf32, #tpu.memory_space<vmem>>, vector<256x128xf32>
    tpu.vector_store %arg10[%c0_83, %c384_84], %67 {strides = array<i32>} : memref<256x1152xf32, #tpu.memory_space<vmem>>, vector<256x128xf32>,
    %c1_85 = arith.constant 1 : index
    %c1_86 = arith.constant 1 : index
    %c0_87 = arith.constant 0 : index
    %69 = vector.load %arg9[%c1_85, %c1_86, %c0_87] : memref<18x18x128xf32, #tpu.memory_space<vmem>>, vector<16x16x128xf32>
    %70 = vector.shape_cast %69 : vector<16x16x128xf32> to vector<256x128xf32>
    %c0_88 = arith.constant 0 : index
    %c512_89 = arith.constant 512 : index
    %71 = vector.load %arg10[%c0_88, %c512_89] : memref<256x1152xf32, #tpu.memory_space<vmem>>, vector<256x128xf32>
    tpu.vector_store %arg10[%c0_88, %c512_89], %70 {strides = array<i32>} : memref<256x1152xf32, #tpu.memory_space<vmem>>, vector<256x128xf32>,
    %c1_90 = arith.constant 1 : index
    %c2_91 = arith.constant 2 : index
    %c0_92 = arith.constant 0 : index
    %72 = vector.load %arg9[%c1_90, %c2_91, %c0_92] : memref<18x18x128xf32, #tpu.memory_space<vmem>>, vector<16x16x128xf32>
    %73 = vector.shape_cast %72 : vector<16x16x128xf32> to vector<256x128xf32>
    %c0_93 = arith.constant 0 : index
    %c640_94 = arith.constant 640 : index
    %74 = vector.load %arg10[%c0_93, %c640_94] : memref<256x1152xf32, #tpu.memory_space<vmem>>, vector<256x128xf32>
    tpu.vector_store %arg10[%c0_93, %c640_94], %73 {strides = array<i32>} : memref<256x1152xf32, #tpu.memory_space<vmem>>, vector<256x128xf32>,
    %c2_95 = arith.constant 2 : index
    %c0_96 = arith.constant 0 : index
    %c0_97 = arith.constant 0 : index
    %75 = vector.load %arg9[%c2_95, %c0_96, %c0_97] : memref<18x18x128xf32, #tpu.memory_space<vmem>>, vector<16x16x128xf32>
    %76 = vector.shape_cast %75 : vector<16x16x128xf32> to vector<256x128xf32>
    %c0_98 = arith.constant 0 : index
    %c768_99 = arith.constant 768 : index
    %77 = vector.load %arg10[%c0_98, %c768_99] : memref<256x1152xf32, #tpu.memory_space<vmem>>, vector<256x128xf32>
    tpu.vector_store %arg10[%c0_98, %c768_99], %76 {strides = array<i32>} : memref<256x1152xf32, #tpu.memory_space<vmem>>, vector<256x128xf32>,
    %c2_100 = arith.constant 2 : index
    %c1_101 = arith.constant 1 : index
    %c0_102 = arith.constant 0 : index
    %78 = vector.load %arg9[%c2_100, %c1_101, %c0_102] : memref<18x18x128xf32, #tpu.memory_space<vmem>>, vector<16x16x128xf32>
    %79 = vector.shape_cast %78 : vector<16x16x128xf32> to vector<256x128xf32>
    %c0_103 = arith.constant 0 : index
    %c896_104 = arith.constant 896 : index
    %80 = vector.load %arg10[%c0_103, %c896_104] : memref<256x1152xf32, #tpu.memory_space<vmem>>, vector<256x128xf32>
    tpu.vector_store %arg10[%c0_103, %c896_104], %79 {strides = array<i32>} : memref<256x1152xf32, #tpu.memory_space<vmem>>, vector<256x128xf32>,
    %c2_105 = arith.constant 2 : index
    %c2_106 = arith.constant 2 : index
    %c0_107 = arith.constant 0 : index
    %81 = vector.load %arg9[%c2_105, %c2_106, %c0_107] : memref<18x18x128xf32, #tpu.memory_space<vmem>>, vector<16x16x128xf32>
    %82 = vector.shape_cast %81 : vector<16x16x128xf32> to vector<256x128xf32>
    %c0_108 = arith.constant 0 : index
    %c1024_109 = arith.constant 1024 : index
    %83 = vector.load %arg10[%c0_108, %c1024_109] : memref<256x1152xf32, #tpu.memory_space<vmem>>, vector<256x128xf32>
    tpu.vector_store %arg10[%c0_108, %c1024_109], %82 {strides = array<i32>} : memref<256x1152xf32, #tpu.memory_space<vmem>>, vector<256x128xf32>,
    %c0_110 = arith.constant 0 : index
    %c0_111 = arith.constant 0 : index
    %84 = vector.load %arg10[%c0_110, %c0_111] : memref<256x1152xf32, #tpu.memory_space<vmem>>, vector<256x1152xf32>
    %c0_112 = arith.constant 0 : index
    %c0_113 = arith.constant 0 : index
    %85 = vector.load %arg4[%c0_112, %c0_113] : memref<1152x128xf32, #tpu.memory_space<vmem>>, vector<1152x128xf32>
    %cst_114 = arith.constant dense<0.000000e+00> : vector<256x128xf32>
    %86 = tpu.matmul %84, %85, %cst_114 {dimension_numbers = #tpu.dot_dimension_numbers<[1], [0], [0], [1], [0, 0, 1, 1], [], []>} : vector<256x1152xf32>, vector<1152x128xf32>, vector<256x128xf32> -> vector<256x128xf32>
    %c0_115 = arith.constant 0 : index
    %c0_116 = arith.constant 0 : index
    %87 = vector.load %arg5[%c0_115, %c0_116] : memref<1x128xf32, #tpu.memory_space<vmem>>, vector<1x128xf32>
    %88 = vector.broadcast %87 : vector<1x128xf32> to vector<256x128xf32>
    %89 = arith.addf %86, %88 : vector<256x128xf32>
    %cst_117 = arith.constant 0.000000e+00 : f32
    %90 = vector.broadcast %cst_117 : f32 to vector<256x128xf32>
    %91 = arith.maximumf %89, %90 : vector<256x128xf32>
    %c0_118 = arith.constant 0 : index
    %c0_119 = arith.constant 0 : index
    %92 = vector.load %arg11[%c0_118, %c0_119] : memref<256x128xf32, #tpu.memory_space<vmem>>, vector<256x128xf32>
    %93 = arith.addf %92, %91 : vector<256x128xf32>
    %94 = vector.shape_cast %93 : vector<256x128xf32> to vector<1x16x16x128xf32>
    %c0_120 = arith.constant 0 : index
    %c0_121 = arith.constant 0 : index
    %c0_122 = arith.constant 0 : index
    %c0_123 = arith.constant 0 : index
    %95 = vector.load %arg8[%c0_120, %c0_121, %c0_122, %c0_123] : memref<1x16x16x128xf32, #tpu.memory_space<vmem>>, vector<1x16x16x128xf32>
    tpu.vector_store %arg8[%c0_120, %c0_121, %c0_122, %c0_123], %94 {strides = array<i32>} : memref<1x16x16x128xf32, #tpu.memory_space<vmem>>, vector<1x16x16x128xf32>,
    return
  }
  func.func @transform_0(%arg0: i32) -> (i32, i32, i32, i32) {
    %c0_i32 = arith.constant 0 : i32
    %c0_i32_0 = arith.constant 0 : i32
    %c0_i32_1 = arith.constant 0 : i32
    %c0_i32_2 = arith.constant 0 : i32
    return %arg0, %c0_i32, %c0_i32_0, %c0_i32_1 : i32, i32, i32, i32
  }
  func.func @transform_1(%arg0: i32) -> (i32, i32) {
    %c0_i32 = arith.constant 0 : i32
    %c0_i32_0 = arith.constant 0 : i32
    %c0_i32_1 = arith.constant 0 : i32
    return %c0_i32, %c0_i32_0 : i32, i32
  }
  func.func @transform_2(%arg0: i32) -> (i32, i32) {
    %c0_i32 = arith.constant 0 : i32
    %c0_i32_0 = arith.constant 0 : i32
    %c0_i32_1 = arith.constant 0 : i32
    return %c0_i32, %c0_i32_0 : i32, i32
  }
  func.func @transform_3(%arg0: i32) -> (i32, i32) {
    %c0_i32 = arith.constant 0 : i32
    %c0_i32_0 = arith.constant 0 : i32
    %c0_i32_1 = arith.constant 0 : i32
    return %c0_i32, %c0_i32_0 : i32, i32
  }
  func.func @transform_4(%arg0: i32) -> (i32, i32) {
    %c0_i32 = arith.constant 0 : i32
    %c0_i32_0 = arith.constant 0 : i32
    %c0_i32_1 = arith.constant 0 : i32
    return %c0_i32, %c0_i32_0 : i32, i32
  }
  func.func @transform_5(%arg0: i32) -> (i32, i32) {
    %c0_i32 = arith.constant 0 : i32
    %c0_i32_0 = arith.constant 0 : i32
    %c0_i32_1 = arith.constant 0 : i32
    return %c0_i32, %c0_i32_0 : i32, i32
  }
  func.func @transform_6(%arg0: i32) -> (i32, i32) {
    %c0_i32 = arith.constant 0 : i32
    %c0_i32_0 = arith.constant 0 : i32
    %c0_i32_1 = arith.constant 0 : i32
    return %c0_i32, %c0_i32_0 : i32, i32
  }
  func.func @transform_7(%arg0: i32) -> (i32, i32, i32, i32) {
    %c0_i32 = arith.constant 0 : i32
    %c0_i32_0 = arith.constant 0 : i32
    %c0_i32_1 = arith.constant 0 : i32
    %c0_i32_2 = arith.constant 0 : i32
    return %arg0, %c0_i32, %c0_i32_0, %c0_i32_1 : i32, i32, i32, i32
  }
}

</mosaic_0001>

<bundles_post_ra>
// kernel: tpu_custom_call.1
= control target key start
LH: loop header
LB: loop body
LE: loop exit
PB: predicated region body
PF: predicated region fallthrough
CT: control target
= control target key end

     0   :  { %12 = vsyncpa [#allocation6], 0  ;;  %s9138_s0 = inlined_call_operand.vmem [shape: f32[2,16,16,4], index: 0, kind: input, shape index: {}]   ;;  %s9139_s1 = inlined_call_operand.hbm [shape: f32[1152,128], index: 1, kind: input, shape index: {}]   ;;  %s9140_s2 = inlined_call_operand.vmem [shape: f32[1,128], index: 2, kind: input, shape index: {}]   ;;  %s9141_s3 = inlined_call_operand.hbm [shape: f32[1152,128], index: 3, kind: input, shape index: {}]   ;;  %s9142_s4 = inlined_call_operand.vmem [shape: f32[1,128], index: 4, kind: input, shape index: {}]   ;;  %s9143_s5 = inlined_call_operand.vmem [shape: f32[128,128], index: 5, kind: input, shape index: {}]   ;;  %s9144_s6 = inlined_call_operand.vmem [shape: f32[1,128], index: 6, kind: input, shape index: {}]   ;;  %s9145_s7 = inlined_call_operand.hbm [shape: f32[2,16,16,128], index: 7, kind: output, shape index: {}]  }
   0x1   :  { %13 = vsyncpa [#allocation9], 0 }
   0x2   :  { %14 = vsyncpa [#allocation7], 0 }
   0x3   :  { %16 = vsyncpa [#allocation7 + $0x1], 0  ;;  %s7342_s24 = smov 0   ;;  %s7344_s25 = smov 0  }
   0x4   :  { %s7346_s26 = smov 0   ;;  %s7348_s27 = smov 0  }
   0x5 LB: > { %s7363_s28 = sadd.s32 4294967295, %s7291_s27   ;;  %s5642_s29 = sadd.s32 4294967294, %s7291_s27   ;;  %s7291_s27 = sphi %s7348_s27, %s9401_s27   ;;  %s7287_s26 = sphi %s7346_s26, %s9400_s26   ;;  %s7283_s25 = sphi %s7344_s25, %s9399_s25   ;;  %s7279_s24 = sphi %s7342_s24, %s9398_s24  }
   0x6   : > { %s7367_s30 = sadd.s32 1, %s7291_s27   ;;  %s181_s8 = sadd.s32 1, %s7287_s26 }
   0x7   : > { %s178_s9 = ssub.s32 %s7291_s27, %s7367_s30  ;;  %p191_p0 = scmp.ne.s32.totalorder %s7287_s26, %s7283_s25 }
   0x8   : > { %p179_p1 = scmp.eq.s32.totalorder %s178_s9, 0  ;;  %p192_p2 = scmp.eq.s32.totalorder %s7363_s28, 1 }
   0x9   : > { %p197_p3 = scmp.ne.s32.totalorder %s7283_s25, %s7279_s24  ;;  %p198_p4 = scmp.eq.s32.totalorder %s5642_s29, 1 }
   0xa   : > { %s7378_s10 = scalar_select %p179_p1, %s7287_s26, %s181_s8  }
   0xb   : > { %p7380_p5 = por %p192_p2, %p191_p0  ;;  %p7384_p6 = por %p198_p4, %p197_p3 }
   0xc   : > { %9212 = sst [smem:[#allocation14_spill]] %s7378_s10  ;;  %p5643_p7 = scmp.ge.s32.totalorder %s7291_s27, 1 }
   0xd   : > { %s9213_s11 = scalar_select %p7380_p5, 1, 0 }
   0xe   : > { %s9214_s12 = scalar_select %p7384_p6, 1, 0 }
   0xf   : > { %p205_p8 = scmp.lt.s32.totalorder %s7291_s27, 3  ;;  %p9146_p9 = scmp.eq.s32.totalorder %s7363_s28, 0 }
  0x10   : > { %s7293_s14 = smov [#allocation5]   ;;  %s7294_s17 = smov [#allocation8]  }
  0x11   : > { %p7391_p10 = pnand %p5643_p7, %p205_p8  ;;  %s217_s15 = sshll.u32 %s7293_s14, 4  ;;  %s218_s15 = int_to_ptr.vmem [resolvable:$true] %s217_s15 }
  0x12   : > { %s233_s18 = sshll.u32 %s7294_s17, 4  ;;  %s7165_s21 = scalar_lea.hbm %s9139_s1, 18432  ;;  %s7403_s18 = int_to_ptr.vmem [resolvable:$true] %s233_s18 }
  0x13   : > { %s9215_s13 = scalar_select %p7391_p10, 1, 0 }
  0x14   : > { %p7102_p11 = pneg %p7391_p10  ;;  %p7166_p13 = scmp.ne.s32.totalorder %s9139_s1, %s7165_s21 }
  0x15   : > { %p7172_p3 = scmp.lt.u32.totalorder %s7165_s21, %s9139_s1 }
  0x16   : > { %p7399_p12 = pnand %p9146_p9, %p7102_p11 }
  0x18   : > { %p7167_p0 = pneg %p7399_p12 }
  0x1a   : > { %p7168_p1 = pnand %p7167_p0, %p7166_p13 }
  0x1c   : > { %p7169_p2 = pneg %p7168_p1 }
  0x1e   : > { %p7174_p4 = pnand %p7172_p3, %p7169_p2 }
  0x20   : > { %7177 = shalt.err (!%p7174_p4)
}
  0x21   : > { %s7178_s9 = scalar_lea.vmem %s218_s15, 18432  ;;  %p7186_p9 = scmp.lt.s32.totalorder %s218_s15, %s218_s15 }
  0x22   : > { %p7179_p7 = scmp.ne.s32.totalorder %s218_s15, %s7178_s9  ;;  %p7187_p6 = scmp.lt.s32.totalorder %s7178_s9, %s7178_s9 }
  0x24   : > { %p7181_p8 = pnand %p7179_p7, %p7167_p0  ;;  %p7188_p5 = por %p7187_p6, %p7186_p9 }
  0x26   : > { %p7182_p11 = pneg %p7181_p8 }
  0x28   : > { %p7189_p10 = pnand %p7188_p5, %p7182_p11 }
  0x2a   : > { %7192 = shalt.err (!%p7189_p10)
}
  0x2b   : > { %s7295_s14 = smov 128   ;;  %s7296_s17 = smov 8  }
  0x2c   : > { %7105 = dma.hbm_to_vmem [thread:$0]  (!%p7399_p12), %s9139_s1, 18432, %s218_s15, [#allocation6], %s7295_s14, %s7295_s14, %s7296_s17  }
  0x2d   : > { %s7193_s23 = scalar_lea.hbm %s9141_s3, 18432 }
  0x2e   : > { %p7194_p13 = scmp.ne.s32.totalorder %s9141_s3, %s7193_s23  ;;  %p7200_p9 = scmp.lt.u32.totalorder %s7193_s23, %s9141_s3 }
  0x30   : > { %p7196_p5 = pnand %p7194_p13, %p7167_p0 }
  0x32   : > { %p7197_p6 = pneg %p7196_p5 }
  0x34   : > { %p7202_p10 = pnand %p7200_p9, %p7197_p6 }
  0x36   : > { %7205 = shalt.err (!%p7202_p10)
}
  0x37   : > { %s7206_s15 = scalar_lea.vmem %s7403_s18, 18432  ;;  %p7214_p4 = scmp.lt.s32.totalorder %s7403_s18, %s7403_s18 }
  0x38   : > { %p7207_p1 = scmp.ne.s32.totalorder %s7403_s18, %s7206_s15  ;;  %p7215_p7 = scmp.lt.s32.totalorder %s7206_s15, %s7206_s15 }
  0x3a   : > { %p7209_p2 = pnand %p7207_p1, %p7167_p0  ;;  %p7216_p8 = por %p7215_p7, %p7214_p4 }
  0x3c   : > { %p7210_p3 = pneg %p7209_p2 }
  0x3e   : > { %p7217_p11 = pnand %p7216_p8, %p7210_p3 }
  0x40   : > { %7220 = shalt.err (!%p7217_p11)
}
  0x41   : > { %7108 = dma.hbm_to_vmem [thread:$0]  (!%p7399_p12), %s9141_s3, 18432, %s7403_s18, [#allocation9], %s7295_s14, %s7295_s14, %s7296_s17  }
  0x42   : > { %p9217_p13 = scmp.ne.s32.totalorder %s9215_s13, 0 }
  0x44   : > { %266 = sbr.rel (%p9217_p13) target bundleno = 1650 (0x672), region = 48 }
  0x4b   : > { %p9218_p5 = scmp.eq.s32.totalorder %s7363_s28, 0 }
  0x4d   : > { %7266 = dma.done.wait (%p9218_p5), [#allocation6], 18432   ;;  %p9219_p0 = pmov %p9218_p5 }
  0x4f   : > { %7268 = vsyncadd (%p9219_p0), [#allocation6], 4294948864  ;;  %p9220_p6 = pmov %p9219_p0 }
  0x50   : > { %p9221_p9 = pmov %p9219_p0 }
  0x51   : > { %7270 = dma.done.wait (%p9220_p6), [#allocation9], 18432  }
  0x52   : > { %7272 = vsyncadd (%p9221_p9), [#allocation9], 4294948864  ;;  %v361_v0 = vlaneseq  ;;  %p302_p10 = scmp.lt.s32.totalorder %s7363_s28, 1  ;;  %v7297_v1 = vmov 0.0   ;;  %vm497_vm0 = vcmask 1043456   ;;  %vm400_vm2 = vcmask 31744  }
  0x53   : > { %307 = vst [vmem:[#allocation2] sm:$0xff] %v7297_v1  ;;  %308 = vst [vmem:[#allocation2 + $0x8] sm:$0xff] %v7297_v1  ;;  %v9149_v8 = vmov 0.0|0.0   ;;  %v1936_v13 = vld [vmem:[#allocation5] sm:$0xff]  ;;  %v1937_v15 = vld [vmem:[#allocation5 + $0x8] sm:$0xff]  ;;  %s299_s19 = sand.u32 1, %s7283_s25  }
  0x54   : > { %309 = vst [vmem:[#allocation2 + $0x10] sm:$0x3] %v7297_v1  ;;  %310 = vst [vmem:[#allocation2 + $0x18] sm:$0xff] %v7297_v1  ;;  %v362_v2 = vshrl.u32 %v361_v0, 7  ;;  %v364_v3 = vand.u32 127, %v361_v0  ;;  %s303_s13 = scalar_select %p302_p10, %s7363_s28, 1  ;;  %v6197_v17 = vpack.c.bf16 %v1937_v15, %v1936_v13 }
  0x55   : > { %311 = vst [vmem:[#allocation2 + $0x20] sm:$0xff] %v7297_v1  ;;  %312 = vst [vmem:[#allocation2 + $0x28] sm:$0x3] %v7297_v1  ;;  %v1938_v18 = vld [vmem:[#allocation5 + $0x10] sm:$0xff]  ;;  %v1939_v19 = vld [vmem:[#allocation5 + $0x18] sm:$0xff]  ;;  %s5696_s14 = sshll.u32 %s7363_s28, 12 }
  0x56   : > { %313 = vst [vmem:[#allocation2 + $0x30] sm:$0xff] %v7297_v1  ;;  %314 = vst [vmem:[#allocation2 + $0x38] sm:$0xff] %v7297_v1  ;;  %vm365_vm1 = vcmp.eq.s32.totalorder %v362_v2, %v364_v3  ;;  %s5695_s16 = sshll.u32 %s303_s13, 8  ;;  %v6200_v21 = vpack.c.bf16 %v1939_v19, %v1938_v18  ;;  %v1940_v23 = vld [vmem:[#allocation5 + $0x20] sm:$0xff]  ;;  %v1941_v24 = vld [vmem:[#allocation5 + $0x28] sm:$0xff]  ;;  %s9089_s23 = scalar_lea.hbm %s9145_s7, %s5696_s14 }
  0x57   : > { %315 = vst [vmem:[#allocation2 + $0x40] sm:$0x3] %v7297_v1  ;;  %316 = vst [vmem:[#allocation2 + $0x48] sm:$0xff] %v7297_v1  ;;  %v5653_v4 = vsel %vm365_vm1, 1.0, %v7297_v1  ;;  %s7524_s17 = scalar_lea.vmem %s9138_s0, %s5695_s16  ;;  %v1368_v25 = vld [vmem:[%s9143_s5] sm:$0xff]  ;;  %v1369_v26 = vld [vmem:[%s9143_s5 + $0x8] sm:$0xff]  ;;  %v6203_v31 = vpack.c.bf16 %v1941_v24, %v1940_v23 }
  0x58   : > { %317 = vst [vmem:[#allocation2 + $0x50] sm:$0xff] %v7297_v1  ;;  %318 = vst [vmem:[#allocation2 + $0x58] sm:$0x3] %v7297_v1  ;;  %5874 = vmatprep.subr.msk.mxu0 %vm497_vm0, %v5653_v4  ;;  %v368_v5 = vld [vmem:[%s7524_s17] sm:$0xff]  ;;  %v369_v6 = vld [vmem:[%s7524_s17 + $0x8] sm:$0xff]  ;;  %v6164_v28 = vpack.c.bf16 %v1369_v26, %v1368_v25  ;;  %s9097_s29 = scalar_lea.sflag [#allocation7], %s299_s19 }
  0x59   : > { %319 = vst [vmem:[#allocation2 + $0x60] sm:$0xff] %v7297_v1  ;;  %320 = vst [vmem:[#allocation2 + $0x68] sm:$0xff] %v7297_v1  ;;  %5875 = vmatpush3.msk.msra.mxu0 %vm497_vm0, %v5653_v4  ;;  %v370_v7 = vld [vmem:[%s7524_s17 + $0x10] sm:$0xff]  ;;  %5876 = vmatprep.mubr.msk.f32.mxu0 %vm400_vm2, %v368_v5  ;;  %v371_v9 = vld [vmem:[%s7524_s17 + $0x18] sm:$0xff]  ;;  %p9395_p1 = scmp.ne.s32.totalorder %s9213_s11, 0  ;;  %s7299_s8 = smov [#allocation10]  }
  0x5a   : > { %321 = vst [vmem:[#allocation2 + $0x70] sm:$0x3] %v7297_v1  ;;  %322 = vst [vmem:[#allocation2 + $0x78] sm:$0xff] %v7297_v1  ;;  %6196 = vmatprep.subr.bf16.mxu0 %v9149_v8  ;;  %5877 = vmatmul.mubr.msk.f32.vlgmr.msra.gmra.mrb[0].mxu0 %vm400_vm2, %v369_v6  ;;  %v372_v10 = vld [vmem:[%s7524_s17 + $0x20] sm:$0xff]  ;;  %v373_v11 = vld [vmem:[%s7524_s17 + $0x28] sm:$0xff]  ;;  %s7225_s9 = sshll.u32 %s7299_s8, 4  ;;  %s7226_s9 = int_to_ptr.vmem [resolvable:$false] %s7225_s9 }
  0x5b   : > { %323 = vst [vmem:[#allocation2 + $0x80] sm:$0xff] %v7297_v1  ;;  %324 = vst [vmem:[#allocation2 + $0x88] sm:$0x3] %v7297_v1  ;;  %5879 = vmatprep.mubr.msk.f32.mxu0 %vm400_vm2, %v370_v7  ;;  %v374_v12 = vld [vmem:[%s7524_s17 + $0x30] sm:$0xff]  ;;  %v375_v14 = vld [vmem:[%s7524_s17 + $0x38] sm:$0xff]  ;;  %6198 = vmatpush1.bf16.msra.mxu0 %v6197_v17  ;;  %s7227_s15 = scalar_lea.vmem %s7226_s9, 8192 }
  0x5c   : > { %325 = vst [vmem:[#allocation2 + $0x90] sm:$0xff] %v7297_v1  ;;  %326 = vst [vmem:[#allocation2 + $0x98] sm:$0xff] %v7297_v1  ;;  %v376_v16 = vld [vmem:[%s7524_s17 + $0x40] sm:$0xff]  ;;  %v377_v20 = vld [vmem:[%s7524_s17 + $0x48] sm:$0xff]  ;;  %6199 = vmatprep.subr.bf16.mxu0 %v9149_v8  ;;  %6165 = vmatprep.subr.bf16.mxu1 %v6164_v28 }
  0x5d   : > { %327 = vst [vmem:[#allocation2 + $0xa0] sm:$0x3] %v7297_v1  ;;  %328 = vst [vmem:[#allocation2 + $0xa8] sm:$0xff] %v7297_v1  ;;  %v378_v22 = vld [vmem:[%s7524_s17 + $0x50] sm:$0xff]  ;;  %v379_v27 = vld [vmem:[%s7524_s17 + $0x58] sm:$0xff]  ;;  %6167 = vmatpush3.bf16.msra.mxu1 %v6164_v28 }
  0x5e   : > { %329 = vst [vmem:[#allocation2 + $0xb0] sm:$0xff] %v7297_v1  ;;  %330 = vst [vmem:[#allocation2 + $0xb8] sm:$0x3] %v7297_v1  ;;  %5880 = vmatmul.mubr.msk.f32.gmra.mrb[2].mxu0 %vm400_vm2, %v371_v9  ;;  %v1370_v29 = vld [vmem:[%s9143_s5 + $0x10] sm:$0xff]  ;;  %v380_v30 = vld [vmem:[%s7524_s17 + $0x60] sm:$0xff] }
  0x5f   : > { %331 = vst [vmem:[#allocation2 + $0xc0] sm:$0xff] %v7297_v1  ;;  %332 = vst [vmem:[#allocation2 + $0xc8] sm:$0xff] %v7297_v1  ;;  %5882 = vmatprep.mubr.msk.f32.mxu0 %vm400_vm2, %v372_v10  ;;  %6201 = vmatpush1.bf16.msra.mxu0 %v6200_v21  ;;  %v1942_v32 = vld [vmem:[#allocation5 + $0x30] sm:$0xff]  ;;  %v1371_v33 = vld [vmem:[%s9143_s5 + $0x18] sm:$0xff] }
  0x60   : > { %333 = vst [vmem:[#allocation2 + $0xd0] sm:$0x3] %v7297_v1  ;;  %334 = vst [vmem:[#allocation2 + $0xd8] sm:$0xff] %v7297_v1  ;;  %6202 = vmatprep.subr.bf16.mxu0 %v9149_v8  ;;  %v1943_v34 = vld [vmem:[#allocation5 + $0x38] sm:$0xff]  ;;  %v6168_v35 = vpack.c.bf16 %v1371_v33, %v1370_v29  ;;  %v1372_v36 = vld [vmem:[%s9143_s5 + $0x20] sm:$0xff] }
  0x61   : > { %335 = vst [vmem:[#allocation2 + $0xe0] sm:$0xff] %v7297_v1  ;;  %336 = vst [vmem:[#allocation2 + $0xe8] sm:$0x3] %v7297_v1  ;;  %v1373_v37 = vld [vmem:[%s9143_s5 + $0x28] sm:$0xff]  ;;  %v6206_v40 = vpack.c.bf16 %v1943_v34, %v1942_v32  ;;  %v1374_v41 = vld [vmem:[%s9143_s5 + $0x30] sm:$0xff] }
  0x62   : > { %337 = vst [vmem:[#allocation2 + $0xf0] sm:$0xff] %v7297_v1  ;;  %338 = vst [vmem:[#allocation2 + $0xf8] sm:$0xff] %v7297_v1  ;;  %5883 = vmatmul.mubr.msk.f32.gmra.mrb[4].mxu0 %vm400_vm2, %v373_v11  ;;  %6169 = vmatprep.subr.bf16.mxu1 %v6168_v35  ;;  %v6172_v38 = vpack.c.bf16 %v1373_v37, %v1372_v36  ;;  %v381_v39 = vld [vmem:[%s7524_s17 + $0x68] sm:$0xff]  ;;  %v1375_v42 = vld [vmem:[%s9143_s5 + $0x38] sm:$0xff] }
  0x63   : > { %339 = vst [vmem:[#allocation2 + $0x100] sm:$0x3] %v7297_v1  ;;  %340 = vst [vmem:[#allocation2 + $0x108] sm:$0xff] %v7297_v1  ;;  %5885 = vmatprep.mubr.msk.f32.mxu0 %vm400_vm2, %v374_v12  ;;  %6204 = vmatpush1.bf16.msra.mxu0 %v6203_v31  ;;  %v382_v43 = vld [vmem:[%s7524_s17 + $0x70] sm:$0xff]  ;;  %v1945_v45 = vld [vmem:[#allocation5 + $0x48] sm:$0xff]  ;;  %v6176_v46 = vpack.c.bf16 %v1375_v42, %v1374_v41 }
  0x64   : > { %341 = vst [vmem:[#allocation2 + $0x110] sm:$0xff] %v7297_v1  ;;  %342 = vst [vmem:[#allocation2 + $0x118] sm:$0x3] %v7297_v1  ;;  %6205 = vmatprep.subr.bf16.mxu0 %v9149_v8  ;;  %v1944_v44 = vld [vmem:[#allocation5 + $0x40] sm:$0xff]  ;;  %6171 = vmatpush3.bf16.msra.mxu1 %v6168_v35  ;;  %v383_v47 = vld [vmem:[%s7524_s17 + $0x78] sm:$0xff] }
  0x65   : > { %343 = vst [vmem:[#allocation2 + $0x120] sm:$0xff] %v7297_v1  ;;  %344 = vst [vmem:[#allocation2 + $0x128] sm:$0xff] %v7297_v1  ;;  %6173 = vmatprep.subr.bf16.mxu1 %v6172_v38  ;;  %v6209_v48 = vpack.c.bf16 %v1945_v45, %v1944_v44  ;;  %v1376_v49 = vld [vmem:[%s9143_s5 + $0x40] sm:$0xff]  ;;  %v1377_v50 = vld [vmem:[%s9143_s5 + $0x48] sm:$0xff] }
  0x66   : > { %345 = vst [vmem:[#allocation2 + $0x130] sm:$0x3] %v7297_v1  ;;  %346 = vst [vmem:[#allocation2 + $0x138] sm:$0xff] %v7297_v1  ;;  %5886 = vmatmul.mubr.msk.f32.gmra.mrb[6].mxu0 %vm400_vm2, %v375_v14  ;;  %v384_v51 = vld [vmem:[%s7524_s17 + $0x80] sm:$0xff]  ;;  %v1947_v53 = vld [vmem:[#allocation5 + $0x58] sm:$0xff]  ;;  %v6180_v54 = vpack.c.bf16 %v1377_v50, %v1376_v49 }
  0x67   : > { %347 = vst [vmem:[#allocation2 + $0x140] sm:$0xff] %v7297_v1  ;;  %348 = vst [vmem:[#allocation2 + $0x148] sm:$0x3] %v7297_v1  ;;  %5888 = vmatprep.mubr.msk.f32.mxu0 %vm400_vm2, %v376_v16  ;;  %6207 = vmatpush1.bf16.msra.mxu0 %v6206_v40  ;;  %v1946_v52 = vld [vmem:[#allocation5 + $0x50] sm:$0xff]  ;;  %v385_v55 = vld [vmem:[%s7524_s17 + $0x88] sm:$0xff] }
  0x68   : > { %349 = vst [vmem:[#allocation2 + $0x150] sm:$0xff] %v7297_v1  ;;  %350 = vst [vmem:[#allocation2 + $0x158] sm:$0xff] %v7297_v1  ;;  %6208 = vmatprep.subr.bf16.mxu0 %v9149_v8  ;;  %6175 = vmatpush3.bf16.msra.mxu1 %v6172_v38  ;;  %v6212_v56 = vpack.c.bf16 %v1947_v53, %v1946_v52  ;;  %v1378_v57 = vld [vmem:[%s9143_s5 + $0x50] sm:$0xff]  ;;  %v1379_v58 = vld [vmem:[%s9143_s5 + $0x58] sm:$0xff] }
  0x69   : > { %351 = vst [vmem:[#allocation2 + $0x160] sm:$0x3] %v7297_v1  ;;  %352 = vst [vmem:[#allocation2 + $0x168] sm:$0xff] %v7297_v1  ;;  %6177 = vmatprep.subr.bf16.mxu1 %v6176_v46  ;;  %v386_v59 = vld [vmem:[%s7524_s17 + $0x90] sm:$0xff]  ;;  %v1949_v61 = vld [vmem:[#allocation5 + $0x68] sm:$0xff]  ;;  %v6184_v62 = vpack.c.bf16 %v1379_v58, %v1378_v57 }
  0x6a   : > { %353 = vst [vmem:[#allocation2 + $0x170] sm:$0xff] %v7297_v1  ;;  %354 = vst [vmem:[#allocation2 + $0x178] sm:$0x3] %v7297_v1  ;;  %5889 = vmatmul.mubr.msk.f32.gmra.mrb[8].mxu0 %vm400_vm2, %v377_v20  ;;  %v1948_v60 = vld [vmem:[#allocation5 + $0x60] sm:$0xff]  ;;  %v387_v63 = vld [vmem:[%s7524_s17 + $0x98] sm:$0xff] }
  0x6b   : > { %355 = vst [vmem:[#allocation2 + $0x180] sm:$0xff] %v7297_v1  ;;  %356 = vst [vmem:[#allocation2 + $0x188] sm:$0xff] %v7297_v1  ;;  %5891 = vmatprep.mubr.msk.f32.mxu0 %vm400_vm2, %v378_v22  ;;  %6210 = vmatpush1.bf16.msra.mxu0 %v6209_v48  ;;  %v6215_v0 = vpack.c.bf16 %v1949_v61, %v1948_v60  ;;  %v388_v2 = vld [vmem:[%s7524_s17 + $0xa0] sm:$0xff]  ;;  %v1951_v4 = vld [vmem:[#allocation5 + $0x78] sm:$0xff] }
  0x6c   : > { %357 = vst [vmem:[#allocation2 + $0x190] sm:$0x3] %v7297_v1  ;;  %358 = vst [vmem:[#allocation2 + $0x198] sm:$0xff] %v7297_v1  ;;  %6211 = vmatprep.subr.bf16.mxu0 %v9149_v8  ;;  %6179 = vmatpush3.bf16.msra.mxu1 %v6176_v46  ;;  %v1950_v3 = vld [vmem:[#allocation5 + $0x70] sm:$0xff]  ;;  %v389_v5 = vld [vmem:[%s7524_s17 + $0xa8] sm:$0xff] }
  0x6d   : > { %359 = vst [vmem:[#allocation2 + $0x1a0] sm:$0xff] %v7297_v1  ;;  %360 = vst [vmem:[#allocation2 + $0x1a8] sm:$0x3] %v7297_v1  ;;  %6181 = vmatprep.subr.bf16.mxu1 %v6180_v54  ;;  %v6218_v6 = vpack.c.bf16 %v1951_v4, %v1950_v3  ;;  %v390_v7 = vld [vmem:[%s7524_s17 + $0xb0] sm:$0xff]  ;;  %v1953_v10 = vld [vmem:[#allocation5 + $0x88] sm:$0xff] }
  0x6e   : > { %5892 = vmatmul.mubr.msk.f32.gmra.mrb[10].mxu0 %vm400_vm2, %v379_v27  ;;  %v1952_v9 = vld [vmem:[#allocation5 + $0x80] sm:$0xff]  ;;  %v391_v11 = vld [vmem:[%s7524_s17 + $0xb8] sm:$0xff]  ;;  %v392_v13 = vld [vmem:[%s7524_s17 + $0xc0] sm:$0xff] }
  0x6f   : > { %5894 = vmatprep.mubr.msk.f32.mxu0 %vm400_vm2, %v380_v30  ;;  %6213 = vmatpush1.bf16.msra.mxu0 %v6212_v56  ;;  %v6221_v12 = vpack.c.bf16 %v1953_v10, %v1952_v9  ;;  %v1954_v14 = vld [vmem:[#allocation5 + $0x90] sm:$0xff]  ;;  %v1955_v15 = vld [vmem:[#allocation5 + $0x98] sm:$0xff]  ;;  %v394_v18 = vld [vmem:[%s7524_s17 + $0xd0] sm:$0xff] }
  0x70   : > { %6214 = vmatprep.subr.bf16.mxu0 %v9149_v8  ;;  %6183 = vmatpush3.bf16.msra.mxu1 %v6180_v54  ;;  %v393_v16 = vld [vmem:[%s7524_s17 + $0xc8] sm:$0xff]  ;;  %v6224_v17 = vpack.c.bf16 %v1955_v15, %v1954_v14  ;;  %v1956_v19 = vld [vmem:[#allocation5 + $0xa0] sm:$0xff]  ;;  %v1957_v20 = vld [vmem:[#allocation5 + $0xa8] sm:$0xff] }
  0x71   : > { %6185 = vmatprep.subr.bf16.mxu1 %v6184_v62  ;;  %v395_v21 = vld [vmem:[%s7524_s17 + $0xd8] sm:$0xff]  ;;  %v6227_v22 = vpack.c.bf16 %v1957_v20, %v1956_v19  ;;  %v396_v23 = vld [vmem:[%s7524_s17 + $0xe0] sm:$0xff]  ;;  %v1959_v25 = vld [vmem:[#allocation5 + $0xb8] sm:$0xff] }
  0x72   : > { %5895 = vmatmul.mubr.msk.f32.gmra.mrb[12].mxu0 %vm400_vm2, %v381_v39  ;;  %v1958_v24 = vld [vmem:[#allocation5 + $0xb0] sm:$0xff]  ;;  %v397_v26 = vld [vmem:[%s7524_s17 + $0xe8] sm:$0xff]  ;;  %v398_v28 = vld [vmem:[%s7524_s17 + $0xf0] sm:$0xff] }
  0x73   : > { %5897 = vmatprep.mubr.msk.f32.mxu0 %vm400_vm2, %v382_v43  ;;  %6216 = vmatpush1.bf16.msra.mxu0 %v6215_v0  ;;  %v6230_v27 = vpack.c.bf16 %v1959_v25, %v1958_v24  ;;  %v1960_v29 = vld [vmem:[#allocation5 + $0xc0] sm:$0xff]  ;;  %v1961_v30 = vld [vmem:[#allocation5 + $0xc8] sm:$0xff]  ;;  %v1962_v33 = vld [vmem:[#allocation5 + $0xd0] sm:$0xff] }
  0x74   : > { %6217 = vmatprep.subr.bf16.mxu0 %v9149_v8  ;;  %6187 = vmatpush3.bf16.msra.mxu1 %v6184_v62  ;;  %v399_v31 = vld [vmem:[%s7524_s17 + $0xf8] sm:$0xff]  ;;  %v6233_v32 = vpack.c.bf16 %v1961_v30, %v1960_v29  ;;  %v1963_v34 = vld [vmem:[#allocation5 + $0xd8] sm:$0xff]  ;;  %v1964_v36 = vld [vmem:[#allocation5 + $0xe0] sm:$0xff]  ;;  %s5650_s17 = sshll.u32 %s299_s19, 8 }
  0x75   : > { %v6236_v35 = vpack.c.bf16 %v1963_v34, %v1962_v33  ;;  %v1965_v37 = vld [vmem:[#allocation5 + $0xe8] sm:$0xff]  ;;  %v1966_v39 = vld [vmem:[#allocation5 + $0xf0] sm:$0xff]  ;;  %v1967_v40 = vld [vmem:[#allocation5 + $0xf8] sm:$0xff]  ;;  %s8948_s18 = scalar_lea.vmem [#allocation10], %s5650_s17 }
  0x76   : > { %5898 = vmatmul.mubr.msk.f32.gmra.mrb[14].mxu0 %vm400_vm2, %v383_v47  ;;  %v6239_v38 = vpack.c.bf16 %v1965_v37, %v1964_v36  ;;  %v6242_v41 = vpack.c.bf16 %v1967_v40, %v1966_v39  ;;  %v1380_v42 = vld [vmem:[%s9143_s5 + $0x60] sm:$0xff]  ;;  %v1381_v43 = vld [vmem:[%s9143_s5 + $0x68] sm:$0xff]  ;;  %v1382_v46 = vld [vmem:[%s9143_s5 + $0x70] sm:$0xff]  ;;  %s5558_s20 = sshll.u32 %s8948_s18, 4  ;;  %s9091_s20 = int_to_ptr.vmem [resolvable:$true] %s5558_s20 }
  0x77   : > { %5900 = vmatprep.mubr.msk.f32.mxu0 %vm400_vm2, %v384_v51  ;;  %6219 = vmatpush1.bf16.msra.mxu0 %v6218_v6  ;;  %v6188_v44 = vpack.c.bf16 %v1381_v43, %v1380_v42  ;;  %v823_v45 = vld [vmem:[#allocation2 + $0x1] sm:$0xff]  ;;  %v1383_v47 = vld [vmem:[%s9143_s5 + $0x78] sm:$0xff]  ;;  %v824_v49 = vld [vmem:[#allocation2 + $0x9] sm:$0xff]  ;;  %s7221_s28 = scalar_lea.vmem %s9091_s20, 4096  ;;  %p7228_p4 = scmp.lt.s32.totalorder %s9091_s20, %s7226_s9 }
  0x78   : > { %6220 = vmatprep.subr.bf16.mxu0 %v9149_v8  ;;  %v6192_v48 = vpack.c.bf16 %v1383_v47, %v1382_v46  ;;  %v1968_v50 = vld [vmem:[#allocation5 + $0x100] sm:$0xff]  ;;  %v1969_v51 = vld [vmem:[#allocation5 + $0x108] sm:$0xff]  ;;  %v1970_v53 = vld [vmem:[#allocation5 + $0x110] sm:$0xff]  ;;  %p7222_p12 = scmp.ne.s32.totalorder %s9091_s20, %s7221_s28  ;;  %p7229_p7 = scmp.lt.s32.totalorder %s7227_s15, %s7221_s28 }
  0x79   : > { %6189 = vmatprep.subr.bf16.mxu1 %v6188_v44  ;;  %v6245_v52 = vpack.c.bf16 %v1969_v51, %v1968_v50  ;;  %v1971_v54 = vld [vmem:[#allocation5 + $0x118] sm:$0xff]  ;;  %v1972_v56 = vld [vmem:[#allocation5 + $0x120] sm:$0xff]  ;;  %v1973_v57 = vld [vmem:[#allocation5 + $0x128] sm:$0xff] }
  0x7a   : > { %5901 = vmatmul.mubr.msk.f32.gmra.mrb[16].mxu0 %vm400_vm2, %v385_v55  ;;  %6191 = vmatpush3.bf16.msra.mxu1 %v6188_v44  ;;  %v6248_v55 = vpack.c.bf16 %v1971_v54, %v1970_v53  ;;  %v6251_v58 = vpack.c.bf16 %v1973_v57, %v1972_v56  ;;  %v2064_v61 = vld [vmem:[#allocation5 + $0x400] sm:$0xff]  ;;  %v2065_v62 = vld [vmem:[#allocation5 + $0x408] sm:$0xff]  ;;  %v1978_v4 = vld [vmem:[#allocation5 + $0x150] sm:$0xff]  ;;  %p7223_p2 = pnand %p7222_p12, %p9395_p1  ;;  %p7230_p8 = por %p7229_p7, %p7228_p4 }
  0x7b   : > { %5903 = vmatprep.mubr.msk.f32.mxu0 %vm400_vm2, %v386_v59  ;;  %6222 = vmatpush1.bf16.msra.mxu0 %v6221_v12  ;;  %v1974_v59 = vld [vmem:[#allocation5 + $0x130] sm:$0xff]  ;;  %v1976_v0 = vld [vmem:[#allocation5 + $0x140] sm:$0xff]  ;;  %v1981_v9 = vld [vmem:[#allocation5 + $0x168] sm:$0xff] }
  0x7c   : > { %6223 = vmatprep.subr.bf16.mxu0 %v9149_v8  ;;  %6193 = vmatprep.subr.bf16.mxu1 %v6192_v48  ;;  %v1983_v12 = vld [vmem:[#allocation5 + $0x178] sm:$0xff]  ;;  %v1984_v14 = vld [vmem:[#allocation5 + $0x180] sm:$0xff]  ;;  %v1985_v15 = vld [vmem:[#allocation5 + $0x188] sm:$0xff]  ;;  %p7224_p3 = pneg %p7223_p2 }
  0x7d   : > { %v1988_v20 = vld [vmem:[#allocation5 + $0x1a0] sm:$0xff]  ;;  %v1991_v24 = vld [vmem:[#allocation5 + $0x1b8] sm:$0xff]  ;;  %v1994_v29 = vld [vmem:[#allocation5 + $0x1d0] sm:$0xff] }
  0x7e   : > { %5904 = vmatmul.mubr.msk.f32.gmra.mrb[18].mxu0 %vm400_vm2, %v387_v63  ;;  %6195 = vmatpush3.bf16.msra.mxu1 %v6192_v48  ;;  %v7661_v63 = vpack.c.bf16 %v2065_v62, %v2064_v61  ;;  %v1995_v30 = vld [vmem:[#allocation5 + $0x1d8] sm:$0xff]  ;;  %v1997_v33 = vld [vmem:[#allocation5 + $0x1e8] sm:$0xff]  ;;  %v2068_v43 = vld [vmem:[#allocation5 + $0x420] sm:$0xff]  ;;  %p7231_p11 = pnand %p7230_p8, %p7224_p3 }
  0x7f   : > { %5906 = vmatprep.mubr.msk.f32.mxu0 %vm400_vm2, %v388_v2  ;;  %6225 = vmatpush1.bf16.msra.mxu0 %v6224_v17  ;;  %v1977_v2 = vld [vmem:[#allocation5 + $0x148] sm:$0xff]  ;;  %v1986_v17 = vld [vmem:[#allocation5 + $0x190] sm:$0xff]  ;;  %v1999_v36 = vld [vmem:[#allocation5 + $0x1f8] sm:$0xff] }
  0x80   : > { %6226 = vmatprep.subr.bf16.mxu0 %v9149_v8  ;;  %v6257_v3 = vpack.c.bf16 %v1977_v2, %v1976_v0  ;;  %6389 = vmatprep.subr.bf16.mxu1 %v7661_v63  ;;  %v2067_v39 = vld [vmem:[#allocation5 + $0x418] sm:$0xff]  ;;  %v2069_v44 = vld [vmem:[#allocation5 + $0x428] sm:$0xff]  ;;  %v2070_v48 = vld [vmem:[#allocation5 + $0x430] sm:$0xff] }
  0x81   : > { %v6396_v47 = vpack.c.bf16 %v2069_v44, %v2068_v43  ;;  %v2072_v54 = vld [vmem:[#allocation5 + $0x440] sm:$0xff] }
  0x82   : > { %5907 = vmatmul.mubr.msk.f32.gmra.mrb[20].mxu0 %vm400_vm2, %v389_v5  ;;  %v1979_v5 = vld [vmem:[#allocation5 + $0x158] sm:$0xff]  ;;  %v2076_v2 = vld [vmem:[#allocation5 + $0x460] sm:$0xff] }
  0x83   : > { %5909 = vmatprep.mubr.msk.f32.mxu0 %vm400_vm2, %v390_v7  ;;  %6228 = vmatpush1.bf16.msra.mxu0 %v6227_v22  ;;  %v6260_v6 = vpack.c.bf16 %v1979_v5, %v1978_v4  ;;  %v1980_v7 = vld [vmem:[#allocation5 + $0x160] sm:$0xff] }
  0x84   : > { %6229 = vmatprep.subr.bf16.mxu0 %v9149_v8  ;;  %v6263_v10 = vpack.c.bf16 %v1981_v9, %v1980_v7  ;;  %v2078_v9 = vld [vmem:[#allocation5 + $0x470] sm:$0xff] }
  0x86   : > { %5910 = vmatmul.mubr.msk.f32.gmra.mrb[22].mxu0 %vm400_vm2, %v391_v11  ;;  %v1982_v11 = vld [vmem:[#allocation5 + $0x170] sm:$0xff] }
  0x87   : > { %5912 = vmatprep.mubr.msk.f32.mxu0 %vm400_vm2, %v392_v13  ;;  %6231 = vmatpush1.bf16.msra.mxu0 %v6230_v27  ;;  %v6266_v13 = vpack.c.bf16 %v1983_v12, %v1982_v11  ;;  %v1993_v27 = vld [vmem:[#allocation5 + $0x1c8] sm:$0xff] }
  0x88   : > { %6232 = vmatprep.subr.bf16.mxu0 %v9149_v8 }
  0x8a   : > { %5913 = vmatmul.mubr.msk.f32.gmra.mrb[24].mxu0 %vm400_vm2, %v393_v16  ;;  %v6269_v16 = vpack.c.bf16 %v1985_v15, %v1984_v14 }
  0x8b   : > { %5915 = vmatprep.mubr.msk.f32.mxu0 %vm400_vm2, %v394_v18  ;;  %6234 = vmatpush1.bf16.msra.mxu0 %v6233_v32  ;;  %v1987_v18 = vld [vmem:[#allocation5 + $0x198] sm:$0xff]  ;;  %v1996_v32 = vld [vmem:[#allocation5 + $0x1e0] sm:$0xff] }
  0x8c   : > { %6235 = vmatprep.subr.bf16.mxu0 %v9149_v8  ;;  %v6272_v19 = vpack.c.bf16 %v1987_v18, %v1986_v17  ;;  %v6287_v34 = vpack.c.bf16 %v1997_v33, %v1996_v32 }
  0x8e   : > { %5916 = vmatmul.mubr.msk.f32.gmra.mrb[26].mxu0 %vm400_vm2, %v395_v21  ;;  %v1989_v21 = vld [vmem:[#allocation5 + $0x1a8] sm:$0xff] }
  0x8f   : > { %5918 = vmatprep.mubr.msk.f32.mxu0 %vm400_vm2, %v396_v23  ;;  %6237 = vmatpush1.bf16.msra.mxu0 %v6236_v35  ;;  %v6275_v22 = vpack.c.bf16 %v1989_v21, %v1988_v20  ;;  %v1990_v23 = vld [vmem:[#allocation5 + $0x1b0] sm:$0xff] }
  0x90   : > { %6238 = vmatprep.subr.bf16.mxu0 %v9149_v8  ;;  %v6278_v25 = vpack.c.bf16 %v1991_v24, %v1990_v23  ;;  %v1998_v35 = vld [vmem:[#allocation5 + $0x1f0] sm:$0xff] }
  0x91   : > { %v6290_v37 = vpack.c.bf16 %v1999_v36, %v1998_v35 }
  0x92   : > { %5919 = vmatmul.mubr.msk.f32.gmra.mrb[28].mxu0 %vm400_vm2, %v397_v26  ;;  %v1992_v26 = vld [vmem:[#allocation5 + $0x1c0] sm:$0xff] }
  0x93   : > { %5921 = vmatprep.mubr.msk.f32.mxu0 %vm400_vm2, %v398_v28  ;;  %6240 = vmatpush1.bf16.msra.mxu0 %v6239_v38  ;;  %v6281_v28 = vpack.c.bf16 %v1993_v27, %v1992_v26  ;;  %v2066_v38 = vld [vmem:[#allocation5 + $0x410] sm:$0xff] }
  0x94   : > { %6241 = vmatprep.subr.bf16.mxu0 %v9149_v8  ;;  %v6392_v42 = vpack.c.bf16 %v2067_v39, %v2066_v38 }
  0x96   : > { %5922 = vmatmul.mubr.msk.f32.gmra.mrb[30].mxu0 %vm400_vm2, %v399_v31  ;;  %v6284_v31 = vpack.c.bf16 %v1995_v30, %v1994_v29 }
  0x97   : > { %6243 = vmatpush1.bf16.msra.mxu0 %v6242_v41  ;;  %2151 = vmatprep.mubr.f32.mxu0 %v823_v45 }
  0x98   : > { %6244 = vmatprep.subr.bf16.mxu0 %v9149_v8 }
  0x9a   : > { %2152 = vmatmul.mubr.f32.vlgmr.msra.gmra.mrb[32].mxu0 %v7297_v1 }
  0x9b   : > { %2156 = vmatprep.mubr.f32.mxu0 %v824_v49  ;;  %6246 = vmatpush1.bf16.msra.mxu0 %v6245_v52  ;;  %v2071_v49 = vld [vmem:[#allocation5 + $0x438] sm:$0xff] }
  0x9c   : > { %6247 = vmatprep.subr.bf16.mxu0 %v9149_v8  ;;  %v6400_v53 = vpack.c.bf16 %v2071_v49, %v2070_v48 }
  0x9e   : > { %2157 = vmatmul.mubr.f32.gmra.mrb[34].mxu0 %v7297_v1  ;;  %v1975_v1 = vld [vmem:[#allocation5 + $0x138] sm:$0xff] }
  0x9f   : > { %6249 = vmatpush1.bf16.msra.mxu0 %v6248_v55  ;;  %v6254_v60 = vpack.c.bf16 %v1975_v1, %v1974_v59  ;;  %v2073_v55 = vld [vmem:[#allocation5 + $0x448] sm:$0xff]  ;;  %v2074_v1 = vld [vmem:[#allocation5 + $0x450] sm:$0xff] }
  0xa0   : > { %6250 = vmatprep.subr.bf16.mxu0 %v9149_v8  ;;  %v6404_v59 = vpack.c.bf16 %v2073_v55, %v2072_v54 }
  0xa3   : > { %6252 = vmatpush1.bf16.msra.mxu0 %v6251_v58 }
  0xa4   : > { %6253 = vmatprep.subr.bf16.mxu0 %v9149_v8 }
  0xa7   : > { %6255 = vmatpush1.bf16.msra.mxu0 %v6254_v60  ;;  %v2075_v60 = vld [vmem:[#allocation5 + $0x458] sm:$0xff] }
  0xa8   : > { %6256 = vmatprep.subr.bf16.mxu0 %v9149_v8  ;;  %v6408_v0 = vpack.c.bf16 %v2075_v60, %v2074_v1 }
  0xab   : > { %6258 = vmatpush1.bf16.msra.mxu0 %v6257_v3  ;;  %v2077_v3 = vld [vmem:[#allocation5 + $0x468] sm:$0xff] }
  0xac   : > { %6259 = vmatprep.subr.bf16.mxu0 %v9149_v8  ;;  %v6412_v7 = vpack.c.bf16 %v2077_v3, %v2076_v2 }
  0xaf   : > { %6261 = vmatpush1.bf16.msra.mxu0 %v6260_v6 }
  0xb0   : > { %6262 = vmatprep.subr.bf16.mxu0 %v9149_v8 }
  0xb3   : > { %6264 = vmatpush1.bf16.msra.mxu0 %v6263_v10  ;;  %v2079_v10 = vld [vmem:[#allocation5 + $0x478] sm:$0xff] }
  0xb4   : > { %6265 = vmatprep.subr.bf16.mxu0 %v9149_v8  ;;  %v6416_v14 = vpack.c.bf16 %v2079_v10, %v2078_v9 }
  0xb7   : > { %6267 = vmatpush1.bf16.msra.mxu0 %v6266_v13 }
  0xb8   : > { %6268 = vmatprep.subr.bf16.mxu0 %v9149_v8 }
  0xbb   : > { %6270 = vmatpush1.bf16.msra.mxu0 %v6269_v16 }
  0xbc   : > { %6271 = vmatprep.subr.bf16.mxu0 %v9149_v8 }
  0xbf   : > { %6273 = vmatpush1.bf16.msra.mxu0 %v6272_v19 }
  0xc0   : > { %6274 = vmatprep.subr.bf16.mxu0 %v9149_v8 }
  0xc3   : > { %6276 = vmatpush1.bf16.msra.mxu0 %v6275_v22 }
  0xc4   : > { %6277 = vmatprep.subr.bf16.mxu0 %v9149_v8 }
  0xc7   : > { %6279 = vmatpush1.bf16.msra.mxu0 %v6278_v25 }
  0xc8   : > { %6280 = vmatprep.subr.bf16.mxu0 %v9149_v8 }
  0xcb   : > { %6282 = vmatpush1.bf16.msra.mxu0 %v6281_v28 }
  0xcc   : > { %6283 = vmatprep.subr.bf16.mxu0 %v9149_v8 }
  0xcf   : > { %6285 = vmatpush1.bf16.msra.mxu0 %v6284_v31 }
  0xd0   : > { %6286 = vmatprep.subr.bf16.mxu0 %v9149_v8 }
  0xd3   : > { %6288 = vmatpush1.bf16.msra.mxu0 %v6287_v34 }
  0xd4   : > { %6289 = vmatprep.subr.bf16.mxu0 %v9149_v8 }
  0xd7   : > { %6291 = vmatpush1.bf16.msra.mxu0 %v6290_v37 }
  0xd8   : > { %6292 = vmatprep.subr.bf16.mxu0 %v9149_v8 }
 0x12d   : > { %v7676_v40 = vpop.f32.mrb[0].mxu0 }
 0x12e   : > { %9222 = vst [vmem:[#allocation15_spill] sm:$0xff] %v7676_v40  ;;  %728 = vst [vmem:[#allocation2 + $0x21] sm:$0xff] %v7676_v40  ;;  %v7679_v41 = vpop.f32.mrb[1].mxu0 }
 0x12f   : > { %9223 = vst [vmem:[#allocation16_spill] sm:$0xff] %v7679_v41  ;;  %727 = vst [vmem:[#allocation2 + $0x19] sm:$0xff] %v7679_v41  ;;  %5956 = vmatprep.mubr.f32.mxu1 %v7679_v41  ;;  %2161 = vmatprep.mubr.f32.mxu0 %v7679_v41 }
 0x130   : > { %5957 = vmatmul.mubr.f32.vlgmr.msra.gmra.mrb[0].mxu1 %v7676_v40 }
 0x131   : > { %v7685_v45 = vpop.f32.mrb[2].mxu0  ;;  %6391 = vmatpush3.bf16.msra.mxu1 %v7661_v63 }
 0x132   : > { %9224 = vst [vmem:[#allocation17_spill] sm:$0xff] %v7685_v45  ;;  %730 = vst [vmem:[#allocation2 + $0x39] sm:$0xff] %v7685_v45  ;;  %v7689_v46 = vpop.f32.mrb[3].mxu0  ;;  %6393 = vmatprep.subr.bf16.mxu1 %v6392_v42 }
 0x133   : > { %9225 = vst [vmem:[#allocation18_spill] sm:$0xff] %v7689_v46  ;;  %729 = vst [vmem:[#allocation2 + $0x31] sm:$0xff] %v7689_v46  ;;  %5959 = vmatprep.mubr.f32.mxu1 %v7689_v46 }
 0x134   : > { %5960 = vmatmul.mubr.f32.gmra.mrb[2].mxu1 %v7685_v45 }
 0x135   : > { %v7694_v50 = vpop.f32.mrb[4].mxu0  ;;  %6395 = vmatpush3.bf16.msra.mxu1 %v6392_v42 }
 0x136   : > { %9226 = vst [vmem:[#allocation19_spill] sm:$0xff] %v7694_v50  ;;  %732 = vst [vmem:[#allocation2 + $0x51] sm:$0xff] %v7694_v50  ;;  %v7697_v51 = vpop.f32.mrb[5].mxu0  ;;  %v7699_v52 = vld [vmem:[#allocation2 + $0x18] sm:$0xff]  ;;  %6397 = vmatprep.subr.bf16.mxu1 %v6396_v47  ;;  %v7711_v58 = vld [vmem:[#allocation2 + $0x20] sm:$0xff] }
 0x137   : > { %9227 = vst [vmem:[#allocation20_spill] sm:$0xff] %v7697_v51  ;;  %731 = vst [vmem:[#allocation2 + $0x49] sm:$0xff] %v7697_v51  ;;  %2162 = vmatmul.mubr.f32.gmra.mrb[36].mxu0 %v7699_v52  ;;  %5962 = vmatprep.mubr.f32.mxu1 %v7697_v51 }
 0x138   : > { %2166 = vmatprep.mubr.f32.mxu0 %v7676_v40  ;;  %5963 = vmatmul.mubr.f32.gmra.mrb[4].mxu1 %v7694_v50  ;;  %v2001_v40 = vld [vmem:[#allocation5 + $0x208] sm:$0xff] }
 0x139   : > { %v7706_v56 = vpop.f32.mrb[6].mxu0  ;;  %6399 = vmatpush3.bf16.msra.mxu1 %v6396_v47  ;;  %v7869_v48 = vld [vmem:[#allocation2 + $0x3a] sm:$0xff] }
 0x13a   : > { %9228 = vst [vmem:[#allocation21_spill] sm:$0xff] %v7706_v56  ;;  %734 = vst [vmem:[#allocation2 + $0x69] sm:$0xff] %v7706_v56  ;;  %v7709_v57 = vpop.f32.mrb[7].mxu0  ;;  %6401 = vmatprep.subr.bf16.mxu1 %v6400_v53  ;;  %v7717_v61 = vld [vmem:[#allocation2 + $0x30] sm:$0xff]  ;;  %v7735_v6 = vld [vmem:[#allocation2 + $0x38] sm:$0xff] }
 0x13b   : > { %9229 = vst [vmem:[#allocation22_spill] sm:$0xff] %v7709_v57  ;;  %733 = vst [vmem:[#allocation2 + $0x61] sm:$0xff] %v7709_v57  ;;  %2167 = vmatmul.mubr.f32.gmra.mrb[38].mxu0 %v7711_v58  ;;  %5965 = vmatprep.mubr.f32.mxu1 %v7709_v57  ;;  %v7865_v47 = vld [vmem:[#allocation2 + $0x32] sm:$0xff] }
 0x13c   : > { %2171 = vmatprep.mubr.f32.mxu0 %v7689_v46  ;;  %5966 = vmatmul.mubr.f32.gmra.mrb[6].mxu1 %v7706_v56  ;;  %v2000_v46 = vld [vmem:[#allocation5 + $0x200] sm:$0xff] }
 0x13d   : > { %v7720_v62 = vpop.f32.mrb[8].mxu0  ;;  %6403 = vmatpush3.bf16.msra.mxu1 %v6400_v53  ;;  %v7879_v54 = vld [vmem:[#allocation2 + $0x52] sm:$0xff] }
 0x13e   : > { %9230 = vst [vmem:[#allocation23_spill] sm:$0xff] %v7720_v62  ;;  %736 = vst [vmem:[#allocation2 + $0x81] sm:$0xff] %v7720_v62  ;;  %v7723_v63 = vpop.f32.mrb[9].mxu0  ;;  %6405 = vmatprep.subr.bf16.mxu1 %v6404_v59  ;;  %v7741_v11 = vld [vmem:[#allocation2 + $0x48] sm:$0xff]  ;;  %v7759_v17 = vld [vmem:[#allocation2 + $0x50] sm:$0xff] }
 0x13f   : > { %9231 = vst [vmem:[#allocation24_spill] sm:$0xff] %v7723_v63  ;;  %735 = vst [vmem:[#allocation2 + $0x79] sm:$0xff] %v7723_v63  ;;  %2172 = vmatmul.mubr.f32.gmra.mrb[40].mxu0 %v7717_v61  ;;  %5968 = vmatprep.mubr.f32.mxu1 %v7723_v63  ;;  %v7873_v49 = vld [vmem:[#allocation2 + $0x4a] sm:$0xff] }
 0x140   : > { %2176 = vmatprep.mubr.f32.mxu0 %v7685_v45  ;;  %5969 = vmatmul.mubr.f32.gmra.mrb[8].mxu1 %v7720_v62 }
 0x141   : > { %v7730_v4 = vpop.f32.mrb[10].mxu0  ;;  %6407 = vmatpush3.bf16.msra.mxu1 %v6404_v59  ;;  %v7889_v1 = vld [vmem:[#allocation2 + $0x6a] sm:$0xff] }
 0x142   : > { %9232 = vst [vmem:[#allocation25_spill] sm:$0xff] %v7730_v4  ;;  %738 = vst [vmem:[#allocation2 + $0x99] sm:$0xff] %v7730_v4  ;;  %v7733_v5 = vpop.f32.mrb[11].mxu0  ;;  %6409 = vmatprep.subr.bf16.mxu1 %v6408_v0  ;;  %v7765_v18 = vld [vmem:[#allocation2 + $0x60] sm:$0xff]  ;;  %v7784_v23 = vld [vmem:[#allocation2 + $0x68] sm:$0xff] }
 0x143   : > { %9233 = vst [vmem:[#allocation26_spill] sm:$0xff] %v7733_v5  ;;  %737 = vst [vmem:[#allocation2 + $0x91] sm:$0xff] %v7733_v5  ;;  %2177 = vmatmul.mubr.f32.gmra.mrb[42].mxu0 %v7735_v6  ;;  %5971 = vmatprep.mubr.f32.mxu1 %v7733_v5  ;;  %v7885_v59 = vld [vmem:[#allocation2 + $0x62] sm:$0xff] }
 0x144   : > { %2181 = vmatprep.mubr.f32.mxu0 %v7697_v51  ;;  %5972 = vmatmul.mubr.f32.gmra.mrb[10].mxu1 %v7730_v4 }
 0x145   : > { %v7744_v12 = vpop.f32.mrb[12].mxu0  ;;  %6411 = vmatpush3.bf16.msra.mxu1 %v6408_v0  ;;  %v7899_v2 = vld [vmem:[#allocation2 + $0x82] sm:$0xff] }
 0x146   : > { %740 = vst [vmem:[#allocation2 + $0xb1] sm:$0xff] %v7744_v12  ;;  %v7747_v13 = vpop.f32.mrb[13].mxu0  ;;  %6413 = vmatprep.subr.bf16.mxu1 %v6412_v7  ;;  %v7790_v24 = vld [vmem:[#allocation2 + $0x78] sm:$0xff]  ;;  %v7808_v29 = vld [vmem:[#allocation2 + $0x80] sm:$0xff] }
 0x147   : > { %9234 = vst [vmem:[#allocation27_spill] sm:$0xff] %v7747_v13  ;;  %739 = vst [vmem:[#allocation2 + $0xa9] sm:$0xff] %v7747_v13  ;;  %2182 = vmatmul.mubr.f32.gmra.mrb[44].mxu0 %v7741_v11  ;;  %5974 = vmatprep.mubr.f32.mxu1 %v7747_v13  ;;  %v7893_v60 = vld [vmem:[#allocation2 + $0x7a] sm:$0xff] }
 0x148   : > { %2186 = vmatprep.mubr.f32.mxu0 %v7694_v50  ;;  %5975 = vmatmul.mubr.f32.gmra.mrb[12].mxu1 %v7744_v12 }
 0x149   : > { %v7754_v15 = vpop.f32.mrb[14].mxu0  ;;  %6415 = vmatpush3.bf16.msra.mxu1 %v6412_v7  ;;  %v7909_v9 = vld [vmem:[#allocation2 + $0x9a] sm:$0xff] }
 0x14a   : > { %742 = vst [vmem:[#allocation2 + $0xc9] sm:$0xff] %v7754_v15  ;;  %v7757_v16 = vpop.f32.mrb[15].mxu0  ;;  %6417 = vmatprep.subr.bf16.mxu1 %v6416_v14  ;;  %v7814_v30 = vld [vmem:[#allocation2 + $0x90] sm:$0xff]  ;;  %v7832_v35 = vld [vmem:[#allocation2 + $0x98] sm:$0xff] }
 0x14b   : > { %9235 = vst [vmem:[#allocation28_spill] sm:$0xff] %v7757_v16  ;;  %741 = vst [vmem:[#allocation2 + $0xc1] sm:$0xff] %v7757_v16  ;;  %2187 = vmatmul.mubr.f32.gmra.mrb[46].mxu0 %v7759_v17  ;;  %5977 = vmatprep.mubr.f32.mxu1 %v7757_v16  ;;  %v7905_v7 = vld [vmem:[#allocation2 + $0x92] sm:$0xff] }
 0x14c   : > { %2191 = vmatprep.mubr.f32.mxu0 %v7709_v57  ;;  %5978 = vmatmul.mubr.f32.gmra.mrb[14].mxu1 %v7754_v15 }
 0x14d   : > { %v7768_v19 = vpop.f32.mrb[16].mxu0  ;;  %6419 = vmatpush3.bf16.msra.mxu1 %v6416_v14  ;;  %v7919_v14 = vld [vmem:[#allocation2 + $0xb2] sm:$0xff] }
 0x14e   : > { %744 = vst [vmem:[#allocation2 + $0xe1] sm:$0xff] %v7768_v19  ;;  %v7771_v20 = vpop.f32.mrb[17].mxu0  ;;  %6420 = vmatprep.subr.bf16.mxu1 %v9149_v8  ;;  %v7838_v36 = vld [vmem:[#allocation2 + $0xa8] sm:$0xff]  ;;  %v7856_v43 = vld [vmem:[#allocation2 + $0xb0] sm:$0xff] }
 0x14f   : > { %9236 = vst [vmem:[#allocation29_spill] sm:$0xff] %v7771_v20  ;;  %743 = vst [vmem:[#allocation2 + $0xd9] sm:$0xff] %v7771_v20  ;;  %2192 = vmatmul.mubr.f32.gmra.mrb[48].mxu0 %v7765_v18  ;;  %5980 = vmatprep.mubr.f32.mxu1 %v7771_v20  ;;  %v7913_v10 = vld [vmem:[#allocation2 + $0xaa] sm:$0xff] }
 0x150   : > { %2196 = vmatprep.mubr.f32.mxu0 %v7706_v56  ;;  %5981 = vmatmul.mubr.f32.gmra.mrb[16].mxu1 %v7768_v19 }
 0x151   : > { %v7779_v21 = vpop.f32.mrb[18].mxu0 }
 0x152   : > { %746 = vst [vmem:[#allocation2 + $0xf9] sm:$0xff] %v7779_v21  ;;  %v7782_v22 = vpop.f32.mrb[19].mxu0  ;;  %v7862_v44 = vld [vmem:[#allocation2 + $0xc0] sm:$0xff]  ;;  %v7876_v53 = vld [vmem:[#allocation2 + $0xc8] sm:$0xff] }
 0x153   : > { %9237 = vst [vmem:[#allocation30_spill] sm:$0xff] %v7782_v22  ;;  %745 = vst [vmem:[#allocation2 + $0xf1] sm:$0xff] %v7782_v22  ;;  %2197 = vmatmul.mubr.f32.gmra.mrb[50].mxu0 %v7784_v23  ;;  %5983 = vmatprep.mubr.f32.mxu1 %v7782_v22 }
 0x154   : > { %2201 = vmatprep.mubr.f32.mxu0 %v7723_v63  ;;  %5984 = vmatmul.mubr.f32.gmra.mrb[18].mxu1 %v7779_v21 }
 0x155   : > { %v7793_v25 = vpop.f32.mrb[20].mxu0 }
 0x156   : > { %9238 = vst [vmem:[#allocation31_spill] sm:$0xff] %v7793_v25  ;;  %748 = vst [vmem:[#allocation2 + $0x111] sm:$0xff] %v7793_v25  ;;  %v7796_v26 = vpop.f32.mrb[21].mxu0  ;;  %v7882_v55 = vld [vmem:[#allocation2 + $0xd8] sm:$0xff]  ;;  %v7896_v0 = vld [vmem:[#allocation2 + $0xe0] sm:$0xff] }
 0x157   : > { %9239 = vst [vmem:[#allocation32_spill] sm:$0xff] %v7796_v26  ;;  %747 = vst [vmem:[#allocation2 + $0x109] sm:$0xff] %v7796_v26  ;;  %2202 = vmatmul.mubr.f32.gmra.mrb[52].mxu0 %v7790_v24  ;;  %5986 = vmatprep.mubr.f32.mxu1 %v7796_v26  ;;  %v7933_v8 = vld [vmem:[#allocation2 + $0xda] sm:$0xff] }
 0x158   : > { %2206 = vmatprep.mubr.f32.mxu0 %v7720_v62  ;;  %5987 = vmatmul.mubr.f32.gmra.mrb[20].mxu1 %v7793_v25 }
 0x159   : > { %v7803_v27 = vpop.f32.mrb[22].mxu0 }
 0x15a   : > { %9240 = vst [vmem:[#allocation33_spill] sm:$0xff] %v7803_v27  ;;  %750 = vst [vmem:[#allocation2 + $0x129] sm:$0xff] %v7803_v27  ;;  %v7806_v28 = vpop.f32.mrb[23].mxu0  ;;  %v7902_v3 = vld [vmem:[#allocation2 + $0xf0] sm:$0xff] }
 0x15b   : > { %9241 = vst [vmem:[#allocation34_spill] sm:$0xff] %v7806_v28  ;;  %749 = vst [vmem:[#allocation2 + $0x121] sm:$0xff] %v7806_v28  ;;  %2207 = vmatmul.mubr.f32.gmra.mrb[54].mxu0 %v7808_v29  ;;  %5989 = vmatprep.mubr.f32.mxu1 %v7806_v28 }
 0x15c   : > { %2211 = vmatprep.mubr.f32.mxu0 %v7733_v5  ;;  %5990 = vmatmul.mubr.f32.gmra.mrb[22].mxu1 %v7803_v27 }
 0x15d   : > { %v7817_v31 = vpop.f32.mrb[24].mxu0 }
 0x15e   : > { %9242 = vst [vmem:[#allocation35_spill] sm:$0xff] %v7817_v31  ;;  %752 = vst [vmem:[#allocation2 + $0x141] sm:$0xff] %v7817_v31  ;;  %v7820_v32 = vpop.f32.mrb[25].mxu0 }
 0x15f   : > { %9243 = vst [vmem:[#allocation36_spill] sm:$0xff] %v7820_v32  ;;  %751 = vst [vmem:[#allocation2 + $0x139] sm:$0xff] %v7820_v32  ;;  %2212 = vmatmul.mubr.f32.gmra.mrb[56].mxu0 %v7814_v30  ;;  %5992 = vmatprep.mubr.f32.mxu1 %v7820_v32 }
 0x160   : > { %2216 = vmatprep.mubr.f32.mxu0 %v7730_v4  ;;  %5993 = vmatmul.mubr.f32.gmra.mrb[24].mxu1 %v7817_v31 }
 0x161   : > { %v7827_v33 = vpop.f32.mrb[26].mxu0 }
 0x162   : > { %9244 = vst [vmem:[#allocation37_spill] sm:$0xff] %v7827_v33  ;;  %754 = vst [vmem:[#allocation2 + $0x159] sm:$0xff] %v7827_v33  ;;  %v7830_v34 = vpop.f32.mrb[27].mxu0  ;;  %v7965_v4 = vld [vmem:[#allocation2 + $0x122] sm:$0xff] }
 0x163   : > { %9245 = vst [vmem:[#allocation38_spill] sm:$0xff] %v7830_v34  ;;  %753 = vst [vmem:[#allocation2 + $0x151] sm:$0xff] %v7830_v34  ;;  %2217 = vmatmul.mubr.f32.gmra.mrb[58].mxu0 %v7832_v35  ;;  %5995 = vmatprep.mubr.f32.mxu1 %v7830_v34 }
 0x164   : > { %2221 = vmatprep.mubr.f32.mxu0 %v7747_v13  ;;  %5996 = vmatmul.mubr.f32.gmra.mrb[26].mxu1 %v7827_v33 }
 0x165   : > { %v7841_v37 = vpop.f32.mrb[28].mxu0  ;;  %v7981_v63 = vld [vmem:[#allocation2 + $0x142] sm:$0xff] }
 0x166   : > { %9246 = vst [vmem:[#allocation39_spill] sm:$0xff] %v7841_v37  ;;  %756 = vst [vmem:[#allocation2 + $0x171] sm:$0xff] %v7841_v37  ;;  %v7844_v38 = vpop.f32.mrb[29].mxu0  ;;  %v7962_v13 = vld [vmem:[#allocation2 + $0x138] sm:$0xff] }
 0x167   : > { %9247 = vst [vmem:[#allocation40_spill] sm:$0xff] %v7844_v38  ;;  %755 = vst [vmem:[#allocation2 + $0x169] sm:$0xff] %v7844_v38  ;;  %2222 = vmatmul.mubr.f32.gmra.mrb[60].mxu0 %v7838_v36  ;;  %5998 = vmatprep.mubr.f32.mxu1 %v7844_v38  ;;  %v7973_v5 = vld [vmem:[#allocation2 + $0x13a] sm:$0xff] }
 0x168   : > { %2226 = vmatprep.mubr.f32.mxu0 %v7744_v12  ;;  %5999 = vmatmul.mubr.f32.gmra.mrb[28].mxu1 %v7841_v37  ;;  %v7916_v12 = vld [vmem:[#allocation2 + $0xf8] sm:$0xff] }
 0x169   : > { %v7851_v39 = vpop.f32.mrb[30].mxu0  ;;  %v7991_v57 = vld [vmem:[#allocation2 + $0x15a] sm:$0xff] }
 0x16a   : > { %9248 = vst [vmem:[#allocation41_spill] sm:$0xff] %v7851_v39  ;;  %758 = vst [vmem:[#allocation2 + $0x189] sm:$0xff] %v7851_v39  ;;  %v7854_v42 = vpop.f32.mrb[31].mxu0  ;;  %v7978_v62 = vld [vmem:[#allocation2 + $0x152] sm:$0xff] }
 0x16b   : > { %9249 = vst [vmem:[#allocation42_spill] sm:$0xff] %v7854_v42  ;;  %757 = vst [vmem:[#allocation2 + $0x181] sm:$0xff] %v7854_v42  ;;  %2227 = vmatmul.mubr.f32.gmra.mrb[62].mxu0 %v7856_v43  ;;  %6001 = vmatprep.mubr.f32.mxu1 %v7854_v42  ;;  %v7939_v42 = vld [vmem:[#allocation2 + $0xe2] sm:$0xff]  ;;  %v7984_v56 = vld [vmem:[#allocation2 + $0x150] sm:$0xff] }
 0x16c   : > { %2231 = vmatprep.mubr.f32.mxu0 %v7757_v16  ;;  %6002 = vmatmul.mubr.f32.gmra.mrb[30].mxu1 %v7851_v39  ;;  %v7936_v39 = vld [vmem:[#allocation2 + $0x110] sm:$0xff]  ;;  %9250 = vst [vmem:[#allocation43_spill] sm:$0xff] %v7978_v62  ;;  %9252 = vst [vmem:[#allocation45_spill] sm:$0xff] %v7991_v57 }
 0x16d   : > { %6036 = vmatprep.mubr.f32.mxu1 %v7865_v47  ;;  %v7959_v16 = vld [vmem:[#allocation2 + $0x112] sm:$0xff] }
 0x16e   : > { %v7996_v50 = vld [vmem:[#allocation2 + $0x172] sm:$0xff]  ;;  %v8004_v45 = vld [vmem:[#allocation2 + $0x168] sm:$0xff] }
 0x16f   : > { %2232 = vmatmul.mubr.f32.gmra.mrb[64].mxu0 %v7862_v44  ;;  %9253 = vst [vmem:[#allocation46_spill] sm:$0xff] %v7996_v50  ;;  %9255 = vst [vmem:[#allocation48_spill] sm:$0xff] %v8004_v45  ;;  %v8013_v41 = vld [vmem:[#allocation2 + $0x170] sm:$0xff] }
 0x170   : > { %2236 = vmatprep.mubr.f32.mxu0 %v7754_v15  ;;  %6037 = vmatmul.mubr.f32.vlgmr.msra.gmra.mrb[32].mxu1 %v7869_v48  ;;  %v7922_v15 = vld [vmem:[#allocation2 + $0x108] sm:$0xff]  ;;  %9257 = vst [vmem:[#allocation50_spill] sm:$0xff] %v8013_v41 }
 0x171   : > { %6039 = vmatprep.mubr.f32.mxu1 %v7873_v49 }
 0x172   : > { %v8000_v51 = vld [vmem:[#allocation2 + $0x182] sm:$0xff] }
 0x173   : > { %2237 = vmatmul.mubr.f32.gmra.mrb[66].mxu0 %v7876_v53  ;;  %9254 = vst [vmem:[#allocation47_spill] sm:$0xff] %v8000_v51 }
 0x174   : > { %2241 = vmatprep.mubr.f32.mxu0 %v7771_v20  ;;  %6040 = vmatmul.mubr.f32.gmra.mrb[34].mxu1 %v7879_v54  ;;  %v7953_v20 = vld [vmem:[#allocation2 + $0x10a] sm:$0xff] }
 0x175   : > { %6042 = vmatprep.mubr.f32.mxu1 %v7885_v59 }
 0x177   : > { %2242 = vmatmul.mubr.f32.gmra.mrb[68].mxu0 %v7882_v55 }
 0x178   : > { %2246 = vmatprep.mubr.f32.mxu0 %v7768_v19  ;;  %6043 = vmatmul.mubr.f32.gmra.mrb[36].mxu1 %v7889_v1  ;;  %v7925_v19 = vld [vmem:[#allocation2 + $0xc2] sm:$0xff] }
 0x179   : > { %6045 = vmatprep.mubr.f32.mxu1 %v7893_v60 }
 0x17b   : > { %2247 = vmatmul.mubr.f32.gmra.mrb[70].mxu0 %v7896_v0 }
 0x17c   : > { %2251 = vmatprep.mubr.f32.mxu0 %v7782_v22  ;;  %6046 = vmatmul.mubr.f32.gmra.mrb[38].mxu1 %v7899_v2  ;;  %v7945_v22 = vld [vmem:[#allocation2 + $0xf2] sm:$0xff] }
 0x17d   : > { %6048 = vmatprep.mubr.f32.mxu1 %v7905_v7 }
 0x17f   : > { %2252 = vmatmul.mubr.f32.gmra.mrb[72].mxu0 %v7902_v3 }
 0x180   : > { %2256 = vmatprep.mubr.f32.mxu0 %v7779_v21  ;;  %6049 = vmatmul.mubr.f32.gmra.mrb[40].mxu1 %v7909_v9  ;;  %v7929_v21 = vld [vmem:[#allocation2 + $0xca] sm:$0xff] }
 0x181   : > { %6051 = vmatprep.mubr.f32.mxu1 %v7913_v10 }
 0x183   : > { %2257 = vmatmul.mubr.f32.gmra.mrb[74].mxu0 %v7916_v12 }
 0x184   : > { %2261 = vmatprep.mubr.f32.mxu0 %v7796_v26  ;;  %6052 = vmatmul.mubr.f32.gmra.mrb[42].mxu1 %v7919_v14  ;;  %v7942_v26 = vld [vmem:[#allocation2 + $0x120] sm:$0xff] }
 0x185   : > { %6054 = vmatprep.mubr.f32.mxu1 %v7925_v19 }
 0x187   : > { %2262 = vmatmul.mubr.f32.gmra.mrb[76].mxu0 %v7922_v15 }
 0x188   : > { %2266 = vmatprep.mubr.f32.mxu0 %v7793_v25  ;;  %6055 = vmatmul.mubr.f32.gmra.mrb[44].mxu1 %v7929_v21  ;;  %v7949_v25 = vld [vmem:[#allocation2 + $0xfa] sm:$0xff] }
 0x189   : > { %6057 = vmatprep.mubr.f32.mxu1 %v7933_v8 }
 0x18b   : > { %2267 = vmatmul.mubr.f32.gmra.mrb[78].mxu0 %v7936_v39 }
 0x18c   : > { %2271 = vmatprep.mubr.f32.mxu0 %v7806_v28  ;;  %6058 = vmatmul.mubr.f32.gmra.mrb[46].mxu1 %v7939_v42  ;;  %v7956_v28 = vld [vmem:[#allocation2 + $0x128] sm:$0xff] }
 0x18d   : > { %6060 = vmatprep.mubr.f32.mxu1 %v7945_v22 }
 0x18f   : > { %2272 = vmatmul.mubr.f32.gmra.mrb[80].mxu0 %v7942_v26 }
 0x190   : > { %2276 = vmatprep.mubr.f32.mxu0 %v7803_v27  ;;  %6061 = vmatmul.mubr.f32.gmra.mrb[48].mxu1 %v7949_v25  ;;  %v7969_v27 = vld [vmem:[#allocation2 + $0x12a] sm:$0xff] }
 0x191   : > { %6063 = vmatprep.mubr.f32.mxu1 %v7953_v20 }
 0x193   : > { %2277 = vmatmul.mubr.f32.gmra.mrb[82].mxu0 %v7956_v28 }
 0x194   : > { %2281 = vmatprep.mubr.f32.mxu0 %v7820_v32  ;;  %6064 = vmatmul.mubr.f32.gmra.mrb[50].mxu1 %v7959_v16  ;;  %v7976_v32 = vld [vmem:[#allocation2 + $0x140] sm:$0xff] }
 0x195   : > { %6066 = vmatprep.mubr.f32.mxu1 %v7965_v4 }
 0x197   : > { %2282 = vmatmul.mubr.f32.gmra.mrb[84].mxu0 %v7962_v13 }
 0x198   : > { %2286 = vmatprep.mubr.f32.mxu0 %v7817_v31  ;;  %6067 = vmatmul.mubr.f32.gmra.mrb[52].mxu1 %v7969_v27  ;;  %v7988_v31 = vld [vmem:[#allocation2 + $0x16a] sm:$0xff] }
 0x199   : > { %6069 = vmatprep.mubr.f32.mxu1 %v7973_v5  ;;  %9251 = vst [vmem:[#allocation44_spill] sm:$0xff] %v7988_v31 }
 0x19b   : > { %2287 = vmatmul.mubr.f32.gmra.mrb[86].mxu0 %v7976_v32 }
 0x19c   : > { %2291 = vmatprep.mubr.f32.mxu0 %v7830_v34  ;;  %6070 = vmatmul.mubr.f32.gmra.mrb[54].mxu1 %v7981_v63  ;;  %v7998_v34 = vld [vmem:[#allocation2 + $0x158] sm:$0xff] }
 0x19d   : > { %6072 = vmatprep.mubr.f32.mxu1 %v7978_v62  ;;  %v9258_v62 = vmov 0.0|0.0  }
 0x19f   : > { %2292 = vmatmul.mubr.f32.gmra.mrb[88].mxu0 %v7984_v56 }
 0x1a0   : > { %2296 = vmatprep.mubr.f32.mxu0 %v7827_v33  ;;  %6073 = vmatmul.mubr.f32.gmra.mrb[56].mxu1 %v7991_v57  ;;  %v8008_v33 = vld [vmem:[#allocation2 + $0x18a] sm:$0xff] }
 0x1a1   : > { %6075 = vmatprep.mubr.f32.mxu1 %v7988_v31  ;;  %9256 = vst [vmem:[#allocation49_spill] sm:$0xff] %v8008_v33  ;;  %v2002_v31 = vld [vmem:[#allocation5 + $0x210] sm:$0xff]  ;;  %v888_v57 = vld [vmem:[#allocation2 + $0xa] sm:$0xff] }
 0x1a3   : > { %2297 = vmatmul.mubr.f32.gmra.mrb[90].mxu0 %v7998_v34 }
 0x1a4   : > { %2301 = vmatprep.mubr.f32.mxu0 %v7844_v38  ;;  %6076 = vmatmul.mubr.f32.gmra.mrb[58].mxu1 %v7996_v50  ;;  %v887_v38 = vld [vmem:[#allocation2 + $0x2] sm:$0xff]  ;;  %v6293_v50 = vpack.c.bf16 %v2001_v40, %v2000_v46 }
 0x1a5   : > { %6078 = vmatprep.mubr.f32.mxu1 %v8000_v51  ;;  %v2003_v51 = vld [vmem:[#allocation5 + $0x218] sm:$0xff]  ;;  %v2006_v40 = vld [vmem:[#allocation5 + $0x230] sm:$0xff] }
 0x1a6   : > { %v2007_v46 = vld [vmem:[#allocation5 + $0x238] sm:$0xff] }
 0x1a7   : > { %2302 = vmatmul.mubr.f32.gmra.mrb[92].mxu0 %v8004_v45  ;;  %v2005_v45 = vld [vmem:[#allocation5 + $0x228] sm:$0xff] }
 0x1a8   : > { %2306 = vmatprep.mubr.f32.mxu0 %v7841_v37  ;;  %6079 = vmatmul.mubr.f32.gmra.mrb[60].mxu1 %v8008_v33  ;;  %v6296_v37 = vpack.c.bf16 %v2003_v51, %v2002_v31  ;;  %v2004_v33 = vld [vmem:[#allocation5 + $0x220] sm:$0xff]  ;;  %v2011_v31 = vld [vmem:[#allocation5 + $0x258] sm:$0xff] }
 0x1a9   : > { %v2008_v51 = vld [vmem:[#allocation5 + $0x240] sm:$0xff] }
 0x1ab   : > { %2307 = vmatmul.mubr.f32.gmra.mrb[94].mxu0 %v8013_v41  ;;  %v6299_v41 = vpack.c.bf16 %v2005_v45, %v2004_v33  ;;  %v2013_v33 = vld [vmem:[#allocation5 + $0x268] sm:$0xff] }
 0x1ac   : > { %2376 = vmatprep.mubr.f32.mxu0 %v7699_v52  ;;  %v8021_v52 = vld [vmem:[#allocation2 + $0x1a] sm:$0xff] }
 0x1af   : > { %2377 = vmatmul.mubr.f32.vlgmr.msra.gmra.mrb[32].mxu0 %v887_v38  ;;  %v2015_v38 = vld [vmem:[#allocation5 + $0x278] sm:$0xff] }
 0x1b0   : > { %6294 = vmatpush1.bf16.msra.mxu0 %v6293_v50  ;;  %2381 = vmatprep.mubr.f32.mxu0 %v7711_v58  ;;  %v6302_v50 = vpack.c.bf16 %v2007_v46, %v2006_v40  ;;  %v8026_v58 = vld [vmem:[#allocation2 + $0x22] sm:$0xff]  ;;  %v2016_v40 = vld [vmem:[#allocation5 + $0x280] sm:$0xff]  ;;  %v2017_v46 = vld [vmem:[#allocation5 + $0x288] sm:$0xff] }
 0x1b1   : > { %6295 = vmatprep.subr.bf16.mxu0 %v9258_v62 }
 0x1b3   : > { %2382 = vmatmul.mubr.f32.gmra.mrb[34].mxu0 %v888_v57  ;;  %v2009_v57 = vld [vmem:[#allocation5 + $0x248] sm:$0xff] }
 0x1b4   : > { %2386 = vmatprep.mubr.f32.mxu0 %v7717_v61  ;;  %6297 = vmatpush1.bf16.msra.mxu0 %v6296_v37  ;;  %v6305_v45 = vpack.c.bf16 %v2009_v57, %v2008_v51  ;;  %v2010_v61 = vld [vmem:[#allocation5 + $0x250] sm:$0xff]  ;;  %v2019_v51 = vld [vmem:[#allocation5 + $0x298] sm:$0xff]  ;;  %v2020_v57 = vld [vmem:[#allocation5 + $0x2a0] sm:$0xff] }
 0x1b5   : > { %6298 = vmatprep.subr.bf16.mxu0 %v9258_v62  ;;  %v2014_v37 = vld [vmem:[#allocation5 + $0x270] sm:$0xff] }
 0x1b7   : > { %2387 = vmatmul.mubr.f32.gmra.mrb[36].mxu0 %v8021_v52 }
 0x1b8   : > { %2391 = vmatprep.mubr.f32.mxu0 %v7735_v6  ;;  %6300 = vmatpush1.bf16.msra.mxu0 %v6299_v41  ;;  %v6308_v41 = vpack.c.bf16 %v2011_v31, %v2010_v61  ;;  %v2012_v6 = vld [vmem:[#allocation5 + $0x260] sm:$0xff]  ;;  %v2022_v61 = vld [vmem:[#allocation5 + $0x2b0] sm:$0xff]  ;;  %v2023_v31 = vld [vmem:[#allocation5 + $0x2b8] sm:$0xff] }
 0x1b9   : > { %6301 = vmatprep.subr.bf16.mxu0 %v9258_v62 }
 0x1bb   : > { %2392 = vmatmul.mubr.f32.gmra.mrb[38].mxu0 %v8026_v58 }
 0x1bc   : > { %2396 = vmatprep.mubr.f32.mxu0 %v7741_v11  ;;  %6303 = vmatpush1.bf16.msra.mxu0 %v6302_v50  ;;  %v6311_v11 = vpack.c.bf16 %v2013_v33, %v2012_v6  ;;  %v2018_v50 = vld [vmem:[#allocation5 + $0x290] sm:$0xff]  ;;  %v2025_v6 = vld [vmem:[#allocation5 + $0x2c8] sm:$0xff] }
 0x1bd   : > { %6304 = vmatprep.subr.bf16.mxu0 %v9258_v62  ;;  %v2026_v33 = vld [vmem:[#allocation5 + $0x2d0] sm:$0xff] }
 0x1bf   : > { %2397 = vmatmul.mubr.f32.gmra.mrb[40].mxu0 %v7865_v47 }
 0x1c0   : > { %2401 = vmatprep.mubr.f32.mxu0 %v7759_v17  ;;  %6306 = vmatpush1.bf16.msra.mxu0 %v6305_v45  ;;  %v6314_v17 = vpack.c.bf16 %v2015_v38, %v2014_v37  ;;  %v2021_v45 = vld [vmem:[#allocation5 + $0x2a8] sm:$0xff]  ;;  %v2028_v37 = vld [vmem:[#allocation5 + $0x2e0] sm:$0xff] }
 0x1c1   : > { %6307 = vmatprep.subr.bf16.mxu0 %v9258_v62  ;;  %v2029_v38 = vld [vmem:[#allocation5 + $0x2e8] sm:$0xff] }
 0x1c3   : > { %2402 = vmatmul.mubr.f32.gmra.mrb[42].mxu0 %v7869_v48 }
 0x1c4   : > { %2406 = vmatprep.mubr.f32.mxu0 %v7765_v18  ;;  %6309 = vmatpush1.bf16.msra.mxu0 %v6308_v41  ;;  %v6317_v18 = vpack.c.bf16 %v2017_v46, %v2016_v40  ;;  %v2024_v41 = vld [vmem:[#allocation5 + $0x2c0] sm:$0xff]  ;;  %v2031_v40 = vld [vmem:[#allocation5 + $0x2f8] sm:$0xff] }
 0x1c5   : > { %6310 = vmatprep.subr.bf16.mxu0 %v9258_v62 }
 0x1c7   : > { %2407 = vmatmul.mubr.f32.gmra.mrb[44].mxu0 %v7873_v49 }
 0x1c8   : > { %2411 = vmatprep.mubr.f32.mxu0 %v7784_v23  ;;  %6312 = vmatpush1.bf16.msra.mxu0 %v6311_v11  ;;  %v6320_v23 = vpack.c.bf16 %v2019_v51, %v2018_v50  ;;  %v2027_v11 = vld [vmem:[#allocation5 + $0x2d8] sm:$0xff]  ;;  %v9274_v51 = vld [vmem:[#allocation43_spill] sm:$0xff] }
 0x1c9   : > { %6313 = vmatprep.subr.bf16.mxu0 %v9258_v62 }
 0x1cb   : > { %2412 = vmatmul.mubr.f32.gmra.mrb[46].mxu0 %v7879_v54 }
 0x1cc   : > { %2416 = vmatprep.mubr.f32.mxu0 %v7790_v24  ;;  %6315 = vmatpush1.bf16.msra.mxu0 %v6314_v17  ;;  %v6323_v24 = vpack.c.bf16 %v2021_v45, %v2020_v57  ;;  %v2030_v17 = vld [vmem:[#allocation5 + $0x2f0] sm:$0xff] }
 0x1cd   : > { %6316 = vmatprep.subr.bf16.mxu0 %v9258_v62  ;;  %v9278_v45 = vld [vmem:[#allocation45_spill] sm:$0xff] }
 0x1cf   : > { %2417 = vmatmul.mubr.f32.gmra.mrb[48].mxu0 %v7885_v59 }
 0x1d0   : > { %2421 = vmatprep.mubr.f32.mxu0 %v7808_v29  ;;  %6318 = vmatpush1.bf16.msra.mxu0 %v6317_v18  ;;  %v6326_v29 = vpack.c.bf16 %v2023_v31, %v2022_v61  ;;  %v9272_v18 = vld [vmem:[#allocation48_spill] sm:$0xff] }
 0x1d1   : > { %6319 = vmatprep.subr.bf16.mxu0 %v9258_v62 }
 0x1d3   : > { %2422 = vmatmul.mubr.f32.gmra.mrb[50].mxu0 %v7889_v1 }
 0x1d4   : > { %2426 = vmatprep.mubr.f32.mxu0 %v7814_v30  ;;  %6321 = vmatpush1.bf16.msra.mxu0 %v6320_v23  ;;  %v6329_v30 = vpack.c.bf16 %v2025_v6, %v2024_v41  ;;  %v9276_v23 = vld [vmem:[#allocation50_spill] sm:$0xff]  ;;  %v9281_v6 = vld [vmem:[#allocation44_spill] sm:$0xff] }
 0x1d5   : > { %6322 = vmatprep.subr.bf16.mxu0 %v9258_v62 }
 0x1d7   : > { %2427 = vmatmul.mubr.f32.gmra.mrb[52].mxu0 %v7893_v60 }
 0x1d8   : > { %2431 = vmatprep.mubr.f32.mxu0 %v7832_v35  ;;  %6324 = vmatpush1.bf16.msra.mxu0 %v6323_v24  ;;  %v6332_v35 = vpack.c.bf16 %v2027_v11, %v2026_v33  ;;  %v8131_v24 = vld [vmem:[#allocation2 + $0x180] sm:$0xff] }
 0x1d9   : > { %6325 = vmatprep.subr.bf16.mxu0 %v9258_v62 }
 0x1db   : > { %2432 = vmatmul.mubr.f32.gmra.mrb[54].mxu0 %v7899_v2 }
 0x1dc   : > { %2436 = vmatprep.mubr.f32.mxu0 %v7838_v36  ;;  %6327 = vmatpush1.bf16.msra.mxu0 %v6326_v29  ;;  %v6335_v36 = vpack.c.bf16 %v2029_v38, %v2028_v37  ;;  %v2032_v37 = vld [vmem:[#allocation5 + $0x300] sm:$0xff]  ;;  %v2033_v38 = vld [vmem:[#allocation5 + $0x308] sm:$0xff] }
 0x1dd   : > { %6328 = vmatprep.subr.bf16.mxu0 %v9258_v62 }
 0x1df   : > { %2437 = vmatmul.mubr.f32.gmra.mrb[56].mxu0 %v7905_v7 }
 0x1e0   : > { %2441 = vmatprep.mubr.f32.mxu0 %v7856_v43  ;;  %6330 = vmatpush1.bf16.msra.mxu0 %v6329_v30  ;;  %v6338_v43 = vpack.c.bf16 %v2031_v40, %v2030_v17  ;;  %v8141_v30 = vld [vmem:[#allocation2 + $0x188] sm:$0xff] }
 0x1e1   : > { %6331 = vmatprep.subr.bf16.mxu0 %v9258_v62  ;;  %v9284_v17 = vld [vmem:[#allocation46_spill] sm:$0xff] }
 0x1e3   : > { %2442 = vmatmul.mubr.f32.gmra.mrb[58].mxu0 %v7909_v9 }
 0x1e4   : > { %2446 = vmatprep.mubr.f32.mxu0 %v7862_v44  ;;  %6333 = vmatpush1.bf16.msra.mxu0 %v6332_v35 }
 0x1e5   : > { %6334 = vmatprep.subr.bf16.mxu0 %v9258_v62 }
 0x1e7   : > { %2447 = vmatmul.mubr.f32.gmra.mrb[60].mxu0 %v7913_v10 }
 0x1e8   : > { %2451 = vmatprep.mubr.f32.mxu0 %v7876_v53  ;;  %6336 = vmatpush1.bf16.msra.mxu0 %v6335_v36 }
 0x1e9   : > { %6337 = vmatprep.subr.bf16.mxu0 %v9258_v62 }
 0x1eb   : > { %2452 = vmatmul.mubr.f32.gmra.mrb[62].mxu0 %v7919_v14 }
 0x1ec   : > { %2456 = vmatprep.mubr.f32.mxu0 %v7882_v55  ;;  %6339 = vmatpush1.bf16.msra.mxu0 %v6338_v43  ;;  %v6341_v43 = vpack.c.bf16 %v2033_v38, %v2032_v37  ;;  %v2036_v37 = vld [vmem:[#allocation5 + $0x320] sm:$0xff]  ;;  %v2037_v38 = vld [vmem:[#allocation5 + $0x328] sm:$0xff] }
 0x1ed   : > { %6340 = vmatprep.subr.bf16.mxu0 %v9258_v62 }
 0x1ef   : > { %2457 = vmatmul.mubr.f32.gmra.mrb[64].mxu0 %v7925_v19 }
 0x1f0   : > { %2461 = vmatprep.mubr.f32.mxu0 %v7896_v0 }
 0x1f3   : > { %2462 = vmatmul.mubr.f32.gmra.mrb[66].mxu0 %v7929_v21 }
 0x1f4   : > { %2466 = vmatprep.mubr.f32.mxu0 %v7902_v3 }
 0x1f7   : > { %2467 = vmatmul.mubr.f32.gmra.mrb[68].mxu0 %v7933_v8 }
 0x1f8   : > { %2471 = vmatprep.mubr.f32.mxu0 %v7916_v12 }
 0x1fb   : > { %2472 = vmatmul.mubr.f32.gmra.mrb[70].mxu0 %v7939_v42 }
 0x1fc   : > { %2476 = vmatprep.mubr.f32.mxu0 %v7922_v15 }
 0x1ff   : > { %2477 = vmatmul.mubr.f32.gmra.mrb[72].mxu0 %v7945_v22 }
 0x200   : > { %2481 = vmatprep.mubr.f32.mxu0 %v7936_v39 }
 0x203   : > { %2482 = vmatmul.mubr.f32.gmra.mrb[74].mxu0 %v7949_v25  ;;  %v8078_v44 = vpop.f32.mrb[0].mxu1 }
 0x204   : > { %9259 = vst [vmem:[#allocation51_spill] sm:$0xff] %v8078_v44  ;;  %2486 = vmatprep.mubr.f32.mxu0 %v7942_v26  ;;  %v8081_v53 = vpop.f32.mrb[1].mxu1 }
 0x205   : > { %9260 = vst [vmem:[#allocation52_spill] sm:$0xff] %v8081_v53 }
 0x207   : > { %2487 = vmatmul.mubr.f32.gmra.mrb[76].mxu0 %v7953_v20  ;;  %v8084_v55 = vpop.f32.mrb[2].mxu1 }
 0x208   : > { %9261 = vst [vmem:[#allocation53_spill] sm:$0xff] %v8084_v55  ;;  %2491 = vmatprep.mubr.f32.mxu0 %v7956_v28  ;;  %v8087_v0 = vpop.f32.mrb[3].mxu1 }
 0x209   : > { %9262 = vst [vmem:[#allocation54_spill] sm:$0xff] %v8087_v0 }
 0x20b   : > { %2492 = vmatmul.mubr.f32.gmra.mrb[78].mxu0 %v7959_v16  ;;  %v8090_v3 = vpop.f32.mrb[4].mxu1 }
 0x20c   : > { %9263 = vst [vmem:[#allocation55_spill] sm:$0xff] %v8090_v3  ;;  %2496 = vmatprep.mubr.f32.mxu0 %v7962_v13  ;;  %v8093_v39 = vpop.f32.mrb[5].mxu1 }
 0x20d   : > { %9264 = vst [vmem:[#allocation56_spill] sm:$0xff] %v8093_v39 }
 0x20f   : > { %2497 = vmatmul.mubr.f32.gmra.mrb[80].mxu0 %v7965_v4  ;;  %v8096_v26 = vpop.f32.mrb[6].mxu1 }
 0x210   : > { %9265 = vst [vmem:[#allocation57_spill] sm:$0xff] %v8096_v26  ;;  %2501 = vmatprep.mubr.f32.mxu0 %v7976_v32  ;;  %v8099_v12 = vpop.f32.mrb[7].mxu1 }
 0x211   : > { %9266 = vst [vmem:[#allocation58_spill] sm:$0xff] %v8099_v12 }
 0x213   : > { %2502 = vmatmul.mubr.f32.gmra.mrb[82].mxu0 %v7969_v27  ;;  %v8102_v28 = vpop.f32.mrb[8].mxu1 }
 0x214   : > { %9267 = vst [vmem:[#allocation59_spill] sm:$0xff] %v8102_v28  ;;  %2506 = vmatprep.mubr.f32.mxu0 %v7984_v56  ;;  %v8105_v15 = vpop.f32.mrb[9].mxu1 }
 0x215   : > { %9268 = vst [vmem:[#allocation60_spill] sm:$0xff] %v8105_v15 }
 0x217   : > { %2507 = vmatmul.mubr.f32.gmra.mrb[84].mxu0 %v7973_v5  ;;  %v8108_v13 = vpop.f32.mrb[10].mxu1 }
 0x218   : > { %9269 = vst [vmem:[#allocation61_spill] sm:$0xff] %v8108_v13  ;;  %2511 = vmatprep.mubr.f32.mxu0 %v7998_v34  ;;  %v8111_v46 = vpop.f32.mrb[11].mxu1  ;;  %v8128_v34 = vld [vmem:[%s9144_s6] ss:$0 sm:$0xff] }
 0x219   : > { %9270 = vst [vmem:[#allocation62_spill] sm:$0xff] %v8111_v46 }
 0x21b   : > { %2512 = vmatmul.mubr.f32.gmra.mrb[86].mxu0 %v7981_v63  ;;  %v8114_v32 = vpop.f32.mrb[12].mxu1 }
 0x21c   : > { %9271 = vst [vmem:[#allocation63_spill] sm:$0xff] %v8114_v32  ;;  %2516 = vmatprep.mubr.f32.mxu0 %v9272_v18  ;;  %v8117_v50 = vpop.f32.mrb[13].mxu1 }
 0x21d   : > { %9273 = vst [vmem:[#allocation48_spill] sm:$0xff] %v8117_v50 }
 0x21f   : > { %2517 = vmatmul.mubr.f32.gmra.mrb[88].mxu0 %v9274_v51  ;;  %v8120_v56 = vpop.f32.mrb[14].mxu1 }
 0x220   : > { %9275 = vst [vmem:[#allocation43_spill] sm:$0xff] %v8120_v56  ;;  %2521 = vmatprep.mubr.f32.mxu0 %v9276_v23  ;;  %v8123_v57 = vpop.f32.mrb[15].mxu1 }
 0x221   : > { %9277 = vst [vmem:[#allocation50_spill] sm:$0xff] %v8123_v57  ;;  %v4280_v57 = vld [vmem:[#allocation8 + $0x460] sm:$0xff] }
 0x223   : > { %2522 = vmatmul.mubr.f32.gmra.mrb[90].mxu0 %v9278_v45  ;;  %v5982_v61 = vpop.f32.mrb[16].mxu1 }
 0x224   : > { %2526 = vmatprep.mubr.f32.mxu0 %v8131_v24  ;;  %v8135_v31 = vadd.f32 %v5982_v61, %v8128_v34  ;;  %v1537_v29 = vpop.f32.mrb[17].mxu1  ;;  %v2034_v61 = vld [vmem:[#allocation5 + $0x310] sm:$0xff] }
 0x225   : > { %v8138_v41 = vadd.f32 %v8128_v34, %v1537_v29  ;;  %v2035_v29 = vld [vmem:[#allocation5 + $0x318] sm:$0xff] }
 0x226   : > { %9279 = vst [vmem:[#allocation45_spill] sm:$0xff] %v8135_v31 }
 0x227   : > { %9280 = vst [vmem:[#allocation64_spill] sm:$0xff] %v8138_v41  ;;  %2527 = vmatmul.mubr.f32.gmra.mrb[92].mxu0 %v9281_v6  ;;  %v5985_v33 = vpop.f32.mrb[18].mxu1  ;;  %v9313_v41 = vld [vmem:[#allocation32_spill] sm:$0xff] }
 0x228   : > { %2531 = vmatprep.mubr.f32.mxu0 %v8141_v30  ;;  %v8145_v11 = vadd.f32 %v5985_v33, %v8128_v34  ;;  %v1547_v35 = vpop.f32.mrb[19].mxu1 }
 0x229   : > { %v8148_v36 = vadd.f32 %v8128_v34, %v1547_v35  ;;  %v6344_v35 = vpack.c.bf16 %v2035_v29, %v2034_v61  ;;  %v2038_v61 = vld [vmem:[#allocation5 + $0x330] sm:$0xff]  ;;  %v2039_v29 = vld [vmem:[#allocation5 + $0x338] sm:$0xff] }
 0x22a   : > { %9282 = vst [vmem:[#allocation44_spill] sm:$0xff] %v8145_v11  ;;  %v9287_v11 = vld [vmem:[#allocation16_spill] sm:$0xff] }
 0x22b   : > { %9283 = vst [vmem:[#allocation65_spill] sm:$0xff] %v8148_v36  ;;  %2532 = vmatmul.mubr.f32.gmra.mrb[94].mxu0 %v9284_v17  ;;  %v5988_v40 = vpop.f32.mrb[20].mxu1 }
 0x22c   : > { %2601 = vmatprep.mubr.f32.mxu0 %v8021_v52  ;;  %v8153_v18 = vadd.f32 %v5988_v40, %v8128_v34  ;;  %v1557_v23 = vpop.f32.mrb[21].mxu1 }
 0x22d   : > { %v8156_v33 = vadd.f32 %v8128_v34, %v1557_v23  ;;  %v9290_v23 = vld [vmem:[#allocation15_spill] sm:$0xff] }
 0x22e   : > { %9285 = vst [vmem:[#allocation46_spill] sm:$0xff] %v8153_v18 }
 0x22f   : > { %9286 = vst [vmem:[#allocation66_spill] sm:$0xff] %v8156_v33  ;;  %2602 = vmatmul.mubr.f32.vlgmr.msra.gmra.mrb[32].mxu0 %v9287_v11  ;;  %v5991_v31 = vpop.f32.mrb[22].mxu1  ;;  %v6347_v11 = vpack.c.bf16 %v2037_v38, %v2036_v37  ;;  %v2040_v38 = vld [vmem:[#allocation5 + $0x340] sm:$0xff]  ;;  %v2063_v33 = vld [vmem:[#allocation5 + $0x3f8] sm:$0xff] }
 0x230   : > { %6342 = vmatpush1.bf16.msra.mxu0 %v6341_v43  ;;  %2606 = vmatprep.mubr.f32.mxu0 %v8026_v58  ;;  %v8161_v36 = vadd.f32 %v5991_v31, %v8128_v34  ;;  %v1567_v52 = vpop.f32.mrb[23].mxu1 }
 0x231   : > { %6343 = vmatprep.subr.bf16.mxu0 %v9258_v62  ;;  %v8165_v40 = vadd.f32 %v8128_v34, %v1567_v52  ;;  %v9293_v52 = vld [vmem:[#allocation18_spill] sm:$0xff] }
 0x232   : > { %9288 = vst [vmem:[#allocation16_spill] sm:$0xff] %v8161_v36 }
 0x233   : > { %9289 = vst [vmem:[#allocation67_spill] sm:$0xff] %v8165_v40  ;;  %2607 = vmatmul.mubr.f32.gmra.mrb[34].mxu0 %v9290_v23  ;;  %v5994_v18 = vpop.f32.mrb[24].mxu1  ;;  %v2041_v23 = vld [vmem:[#allocation5 + $0x348] sm:$0xff] }
 0x234   : > { %2611 = vmatprep.mubr.f32.mxu0 %v7865_v47  ;;  %6345 = vmatpush1.bf16.msra.mxu0 %v6344_v35  ;;  %v8170_v58 = vadd.f32 %v5994_v18, %v8128_v34  ;;  %v1577_v31 = vpop.f32.mrb[25].mxu1  ;;  %v6350_v18 = vpack.c.bf16 %v2039_v29, %v2038_v61  ;;  %v2042_v29 = vld [vmem:[#allocation5 + $0x350] sm:$0xff]  ;;  %v2061_v40 = vld [vmem:[#allocation5 + $0x3e8] sm:$0xff] }
 0x235   : > { %6346 = vmatprep.subr.bf16.mxu0 %v9258_v62  ;;  %v8174_v43 = vadd.f32 %v8128_v34, %v1577_v31  ;;  %v9296_v31 = vld [vmem:[#allocation17_spill] sm:$0xff] }
 0x236   : > { %9291 = vst [vmem:[#allocation15_spill] sm:$0xff] %v8170_v58 }
 0x237   : > { %9292 = vst [vmem:[#allocation68_spill] sm:$0xff] %v8174_v43  ;;  %2612 = vmatmul.mubr.f32.gmra.mrb[36].mxu0 %v9293_v52  ;;  %v5997_v36 = vpop.f32.mrb[26].mxu1  ;;  %v2043_v52 = vld [vmem:[#allocation5 + $0x358] sm:$0xff] }
 0x238   : > { %2616 = vmatprep.mubr.f32.mxu0 %v7869_v48  ;;  %6348 = vmatpush1.bf16.msra.mxu0 %v6347_v11  ;;  %v8179_v47 = vadd.f32 %v5997_v36, %v8128_v34  ;;  %v1587_v35 = vpop.f32.mrb[27].mxu1  ;;  %v6353_v36 = vpack.c.bf16 %v2041_v23, %v2040_v38  ;;  %v2044_v38 = vld [vmem:[#allocation5 + $0x360] sm:$0xff]  ;;  %v2045_v23 = vld [vmem:[#allocation5 + $0x368] sm:$0xff]  ;;  %v2059_v43 = vld [vmem:[#allocation5 + $0x3d8] sm:$0xff] }
 0x239   : > { %v8182_v37 = vadd.f32 %v8128_v34, %v1587_v35  ;;  %6349 = vmatprep.subr.bf16.mxu0 %v9258_v62  ;;  %v9299_v35 = vld [vmem:[#allocation20_spill] sm:$0xff] }
 0x23a   : > { %9294 = vst [vmem:[#allocation18_spill] sm:$0xff] %v8179_v47 }
 0x23b   : > { %9295 = vst [vmem:[#allocation69_spill] sm:$0xff] %v8182_v37  ;;  %2617 = vmatmul.mubr.f32.gmra.mrb[38].mxu0 %v9296_v31  ;;  %v6000_v58 = vpop.f32.mrb[28].mxu1  ;;  %v6356_v31 = vpack.c.bf16 %v2043_v52, %v2042_v29  ;;  %v2047_v29 = vld [vmem:[#allocation5 + $0x378] sm:$0xff]  ;;  %v2057_v37 = vld [vmem:[#allocation5 + $0x3c8] sm:$0xff] }
 0x23c   : > { %2621 = vmatprep.mubr.f32.mxu0 %v7873_v49  ;;  %v8188_v48 = vadd.f32 %v6000_v58, %v8128_v34  ;;  %v1597_v11 = vpop.f32.mrb[29].mxu1  ;;  %6351 = vmatpush1.bf16.msra.mxu0 %v6350_v18 }
 0x23d   : > { %v8191_v61 = vadd.f32 %v8128_v34, %v1597_v11  ;;  %6352 = vmatprep.subr.bf16.mxu0 %v9258_v62  ;;  %v9302_v11 = vld [vmem:[#allocation19_spill] sm:$0xff] }
 0x23e   : > { %9297 = vst [vmem:[#allocation17_spill] sm:$0xff] %v8188_v48 }
 0x23f   : > { %9298 = vst [vmem:[#allocation70_spill] sm:$0xff] %v8191_v61  ;;  %2622 = vmatmul.mubr.f32.gmra.mrb[40].mxu0 %v9299_v35  ;;  %v6003_v47 = vpop.f32.mrb[30].mxu1  ;;  %v2055_v61 = vld [vmem:[#allocation5 + $0x3b8] sm:$0xff] }
 0x240   : > { %2626 = vmatprep.mubr.f32.mxu0 %v7879_v54  ;;  %v8197_v49 = vadd.f32 %v6003_v47, %v8128_v34  ;;  %v1607_v58 = vpop.f32.mrb[31].mxu1  ;;  %6354 = vmatpush1.bf16.msra.mxu0 %v6353_v36  ;;  %v6359_v47 = vpack.c.bf16 %v2045_v23, %v2044_v38  ;;  %v2046_v36 = vld [vmem:[#allocation5 + $0x370] sm:$0xff] }
 0x241   : > { %v8200_v18 = vadd.f32 %v8128_v34, %v1607_v58  ;;  %6355 = vmatprep.subr.bf16.mxu0 %v9258_v62  ;;  %v9303_v34 = vld [vmem:[#allocation22_spill] sm:$0xff]  ;;  %v6362_v58 = vpack.c.bf16 %v2047_v29, %v2046_v36 }
 0x242   : > { %9300 = vst [vmem:[#allocation20_spill] sm:$0xff] %v8197_v49  ;;  %v2051_v49 = vld [vmem:[#allocation5 + $0x398] sm:$0xff] }
 0x243   : > { %9301 = vst [vmem:[#allocation71_spill] sm:$0xff] %v8200_v18  ;;  %2627 = vmatmul.mubr.f32.gmra.mrb[42].mxu0 %v9302_v11  ;;  %v8204_v48 = vpop.f32.mrb[32].mxu1  ;;  %v2049_v11 = vld [vmem:[#allocation5 + $0x388] sm:$0xff] }
 0x244   : > { %2631 = vmatprep.mubr.f32.mxu0 %v7885_v59  ;;  %v8207_v54 = vpop.f32.mrb[33].mxu1  ;;  %6357 = vmatpush1.bf16.msra.mxu0 %v6356_v31  ;;  %v2048_v59 = vld [vmem:[#allocation5 + $0x380] sm:$0xff]  ;;  %v9304_v31 = vld [vmem:[#allocation21_spill] sm:$0xff]  ;;  %v2053_v18 = vld [vmem:[#allocation5 + $0x3a8] sm:$0xff] }
 0x245   : > { %6358 = vmatprep.subr.bf16.mxu0 %v9258_v62 }
 0x247   : > { %2632 = vmatmul.mubr.f32.gmra.mrb[44].mxu0 %v9303_v34  ;;  %v8211_v52 = vpop.f32.mrb[34].mxu1  ;;  %v6365_v34 = vpack.c.bf16 %v2049_v11, %v2048_v59 }
 0x248   : > { %2636 = vmatprep.mubr.f32.mxu0 %v7889_v1  ;;  %v8214_v35 = vpop.f32.mrb[35].mxu1  ;;  %6360 = vmatpush1.bf16.msra.mxu0 %v6359_v47  ;;  %v2050_v1 = vld [vmem:[#allocation5 + $0x390] sm:$0xff]  ;;  %v9305_v47 = vld [vmem:[#allocation24_spill] sm:$0xff] }
 0x249   : > { %6361 = vmatprep.subr.bf16.mxu0 %v9258_v62 }
 0x24b   : > { %2637 = vmatmul.mubr.f32.gmra.mrb[46].mxu0 %v9304_v31  ;;  %v8218_v38 = vpop.f32.mrb[36].mxu1  ;;  %v6368_v31 = vpack.c.bf16 %v2051_v49, %v2050_v1 }
 0x24c   : > { %2641 = vmatprep.mubr.f32.mxu0 %v7893_v60  ;;  %v8221_v23 = vpop.f32.mrb[37].mxu1  ;;  %6363 = vmatpush1.bf16.msra.mxu0 %v6362_v58  ;;  %v2052_v60 = vld [vmem:[#allocation5 + $0x3a0] sm:$0xff] }
 0x24d   : > { %6364 = vmatprep.subr.bf16.mxu0 %v9258_v62  ;;  %v9306_v58 = vld [vmem:[#allocation23_spill] sm:$0xff] }
 0x24f   : > { %2642 = vmatmul.mubr.f32.gmra.mrb[48].mxu0 %v9305_v47  ;;  %v8225_v36 = vpop.f32.mrb[38].mxu1  ;;  %v6371_v47 = vpack.c.bf16 %v2053_v18, %v2052_v60 }
 0x250   : > { %2646 = vmatprep.mubr.f32.mxu0 %v7899_v2  ;;  %v8228_v29 = vpop.f32.mrb[39].mxu1  ;;  %6366 = vmatpush1.bf16.msra.mxu0 %v6365_v34  ;;  %v2054_v2 = vld [vmem:[#allocation5 + $0x3b0] sm:$0xff]  ;;  %v9307_v34 = vld [vmem:[#allocation26_spill] sm:$0xff] }
 0x251   : > { %6367 = vmatprep.subr.bf16.mxu0 %v9258_v62 }
 0x253   : > { %2647 = vmatmul.mubr.f32.gmra.mrb[50].mxu0 %v9306_v58  ;;  %v8232_v59 = vpop.f32.mrb[40].mxu1  ;;  %v6374_v58 = vpack.c.bf16 %v2055_v61, %v2054_v2 }
 0x254   : > { %2651 = vmatprep.mubr.f32.mxu0 %v7905_v7  ;;  %v8235_v11 = vpop.f32.mrb[41].mxu1  ;;  %6369 = vmatpush1.bf16.msra.mxu0 %v6368_v31  ;;  %v2056_v7 = vld [vmem:[#allocation5 + $0x3c0] sm:$0xff]  ;;  %v9308_v31 = vld [vmem:[#allocation25_spill] sm:$0xff] }
 0x255   : > { %6370 = vmatprep.subr.bf16.mxu0 %v9258_v62 }
 0x257   : > { %2652 = vmatmul.mubr.f32.gmra.mrb[52].mxu0 %v9307_v34  ;;  %v8239_v49 = vpop.f32.mrb[42].mxu1  ;;  %v6377_v34 = vpack.c.bf16 %v2057_v37, %v2056_v7 }
 0x258   : > { %2656 = vmatprep.mubr.f32.mxu0 %v7909_v9  ;;  %v8242_v1 = vpop.f32.mrb[43].mxu1  ;;  %6372 = vmatpush1.bf16.msra.mxu0 %v6371_v47  ;;  %v2058_v9 = vld [vmem:[#allocation5 + $0x3d0] sm:$0xff]  ;;  %v9309_v47 = vld [vmem:[#allocation27_spill] sm:$0xff] }
 0x259   : > { %6373 = vmatprep.subr.bf16.mxu0 %v9258_v62 }
 0x25b   : > { %2657 = vmatmul.mubr.f32.gmra.mrb[54].mxu0 %v9308_v31  ;;  %v8246_v18 = vpop.f32.mrb[44].mxu1  ;;  %v6380_v31 = vpack.c.bf16 %v2059_v43, %v2058_v9 }
 0x25c   : > { %2661 = vmatprep.mubr.f32.mxu0 %v7913_v10  ;;  %v8249_v60 = vpop.f32.mrb[45].mxu1  ;;  %6375 = vmatpush1.bf16.msra.mxu0 %v6374_v58  ;;  %v2060_v10 = vld [vmem:[#allocation5 + $0x3e0] sm:$0xff] }
 0x25d   : > { %6376 = vmatprep.subr.bf16.mxu0 %v9258_v62  ;;  %v7158_v58 = vld [vmem:[#allocation2 + $0xb1] sm:$0xff] }
 0x25f   : > { %2662 = vmatmul.mubr.f32.gmra.mrb[56].mxu0 %v9309_v47  ;;  %v8253_v61 = vpop.f32.mrb[46].mxu1  ;;  %v6383_v47 = vpack.c.bf16 %v2061_v40, %v2060_v10  ;;  %v9311_v10 = vld [vmem:[#allocation29_spill] sm:$0xff] }
 0x260   : > { %2666 = vmatprep.mubr.f32.mxu0 %v7919_v14  ;;  %v8256_v2 = vpop.f32.mrb[47].mxu1  ;;  %6378 = vmatpush1.bf16.msra.mxu0 %v6377_v34  ;;  %v2062_v14 = vld [vmem:[#allocation5 + $0x3f0] sm:$0xff]  ;;  %v9310_v34 = vld [vmem:[#allocation28_spill] sm:$0xff] }
 0x261   : > { %6379 = vmatprep.subr.bf16.mxu0 %v9258_v62 }
 0x263   : > { %2667 = vmatmul.mubr.f32.gmra.mrb[58].mxu0 %v7158_v58  ;;  %v8259_v37 = vpop.f32.mrb[48].mxu1  ;;  %v6386_v58 = vpack.c.bf16 %v2063_v33, %v2062_v14  ;;  %v7160_v33 = vld [vmem:[#allocation2 + $0xe1] sm:$0xff] }
 0x264   : > { %2671 = vmatprep.mubr.f32.mxu0 %v7925_v19  ;;  %v8262_v7 = vpop.f32.mrb[49].mxu1  ;;  %6381 = vmatpush1.bf16.msra.mxu0 %v6380_v31  ;;  %v7159_v19 = vld [vmem:[#allocation2 + $0xc9] sm:$0xff] }
 0x265   : > { %6382 = vmatprep.subr.bf16.mxu0 %v9258_v62 }
 0x267   : > { %2672 = vmatmul.mubr.f32.gmra.mrb[60].mxu0 %v9310_v34  ;;  %v8266_v43 = vpop.f32.mrb[50].mxu1 }
 0x268   : > { %2676 = vmatprep.mubr.f32.mxu0 %v7929_v21  ;;  %v8269_v9 = vpop.f32.mrb[51].mxu1  ;;  %6384 = vmatpush1.bf16.msra.mxu0 %v6383_v47 }
 0x269   : > { %6385 = vmatprep.subr.bf16.mxu0 %v9258_v62 }
 0x26b   : > { %2677 = vmatmul.mubr.f32.gmra.mrb[62].mxu0 %v7159_v19  ;;  %v8272_v31 = vpop.f32.mrb[52].mxu1 }
 0x26c   : > { %2681 = vmatprep.mubr.f32.mxu0 %v7933_v8  ;;  %v8275_v40 = vpop.f32.mrb[53].mxu1  ;;  %6387 = vmatpush1.bf16.msra.mxu0 %v6386_v58  ;;  %v9312_v8 = vld [vmem:[#allocation30_spill] sm:$0xff] }
 0x26f   : > { %2682 = vmatmul.mubr.f32.gmra.mrb[64].mxu0 %v9311_v10  ;;  %v8278_v34 = vpop.f32.mrb[54].mxu1  ;;  %v7161_v10 = vld [vmem:[#allocation2 + $0xf9] sm:$0xff] }
 0x270   : > { %2686 = vmatprep.mubr.f32.mxu0 %v7939_v42  ;;  %v8281_v21 = vpop.f32.mrb[55].mxu1 }
 0x273   : > { %2687 = vmatmul.mubr.f32.gmra.mrb[66].mxu0 %v7160_v33  ;;  %v8283_v47 = vpop.f32.mrb[56].mxu1 }
 0x274   : > { %2691 = vmatprep.mubr.f32.mxu0 %v7945_v22  ;;  %v8286_v14 = vpop.f32.mrb[57].mxu1  ;;  %v9314_v22 = vld [vmem:[#allocation31_spill] sm:$0xff] }
 0x277   : > { %2692 = vmatmul.mubr.f32.gmra.mrb[68].mxu0 %v9312_v8  ;;  %v8289_v19 = vpop.f32.mrb[58].mxu1  ;;  %v9315_v8 = vld [vmem:[#allocation34_spill] sm:$0xff] }
 0x278   : > { %2696 = vmatprep.mubr.f32.mxu0 %v7949_v25  ;;  %v8292_v58 = vpop.f32.mrb[59].mxu1  ;;  %v9316_v25 = vld [vmem:[#allocation33_spill] sm:$0xff] }
 0x27b   : > { %2697 = vmatmul.mubr.f32.gmra.mrb[70].mxu0 %v7161_v10  ;;  %v8294_v42 = vpop.f32.mrb[60].mxu1  ;;  %v9317_v10 = vld [vmem:[#allocation36_spill] sm:$0xff] }
 0x27c   : > { %2701 = vmatprep.mubr.f32.mxu0 %v7953_v20  ;;  %v8297_v33 = vpop.f32.mrb[61].mxu1  ;;  %v9318_v20 = vld [vmem:[#allocation35_spill] sm:$0xff] }
 0x27f   : > { %2702 = vmatmul.mubr.f32.gmra.mrb[72].mxu0 %v9313_v41  ;;  %v9323_v41 = vld [vmem:[#allocation47_spill] sm:$0xff] }
 0x280   : > { %2706 = vmatprep.mubr.f32.mxu0 %v7959_v16  ;;  %v9319_v16 = vld [vmem:[#allocation38_spill] sm:$0xff] }
 0x283   : > { %2707 = vmatmul.mubr.f32.gmra.mrb[74].mxu0 %v9314_v22  ;;  %v9324_v22 = vld [vmem:[#allocation42_spill] sm:$0xff] }
 0x284   : > { %2711 = vmatprep.mubr.f32.mxu0 %v7965_v4  ;;  %v9320_v4 = vld [vmem:[#allocation37_spill] sm:$0xff] }
 0x287   : > { %2712 = vmatmul.mubr.f32.gmra.mrb[76].mxu0 %v9315_v8  ;;  %v9325_v8 = vld [vmem:[#allocation49_spill] sm:$0xff] }
 0x288   : > { %2716 = vmatprep.mubr.f32.mxu0 %v7969_v27  ;;  %v9321_v27 = vld [vmem:[#allocation40_spill] sm:$0xff] }
 0x28b   : > { %2717 = vmatmul.mubr.f32.gmra.mrb[78].mxu0 %v9316_v25  ;;  %v9326_v25 = vld [vmem:[#allocation41_spill] sm:$0xff] }
 0x28c   : > { %2721 = vmatprep.mubr.f32.mxu0 %v7973_v5  ;;  %v9322_v5 = vld [vmem:[#allocation39_spill] sm:$0xff] }
 0x28f   : > { %2722 = vmatmul.mubr.f32.gmra.mrb[80].mxu0 %v9317_v10  ;;  %v4141_v10 = vld [vmem:[#allocation8 + $0x8] sm:$0xff] }
 0x290   : > { %2726 = vmatprep.mubr.f32.mxu0 %v7981_v63  ;;  %v1302_v63 = vld [vmem:[#allocation2 + $0x19a] sm:$0xff] }
 0x291   : > { %6081 = vmatprep.mubr.f32.mxu1 %v1302_v63  ;;  %v4145_v63 = vld [vmem:[#allocation8 + $0x28] sm:$0xff] }
 0x293   : > { %2727 = vmatmul.mubr.f32.gmra.mrb[82].mxu0 %v9318_v20  ;;  %v4142_v20 = vld [vmem:[#allocation8 + $0x10] sm:$0xff] }
 0x294   : > { %2731 = vmatprep.mubr.f32.mxu0 %v9274_v51  ;;  %v1303_v51 = vld [vmem:[#allocation2 + $0x1a2] sm:$0xff] }
 0x295   : > { %6082 = vmatmul.mubr.f32.gmra.mrb[62].mxu1 %v1303_v51 }
 0x297   : > { %2732 = vmatmul.mubr.f32.gmra.mrb[84].mxu0 %v9319_v16  ;;  %v4143_v16 = vld [vmem:[#allocation8 + $0x18] sm:$0xff] }
 0x298   : > { %2736 = vmatprep.mubr.f32.mxu0 %v9278_v45  ;;  %v1208_v45 = vld [vmem:[#allocation2 + $0x31] sm:$0xff] }
 0x29b   : > { %2737 = vmatmul.mubr.f32.gmra.mrb[86].mxu0 %v9320_v4  ;;  %v1144_v4 = vld [vmem:[#allocation2 + $0x30] sm:$0xff] }
 0x29c   : > { %2741 = vmatprep.mubr.f32.mxu0 %v9281_v6  ;;  %v4140_v6 = vld [vmem:[#allocation8] sm:$0xff] }
 0x29f   : > { %2742 = vmatmul.mubr.f32.gmra.mrb[88].mxu0 %v9321_v27  ;;  %v6424_v27 = vpack.c.bf16 %v4143_v16, %v4142_v20 }
 0x2a0   : > { %2746 = vmatprep.mubr.f32.mxu0 %v9284_v17  ;;  %v6421_v17 = vpack.c.bf16 %v4141_v10, %v4140_v6  ;;  %v4268_v6 = vld [vmem:[#allocation8 + $0x400] sm:$0xff]  ;;  %v4269_v10 = vld [vmem:[#allocation8 + $0x408] sm:$0xff] }
 0x2a1   : > { %v6612_v20 = vpack.c.bf16 %v4269_v10, %v4268_v6  ;;  %v4151_v6 = vld [vmem:[#allocation8 + $0x58] sm:$0xff]  ;;  %v4152_v10 = vld [vmem:[#allocation8 + $0x60] sm:$0xff] }
 0x2a2   : > { %6422 = vmatpush1.bf16.msra.mxu1 %v6421_v17  ;;  %v1146_v17 = vld [vmem:[#allocation2 + $0x48] sm:$0xff] }
 0x2a3   : > { %2747 = vmatmul.mubr.f32.gmra.mrb[90].mxu0 %v9322_v5  ;;  %v1209_v5 = vld [vmem:[#allocation2 + $0x39] sm:$0xff]  ;;  %6423 = vmatprep.subr.bf16.mxu1 %v9258_v62 }
 0x2a4   : > { %2751 = vmatprep.mubr.f32.mxu0 %v9323_v41  ;;  %v4144_v41 = vld [vmem:[#allocation8 + $0x20] sm:$0xff]  ;;  %6613 = vmatprep.subr.bf16.mxu0 %v6612_v20 }
 0x2a5   : > { %v6427_v51 = vpack.c.bf16 %v4145_v63, %v4144_v41  ;;  %v1147_v41 = vld [vmem:[#allocation2 + $0x50] sm:$0xff] }
 0x2a6   : > { %6425 = vmatpush1.bf16.msra.mxu1 %v6424_v27  ;;  %v4149_v27 = vld [vmem:[#allocation8 + $0x48] sm:$0xff] }
 0x2a7   : > { %2752 = vmatmul.mubr.f32.gmra.mrb[92].mxu0 %v9324_v22  ;;  %v1145_v22 = vld [vmem:[#allocation2 + $0x38] sm:$0xff]  ;;  %6426 = vmatprep.subr.bf16.mxu1 %v9258_v62 }
 0x2a8   : > { %2756 = vmatprep.mubr.f32.mxu0 %v9325_v8  ;;  %v1210_v8 = vld [vmem:[#allocation2 + $0x49] sm:$0xff] }
 0x2aa   : > { %6428 = vmatpush1.bf16.msra.mxu1 %v6427_v51  ;;  %v1148_v51 = vld [vmem:[#allocation2 + $0x60] sm:$0xff] }
 0x2ab   : > { %2757 = vmatmul.mubr.f32.gmra.mrb[94].mxu0 %v9326_v25  ;;  %v4147_v25 = vld [vmem:[#allocation8 + $0x38] sm:$0xff]  ;;  %6429 = vmatprep.subr.bf16.mxu1 %v9258_v62 }
 0x2ac   : > { %2826 = vmatprep.mubr.f32.mxu0 %v1208_v45  ;;  %v4146_v45 = vld [vmem:[#allocation8 + $0x30] sm:$0xff] }
 0x2ad   : > { %v6430_v16 = vpack.c.bf16 %v4147_v25, %v4146_v45  ;;  %v1213_v25 = vld [vmem:[#allocation2 + $0x69] sm:$0xff] }
 0x2af   : > { %2827 = vmatmul.mubr.f32.vlgmr.msra.gmra.mrb[32].mxu0 %v1144_v4  ;;  %v1211_v4 = vld [vmem:[#allocation2 + $0x51] sm:$0xff]  ;;  %6431 = vmatpush1.bf16.msra.mxu1 %v6430_v16 }
 0x2b0   : > { %2831 = vmatprep.mubr.f32.mxu0 %v1209_v5  ;;  %v4148_v5 = vld [vmem:[#allocation8 + $0x40] sm:$0xff]  ;;  %6615 = vmatpush3.bf16.msra.mxu0 %v6612_v20  ;;  %v1149_v20 = vld [vmem:[#allocation2 + $0x68] sm:$0xff] }
 0x2b1   : > { %v6433_v63 = vpack.c.bf16 %v4149_v27, %v4148_v5  ;;  %6432 = vmatprep.subr.bf16.mxu1 %v9258_v62  ;;  %v4154_v5 = vld [vmem:[#allocation8 + $0x70] sm:$0xff]  ;;  %v4155_v27 = vld [vmem:[#allocation8 + $0x78] sm:$0xff] }
 0x2b3   : > { %2832 = vmatmul.mubr.f32.gmra.mrb[34].mxu0 %v1145_v22  ;;  %v1212_v22 = vld [vmem:[#allocation2 + $0x61] sm:$0xff]  ;;  %6434 = vmatpush1.bf16.msra.mxu1 %v6433_v63  ;;  %v6442_v63 = vpack.c.bf16 %v4155_v27, %v4154_v5  ;;  %v4160_v5 = vld [vmem:[#allocation8 + $0xa0] sm:$0xff]  ;;  %v4161_v27 = vld [vmem:[#allocation8 + $0xa8] sm:$0xff] }
 0x2b4   : > { %2836 = vmatprep.mubr.f32.mxu0 %v1210_v8  ;;  %v4150_v8 = vld [vmem:[#allocation8 + $0x50] sm:$0xff]  ;;  %6435 = vmatprep.subr.bf16.mxu1 %v9258_v62 }
 0x2b5   : > { %v6436_v45 = vpack.c.bf16 %v4151_v6, %v4150_v8  ;;  %v4156_v8 = vld [vmem:[#allocation8 + $0x80] sm:$0xff]  ;;  %v4157_v6 = vld [vmem:[#allocation8 + $0x88] sm:$0xff] }
 0x2b7   : > { %2837 = vmatmul.mubr.f32.gmra.mrb[36].mxu0 %v1146_v17  ;;  %v4153_v17 = vld [vmem:[#allocation8 + $0x68] sm:$0xff]  ;;  %6437 = vmatpush1.bf16.msra.mxu1 %v6436_v45  ;;  %v6445_v45 = vpack.c.bf16 %v4157_v6, %v4156_v8  ;;  %v4162_v8 = vld [vmem:[#allocation8 + $0xb0] sm:$0xff]  ;;  %v4163_v6 = vld [vmem:[#allocation8 + $0xb8] sm:$0xff] }
 0x2b8   : > { %2841 = vmatprep.mubr.f32.mxu0 %v1211_v4  ;;  %v6439_v16 = vpack.c.bf16 %v4153_v17, %v4152_v10  ;;  %v1214_v4 = vld [vmem:[#allocation2 + $0x79] sm:$0xff]  ;;  %6438 = vmatprep.subr.bf16.mxu1 %v9258_v62  ;;  %v4159_v17 = vld [vmem:[#allocation8 + $0x98] sm:$0xff] }
 0x2b9   : > { %v4158_v10 = vld [vmem:[#allocation8 + $0x90] sm:$0xff] }
 0x2bb   : > { %2842 = vmatmul.mubr.f32.gmra.mrb[38].mxu0 %v1147_v41  ;;  %v1150_v41 = vld [vmem:[#allocation2 + $0x78] sm:$0xff]  ;;  %6440 = vmatpush1.bf16.msra.mxu1 %v6439_v16  ;;  %v6448_v16 = vpack.c.bf16 %v4159_v17, %v4158_v10  ;;  %v4164_v10 = vld [vmem:[#allocation8 + $0xc0] sm:$0xff] }
 0x2bc   : > { %2846 = vmatprep.mubr.f32.mxu0 %v1212_v22  ;;  %v1215_v22 = vld [vmem:[#allocation2 + $0x81] sm:$0xff]  ;;  %6441 = vmatprep.subr.bf16.mxu1 %v9258_v62  ;;  %v4165_v17 = vld [vmem:[#allocation8 + $0xc8] sm:$0xff] }
 0x2bf   : > { %2847 = vmatmul.mubr.f32.gmra.mrb[40].mxu0 %v1148_v51  ;;  %v1151_v51 = vld [vmem:[#allocation2 + $0x80] sm:$0xff]  ;;  %6443 = vmatpush1.bf16.msra.mxu1 %v6442_v63  ;;  %v6451_v63 = vpack.c.bf16 %v4161_v27, %v4160_v5  ;;  %v4167_v27 = vld [vmem:[#allocation8 + $0xd8] sm:$0xff] }
 0x2c0   : > { %2851 = vmatprep.mubr.f32.mxu0 %v1213_v25  ;;  %v1216_v25 = vld [vmem:[#allocation2 + $0x91] sm:$0xff]  ;;  %6444 = vmatprep.subr.bf16.mxu1 %v9258_v62  ;;  %v4166_v5 = vld [vmem:[#allocation8 + $0xd0] sm:$0xff] }
 0x2c3   : > { %2852 = vmatmul.mubr.f32.gmra.mrb[42].mxu0 %v1149_v20  ;;  %v1152_v20 = vld [vmem:[#allocation2 + $0x90] sm:$0xff]  ;;  %6446 = vmatpush1.bf16.msra.mxu1 %v6445_v45  ;;  %v6454_v45 = vpack.c.bf16 %v4163_v6, %v4162_v8  ;;  %v1157_v8 = vld [vmem:[#allocation2 + $0xc8] sm:$0xff]  ;;  %v1222_v6 = vld [vmem:[#allocation2 + $0xd9] sm:$0xff] }
 0x2c4   : > { %2856 = vmatprep.mubr.f32.mxu0 %v1214_v4  ;;  %v1217_v4 = vld [vmem:[#allocation2 + $0x99] sm:$0xff]  ;;  %6447 = vmatprep.subr.bf16.mxu1 %v9258_v62 }
 0x2c7   : > { %2857 = vmatmul.mubr.f32.gmra.mrb[44].mxu0 %v1150_v41  ;;  %v1153_v41 = vld [vmem:[#allocation2 + $0x98] sm:$0xff]  ;;  %6449 = vmatpush1.bf16.msra.mxu1 %v6448_v16  ;;  %v6457_v16 = vpack.c.bf16 %v4165_v17, %v4164_v10  ;;  %v1160_v17 = vld [vmem:[#allocation2 + $0xf0] sm:$0xff] }
 0x2c8   : > { %2861 = vmatprep.mubr.f32.mxu0 %v1215_v22  ;;  %v1218_v22 = vld [vmem:[#allocation2 + $0xa9] sm:$0xff]  ;;  %6450 = vmatprep.subr.bf16.mxu1 %v9258_v62  ;;  %v1224_v10 = vld [vmem:[#allocation2 + $0xf1] sm:$0xff] }
 0x2cb   : > { %2862 = vmatmul.mubr.f32.gmra.mrb[46].mxu0 %v1151_v51  ;;  %v1154_v51 = vld [vmem:[#allocation2 + $0xa8] sm:$0xff]  ;;  %6452 = vmatpush1.bf16.msra.mxu1 %v6451_v63  ;;  %v6460_v63 = vpack.c.bf16 %v4167_v27, %v4166_v5  ;;  %v1227_v27 = vld [vmem:[#allocation2 + $0x111] sm:$0xff] }
 0x2cc   : > { %2866 = vmatprep.mubr.f32.mxu0 %v1216_v25  ;;  %v1219_v25 = vld [vmem:[#allocation2 + $0xb1] sm:$0xff]  ;;  %6453 = vmatprep.subr.bf16.mxu1 %v9258_v62  ;;  %v1162_v5 = vld [vmem:[#allocation2 + $0x108] sm:$0xff] }
 0x2cf   : > { %2867 = vmatmul.mubr.f32.gmra.mrb[48].mxu0 %v1152_v20  ;;  %v1155_v20 = vld [vmem:[#allocation2 + $0xb0] sm:$0xff]  ;;  %6455 = vmatpush1.bf16.msra.mxu1 %v6454_v45  ;;  %v1223_v45 = vld [vmem:[#allocation2 + $0xe1] sm:$0xff] }
 0x2d0   : > { %2871 = vmatprep.mubr.f32.mxu0 %v1217_v4  ;;  %v1220_v4 = vld [vmem:[#allocation2 + $0xc1] sm:$0xff]  ;;  %6456 = vmatprep.subr.bf16.mxu1 %v9258_v62 }
 0x2d3   : > { %2872 = vmatmul.mubr.f32.gmra.mrb[50].mxu0 %v1153_v41  ;;  %v1156_v41 = vld [vmem:[#allocation2 + $0xc0] sm:$0xff]  ;;  %6458 = vmatpush1.bf16.msra.mxu1 %v6457_v16  ;;  %v1161_v16 = vld [vmem:[#allocation2 + $0xf8] sm:$0xff] }
 0x2d4   : > { %2876 = vmatprep.mubr.f32.mxu0 %v1218_v22  ;;  %v1221_v22 = vld [vmem:[#allocation2 + $0xc9] sm:$0xff]  ;;  %6459 = vmatprep.subr.bf16.mxu1 %v9258_v62 }
 0x2d7   : > { %2877 = vmatmul.mubr.f32.gmra.mrb[52].mxu0 %v1154_v51  ;;  %6461 = vmatpush1.bf16.msra.mxu1 %v6460_v63  ;;  %v1158_v51 = vld [vmem:[#allocation2 + $0xd8] sm:$0xff]  ;;  %v4168_v63 = vld [vmem:[#allocation8 + $0xe0] sm:$0xff] }
 0x2d8   : > { %2881 = vmatprep.mubr.f32.mxu0 %v1219_v25  ;;  %6462 = vmatprep.subr.bf16.mxu1 %v9258_v62  ;;  %v1159_v25 = vld [vmem:[#allocation2 + $0xe0] sm:$0xff] }
 0x2db   : > { %2882 = vmatmul.mubr.f32.gmra.mrb[54].mxu0 %v1155_v20  ;;  %v1225_v20 = vld [vmem:[#allocation2 + $0xf9] sm:$0xff] }
 0x2dc   : > { %2886 = vmatprep.mubr.f32.mxu0 %v1220_v4  ;;  %v1226_v4 = vld [vmem:[#allocation2 + $0x109] sm:$0xff] }
 0x2df   : > { %2887 = vmatmul.mubr.f32.gmra.mrb[56].mxu0 %v1156_v41  ;;  %v1163_v41 = vld [vmem:[#allocation2 + $0x110] sm:$0xff] }
 0x2e0   : > { %2891 = vmatprep.mubr.f32.mxu0 %v1221_v22  ;;  %v4169_v22 = vld [vmem:[#allocation8 + $0xe8] sm:$0xff] }
 0x2e3   : > { %2892 = vmatmul.mubr.f32.gmra.mrb[58].mxu0 %v1157_v8  ;;  %v1228_v8 = vld [vmem:[#allocation2 + $0x121] sm:$0xff] }
 0x2e4   : > { %2896 = vmatprep.mubr.f32.mxu0 %v1222_v6  ;;  %v6463_v6 = vpack.c.bf16 %v4169_v22, %v4168_v63  ;;  %v4272_v63 = vld [vmem:[#allocation8 + $0x420] sm:$0xff]  ;;  %v4273_v22 = vld [vmem:[#allocation8 + $0x428] sm:$0xff] }
 0x2e6   : > { %6464 = vmatpush1.bf16.msra.mxu1 %v6463_v6  ;;  %v8338_v6 = vld [vmem:[#allocation2] sm:$0xff] }
 0x2e7   : > { %2897 = vmatmul.mubr.f32.gmra.mrb[60].mxu0 %v1158_v51  ;;  %v1164_v51 = vld [vmem:[#allocation2 + $0x120] sm:$0xff]  ;;  %6465 = vmatprep.subr.bf16.mxu1 %v9258_v62 }
 0x2e8   : > { %2901 = vmatprep.mubr.f32.mxu0 %v1223_v45  ;;  %v4170_v45 = vld [vmem:[#allocation8 + $0xf0] sm:$0xff] }
 0x2eb   : > { %2902 = vmatmul.mubr.f32.gmra.mrb[62].mxu0 %v1159_v25  ;;  %v4171_v25 = vld [vmem:[#allocation8 + $0xf8] sm:$0xff] }
 0x2ec   : > { %2906 = vmatprep.mubr.f32.mxu0 %v1224_v10  ;;  %v1229_v10 = vld [vmem:[#allocation2 + $0x129] sm:$0xff] }
 0x2ef   : > { %2907 = vmatmul.mubr.f32.gmra.mrb[64].mxu0 %v1160_v17  ;;  %v4270_v17 = vld [vmem:[#allocation8 + $0x410] sm:$0xff] }
 0x2f0   : > { %2911 = vmatprep.mubr.f32.mxu0 %v1225_v20  ;;  %v4271_v20 = vld [vmem:[#allocation8 + $0x418] sm:$0xff] }
 0x2f3   : > { %2912 = vmatmul.mubr.f32.gmra.mrb[66].mxu0 %v1161_v16  ;;  %v6466_v16 = vpack.c.bf16 %v4171_v25, %v4170_v45  ;;  %v3341_v45 = vld [vmem:[#allocation2 + $0x9] sm:$0xff]  ;;  %v1231_v25 = vld [vmem:[#allocation2 + $0x141] sm:$0xff] }
 0x2f4   : > { %2916 = vmatprep.mubr.f32.mxu0 %v1226_v4  ;;  %v6616_v4 = vpack.c.bf16 %v4271_v20, %v4270_v17  ;;  %v4275_v17 = vld [vmem:[#allocation8 + $0x438] sm:$0xff] }
 0x2f5   : > { %6467 = vmatpush1.bf16.msra.mxu1 %v6466_v16  ;;  %v1167_v16 = vld [vmem:[#allocation2 + $0x140] sm:$0xff] }
 0x2f6   : > { %6617 = vmatprep.subr.bf16.mxu0 %v6616_v4  ;;  %6468 = vmatprep.subr.bf16.mxu1 %v9258_v62 }
 0x2f7   : > { %2917 = vmatmul.mubr.f32.gmra.mrb[68].mxu0 %v1162_v5  ;;  %v1165_v5 = vld [vmem:[#allocation2 + $0x128] sm:$0xff] }
 0x2f8   : > { %2921 = vmatprep.mubr.f32.mxu0 %v1227_v27  ;;  %v3340_v27 = vld [vmem:[#allocation2 + $0x1] sm:$0xff]  ;;  %6619 = vmatpush3.bf16.msra.mxu0 %v6616_v4  ;;  %v1232_v4 = vld [vmem:[#allocation2 + $0x151] sm:$0xff] }
 0x2f9   : > { %4355 = vmatprep.mubr.f32.mxu1 %v3340_v27  ;;  %v4277_v27 = vld [vmem:[#allocation8 + $0x448] sm:$0xff] }
 0x2fa   : > { %4356 = vmatmul.mubr.f32.vlgmr.msra.gmra.mrb[64].mxu1 %v8338_v6 }
 0x2fb   : > { %2922 = vmatmul.mubr.f32.gmra.mrb[70].mxu0 %v1163_v41  ;;  %v1230_v41 = vld [vmem:[#allocation2 + $0x139] sm:$0xff]  ;;  %4360 = vmatprep.mubr.f32.mxu1 %v3341_v45  ;;  %v4279_v45 = vld [vmem:[#allocation8 + $0x458] sm:$0xff] }
 0x2fc   : > { %2926 = vmatprep.mubr.f32.mxu0 %v1228_v8  ;;  %v6620_v8 = vpack.c.bf16 %v4273_v22, %v4272_v63  ;;  %v1168_v63 = vld [vmem:[#allocation2 + $0x150] sm:$0xff]  ;;  %v1233_v22 = vld [vmem:[#allocation2 + $0x159] sm:$0xff] }
 0x2fe   : > { %6621 = vmatprep.subr.bf16.mxu0 %v6620_v8  ;;  %4361 = vmatmul.mubr.f32.gmra.mrb[66].mxu1 %v8338_v6 }
 0x2ff   : > { %2927 = vmatmul.mubr.f32.gmra.mrb[72].mxu0 %v1164_v51  ;;  %v1166_v51 = vld [vmem:[#allocation2 + $0x138] sm:$0xff] }
 0x300   : > { %2931 = vmatprep.mubr.f32.mxu0 %v1229_v10  ;;  %v4274_v10 = vld [vmem:[#allocation8 + $0x430] sm:$0xff]  ;;  %6623 = vmatpush3.bf16.msra.mxu0 %v6620_v8 }
 0x301   : > { %v6624_v20 = vpack.c.bf16 %v4275_v17, %v4274_v10  ;;  %v4173_v10 = vld [vmem:[#allocation8 + $0x108] sm:$0xff] }
 0x302   : > { %v1169_v17 = vld [vmem:[#allocation2 + $0x158] sm:$0xff] }
 0x303   : > { %2932 = vmatmul.mubr.f32.gmra.mrb[74].mxu0 %v1165_v5  ;;  %6625 = vmatprep.subr.bf16.mxu0 %v6624_v20  ;;  %v4276_v5 = vld [vmem:[#allocation8 + $0x440] sm:$0xff] }
 0x304   : > { %2936 = vmatprep.mubr.f32.mxu0 %v1230_v41  ;;  %6627 = vmatpush3.bf16.msra.mxu0 %v6624_v20  ;;  %v6628_v41 = vpack.c.bf16 %v4277_v27, %v4276_v5  ;;  %v1170_v5 = vld [vmem:[#allocation2 + $0x168] sm:$0xff]  ;;  %v1235_v27 = vld [vmem:[#allocation2 + $0x171] sm:$0xff] }
 0x306   : > { %6629 = vmatprep.subr.bf16.mxu0 %v6628_v41 }
 0x307   : > { %2937 = vmatmul.mubr.f32.gmra.mrb[76].mxu0 %v1166_v51  ;;  %v4278_v51 = vld [vmem:[#allocation8 + $0x450] sm:$0xff] }
 0x308   : > { %2941 = vmatprep.mubr.f32.mxu0 %v1231_v25  ;;  %6631 = vmatpush3.bf16.msra.mxu0 %v6628_v41  ;;  %v6632_v8 = vpack.c.bf16 %v4279_v45, %v4278_v51  ;;  %v4172_v25 = vld [vmem:[#allocation8 + $0x100] sm:$0xff]  ;;  %v4282_v41 = vld [vmem:[#allocation8 + $0x470] sm:$0xff]  ;;  %v4175_v45 = vld [vmem:[#allocation8 + $0x118] sm:$0xff] }
 0x309   : > { %v6469_v56 = vpack.c.bf16 %v4173_v10, %v4172_v25  ;;  %v4174_v51 = vld [vmem:[#allocation8 + $0x110] sm:$0xff]  ;;  %v1171_v25 = vld [vmem:[#allocation2 + $0x170] sm:$0xff] }
 0x30a   : > { %6633 = vmatprep.subr.bf16.mxu0 %v6632_v8  ;;  %v6472_v10 = vpack.c.bf16 %v4175_v45, %v4174_v51  ;;  %v4183_v51 = vld [vmem:[#allocation8 + $0x158] sm:$0xff] }
 0x30b   : > { %2942 = vmatmul.mubr.f32.gmra.mrb[78].mxu0 %v1167_v16  ;;  %v1234_v16 = vld [vmem:[#allocation2 + $0x169] sm:$0xff]  ;;  %6470 = vmatpush1.bf16.msra.mxu1 %v6469_v56  ;;  %v1236_v56 = vld [vmem:[#allocation2 + $0x181] sm:$0xff] }
 0x30c   : > { %2946 = vmatprep.mubr.f32.mxu0 %v1232_v4  ;;  %v4281_v4 = vld [vmem:[#allocation8 + $0x468] sm:$0xff]  ;;  %6471 = vmatprep.subr.bf16.mxu1 %v9258_v62 }
 0x30d   : > { %v6636_v20 = vpack.c.bf16 %v4281_v4, %v4280_v57  ;;  %6635 = vmatpush3.bf16.msra.mxu0 %v6632_v8  ;;  %v1237_v57 = vld [vmem:[#allocation2 + $0x189] sm:$0xff]  ;;  %v1238_v8 = vld [vmem:[#allocation2 + $0x199] sm:$0xff] }
 0x30f   : > { %2947 = vmatmul.mubr.f32.gmra.mrb[80].mxu0 %v1168_v63  ;;  %6637 = vmatprep.subr.bf16.mxu0 %v6636_v20  ;;  %v4283_v63 = vld [vmem:[#allocation8 + $0x478] sm:$0xff] }
 0x310   : > { %2951 = vmatprep.mubr.f32.mxu0 %v1233_v22  ;;  %v6640_v22 = vpack.c.bf16 %v4283_v63, %v4282_v41  ;;  %6473 = vmatpush1.bf16.msra.mxu1 %v6472_v10  ;;  %v4181_v63 = vld [vmem:[#allocation8 + $0x148] sm:$0xff] }
 0x311   : > { %6639 = vmatpush3.bf16.msra.mxu0 %v6636_v20  ;;  %6474 = vmatprep.subr.bf16.mxu1 %v9258_v62  ;;  %v1239_v20 = vld [vmem:[#allocation2 + $0x1a1] sm:$0xff]  ;;  %v4185_v10 = vld [vmem:[#allocation8 + $0x168] sm:$0xff] }
 0x312   : > { %6641 = vmatprep.subr.bf16.mxu0 %v6640_v22 }
 0x313   : > { %2952 = vmatmul.mubr.f32.gmra.mrb[82].mxu0 %v1169_v17  ;;  %v4176_v17 = vld [vmem:[#allocation8 + $0x120] sm:$0xff] }
 0x314   : > { %2956 = vmatprep.mubr.f32.mxu0 %v1234_v16  ;;  %v4177_v16 = vld [vmem:[#allocation8 + $0x128] sm:$0xff] }
 0x315   : > { %6643 = vmatpush3.bf16.msra.mxu0 %v6640_v22  ;;  %v6475_v4 = vpack.c.bf16 %v4177_v16, %v4176_v17  ;;  %v4188_v17 = vld [vmem:[#allocation8 + $0x180] sm:$0xff]  ;;  %v4189_v16 = vld [vmem:[#allocation8 + $0x188] sm:$0xff] }
 0x317   : > { %2957 = vmatmul.mubr.f32.gmra.mrb[84].mxu0 %v1170_v5  ;;  %6476 = vmatpush1.bf16.msra.mxu1 %v6475_v4  ;;  %v4178_v5 = vld [vmem:[#allocation8 + $0x130] sm:$0xff]  ;;  %v6493_v4 = vpack.c.bf16 %v4189_v16, %v4188_v17  ;;  %v4200_v16 = vld [vmem:[#allocation8 + $0x1e0] sm:$0xff] }
 0x318   : > { %2961 = vmatprep.mubr.f32.mxu0 %v1235_v27  ;;  %6477 = vmatprep.subr.bf16.mxu1 %v9258_v62  ;;  %v4179_v27 = vld [vmem:[#allocation8 + $0x138] sm:$0xff] }
 0x319   : > { %v6478_v41 = vpack.c.bf16 %v4179_v27, %v4178_v5  ;;  %v4191_v5 = vld [vmem:[#allocation8 + $0x198] sm:$0xff] }
 0x31b   : > { %2962 = vmatmul.mubr.f32.gmra.mrb[86].mxu0 %v1171_v25  ;;  %6479 = vmatpush1.bf16.msra.mxu1 %v6478_v41  ;;  %v4184_v25 = vld [vmem:[#allocation8 + $0x160] sm:$0xff] }
 0x31c   : > { %2966 = vmatprep.mubr.f32.mxu0 %v1236_v56  ;;  %6480 = vmatprep.subr.bf16.mxu1 %v9258_v62  ;;  %v6487_v56 = vpack.c.bf16 %v4185_v10, %v4184_v25  ;;  %v4192_v41 = vld [vmem:[#allocation8 + $0x1a0] sm:$0xff]  ;;  %v4197_v25 = vld [vmem:[#allocation8 + $0x1c8] sm:$0xff] }
 0x31f   : > { %2967 = vmatmul.mubr.f32.gmra.mrb[88].mxu0 %v8131_v24  ;;  %v4180_v24 = vld [vmem:[#allocation8 + $0x140] sm:$0xff] }
 0x320   : > { %2971 = vmatprep.mubr.f32.mxu0 %v1237_v57  ;;  %v6481_v22 = vpack.c.bf16 %v4181_v63, %v4180_v24  ;;  %v4187_v57 = vld [vmem:[#allocation8 + $0x178] sm:$0xff]  ;;  %v4193_v24 = vld [vmem:[#allocation8 + $0x1a8] sm:$0xff] }
 0x321   : > { %v6499_v63 = vpack.c.bf16 %v4193_v24, %v4192_v41 }
 0x322   : > { %6482 = vmatpush1.bf16.msra.mxu1 %v6481_v22  ;;  %v4194_v22 = vld [vmem:[#allocation8 + $0x1b0] sm:$0xff] }
 0x323   : > { %2972 = vmatmul.mubr.f32.gmra.mrb[90].mxu0 %v8141_v30  ;;  %6483 = vmatprep.subr.bf16.mxu1 %v9258_v62  ;;  %v4182_v30 = vld [vmem:[#allocation8 + $0x150] sm:$0xff] }
 0x324   : > { %2976 = vmatprep.mubr.f32.mxu0 %v1238_v8  ;;  %v6484_v45 = vpack.c.bf16 %v4183_v51, %v4182_v30  ;;  %v4195_v30 = vld [vmem:[#allocation8 + $0x1b8] sm:$0xff] }
 0x325   : > { %v6502_v51 = vpack.c.bf16 %v4195_v30, %v4194_v22  ;;  %v4203_v22 = vld [vmem:[#allocation8 + $0x1f8] sm:$0xff] }
 0x326   : > { %6485 = vmatpush1.bf16.msra.mxu1 %v6484_v45  ;;  %v4196_v45 = vld [vmem:[#allocation8 + $0x1c0] sm:$0xff] }
 0x327   : > { %2977 = vmatmul.mubr.f32.gmra.mrb[92].mxu0 %v8338_v6  ;;  %6486 = vmatprep.subr.bf16.mxu1 %v9258_v62  ;;  %v6505_v10 = vpack.c.bf16 %v4197_v25, %v4196_v45 }
 0x328   : > { %2981 = vmatprep.mubr.f32.mxu0 %v1239_v20  ;;  %v4190_v20 = vld [vmem:[#allocation8 + $0x190] sm:$0xff] }
 0x329   : > { %v6496_v27 = vpack.c.bf16 %v4191_v5, %v4190_v20  ;;  %v8367_v5 = vld [vmem:[%s9140_s2] ss:$0 sm:$0xff] }
 0x32a   : > { %6488 = vmatpush1.bf16.msra.mxu1 %v6487_v56  ;;  %v4198_v56 = vld [vmem:[#allocation8 + $0x1d0] sm:$0xff] }
 0x32b   : > { %2982 = vmatmul.mubr.f32.gmra.mrb[94].mxu0 %v8338_v6  ;;  %6489 = vmatprep.subr.bf16.mxu1 %v9258_v62  ;;  %v4186_v6 = vld [vmem:[#allocation8 + $0x170] sm:$0xff] }
 0x32c   : > { %v6490_v8 = vpack.c.bf16 %v4187_v57, %v4186_v6  ;;  %v4199_v6 = vld [vmem:[#allocation8 + $0x1d8] sm:$0xff] }
 0x32d   : > { %v6508_v57 = vpack.c.bf16 %v4199_v6, %v4198_v56 }
 0x32e   : > { %6491 = vmatpush1.bf16.msra.mxu1 %v6490_v8 }
 0x32f   : > { %6492 = vmatprep.subr.bf16.mxu1 %v9258_v62 }
 0x332   : > { %6494 = vmatpush1.bf16.msra.mxu1 %v6493_v4  ;;  %v4201_v4 = vld [vmem:[#allocation8 + $0x1e8] sm:$0xff] }
 0x333   : > { %6495 = vmatprep.subr.bf16.mxu1 %v9258_v62  ;;  %v6511_v20 = vpack.c.bf16 %v4201_v4, %v4200_v16 }
 0x336   : > { %6497 = vmatpush1.bf16.msra.mxu1 %v6496_v27 }
 0x337   : > { %6498 = vmatprep.subr.bf16.mxu1 %v9258_v62 }
 0x33a   : > { %6500 = vmatpush1.bf16.msra.mxu1 %v6499_v63  ;;  %v4202_v63 = vld [vmem:[#allocation8 + $0x1f0] sm:$0xff] }
 0x33b   : > { %6501 = vmatprep.subr.bf16.mxu1 %v9258_v62  ;;  %v6514_v30 = vpack.c.bf16 %v4203_v22, %v4202_v63 }
 0x33e   : > { %6503 = vmatpush1.bf16.msra.mxu1 %v6502_v51 }
 0x33f   : > { %6504 = vmatprep.subr.bf16.mxu1 %v9258_v62 }
 0x342   : > { %6506 = vmatpush1.bf16.msra.mxu1 %v6505_v10 }
 0x343   : > { %6507 = vmatprep.subr.bf16.mxu1 %v9258_v62 }
 0x346   : > { %6509 = vmatpush1.bf16.msra.mxu1 %v6508_v57 }
 0x347   : > { %6510 = vmatprep.subr.bf16.mxu1 %v9258_v62 }
 0x34a   : > { %6512 = vmatpush1.bf16.msra.mxu1 %v6511_v20 }
 0x34b   : > { %6513 = vmatprep.subr.bf16.mxu1 %v9258_v62 }
 0x34e   : > { %6515 = vmatpush1.bf16.msra.mxu1 %v6514_v30 }
 0x34f   : > { %6516 = vmatprep.subr.bf16.mxu1 %v9258_v62 }
 0x368   : > { %v8359_v8 = vpop.f32.mrb[62].mxu1 }
 0x369   : > { %v8361_v17 = vpop.f32.mrb[63].mxu1 }
 0x382   : > { %v2828_v27 = vpop.f32.mrb[32].mxu0 }
 0x383   : > { %v6644_v41 = vadd.f32 %v8367_v5, %v2828_v27  ;;  %v2830_v24 = vpop.f32.mrb[33].mxu0 }
 0x385   : > { %v3054_v51 = vadd.f32 %v6644_v41, %v8207_v54 }
 0x386   : > { %v2833_v45 = vpop.f32.mrb[34].mxu0 }
 0x387   : > { %v3212_v25 = vmax.f32 %v3054_v51, 0.0  ;;  %v6645_v10 = vadd.f32 %v8367_v5, %v2833_v45  ;;  %v2835_v56 = vpop.f32.mrb[35].mxu0 }
 0x389   : > { %3244 = vst [vmem:[#allocation2 + $0x19] sm:$0xff] %v3212_v25  ;;  %v3059_v6 = vadd.f32 %v6645_v10, %v8204_v48  ;;  %4365 = vmatprep.mubr.f32.mxu1 %v3212_v25 }
 0x38a   : > { %v2838_v57 = vpop.f32.mrb[36].mxu0 }
 0x38b   : > { %v3213_v16 = vmax.f32 %v3059_v6, 0.0  ;;  %v6646_v4 = vadd.f32 %v8367_v5, %v2838_v57  ;;  %v2840_v20 = vpop.f32.mrb[37].mxu0 }
 0x38d   : > { %3245 = vst [vmem:[#allocation2 + $0x21] sm:$0xff] %v3213_v16  ;;  %v3064_v54 = vadd.f32 %v6646_v4, %v8214_v35 }
 0x38e   : > { %v2843_v27 = vpop.f32.mrb[38].mxu0 }
 0x38f   : > { %v3214_v41 = vmax.f32 %v3064_v54, 0.0  ;;  %v6647_v24 = vadd.f32 %v8367_v5, %v2843_v27  ;;  %v2845_v63 = vpop.f32.mrb[39].mxu0 }
 0x390   : > { %v8378_v22 = vld [vmem:[#allocation2 + $0x18] sm:$0xff] }
 0x391   : > { %3246 = vst [vmem:[#allocation2 + $0x31] sm:$0xff] %v3214_v41  ;;  %v3069_v30 = vadd.f32 %v6647_v24, %v8211_v52  ;;  %4366 = vmatmul.mubr.f32.gmra.mrb[68].mxu1 %v8378_v22 }
 0x392   : > { %v2848_v48 = vpop.f32.mrb[40].mxu0  ;;  %4370 = vmatprep.mubr.f32.mxu1 %v3213_v16 }
 0x393   : > { %v3215_v51 = vmax.f32 %v3069_v30, 0.0  ;;  %v6648_v45 = vadd.f32 %v8367_v5, %v2848_v48  ;;  %v2850_v25 = vpop.f32.mrb[41].mxu0 }
 0x394   : > { %v8383_v10 = vld [vmem:[#allocation2 + $0x20] sm:$0xff] }
 0x395   : > { %3247 = vst [vmem:[#allocation2 + $0x39] sm:$0xff] %v3215_v51  ;;  %v3074_v35 = vadd.f32 %v6648_v45, %v8221_v23  ;;  %4371 = vmatmul.mubr.f32.gmra.mrb[70].mxu1 %v8383_v10 }
 0x396   : > { %v2853_v56 = vpop.f32.mrb[42].mxu0  ;;  %4375 = vmatprep.mubr.f32.mxu1 %v3214_v41 }
 0x397   : > { %v3216_v6 = vmax.f32 %v3074_v35, 0.0  ;;  %v6649_v52 = vadd.f32 %v8367_v5, %v2853_v56  ;;  %v2855_v57 = vpop.f32.mrb[43].mxu0 }
 0x398   : > { %v8388_v4 = vld [vmem:[#allocation2 + $0x30] sm:$0xff] }
 0x399   : > { %3248 = vst [vmem:[#allocation2 + $0x49] sm:$0xff] %v3216_v6  ;;  %v3079_v16 = vadd.f32 %v6649_v52, %v8218_v38  ;;  %4376 = vmatmul.mubr.f32.gmra.mrb[72].mxu1 %v8388_v4 }
 0x39a   : > { %v2858_v20 = vpop.f32.mrb[44].mxu0  ;;  %4380 = vmatprep.mubr.f32.mxu1 %v3215_v51 }
 0x39b   : > { %v3217_v54 = vmax.f32 %v3079_v16, 0.0  ;;  %v6650_v23 = vadd.f32 %v8367_v5, %v2858_v20  ;;  %v2860_v27 = vpop.f32.mrb[45].mxu0 }
 0x39c   : > { %v8393_v24 = vld [vmem:[#allocation2 + $0x32] sm:$0xff]  ;;  %v8397_v63 = vld [vmem:[#allocation2 + $0x3a] sm:$0xff] }
 0x39d   : > { %v8395_v41 = vld [vmem:[#allocation2 + $0x38] sm:$0xff]  ;;  %3249 = vst [vmem:[#allocation2 + $0x51] sm:$0xff] %v3217_v54  ;;  %v3084_v30 = vadd.f32 %v6650_v23, %v8228_v29  ;;  %6116 = vmatprep.mubr.f32.mxu0 %v8393_v24 }
 0x39e   : > { %4381 = vmatmul.mubr.f32.gmra.mrb[74].mxu1 %v8395_v41  ;;  %v2863_v38 = vpop.f32.mrb[46].mxu0  ;;  %6117 = vmatmul.mubr.f32.vlgmr.msra.gmra.mrb[96].mxu0 %v8397_v63 }
 0x39f   : > { %4385 = vmatprep.mubr.f32.mxu1 %v3216_v6  ;;  %v3218_v48 = vmax.f32 %v3084_v30, 0.0  ;;  %v6651_v51 = vadd.f32 %v8367_v5, %v2863_v38  ;;  %v2865_v45 = vpop.f32.mrb[47].mxu0 }
 0x3a0   : > { %v8404_v25 = vld [vmem:[#allocation2 + $0x48] sm:$0xff] }
 0x3a1   : > { %3250 = vst [vmem:[#allocation2 + $0x61] sm:$0xff] %v3218_v48  ;;  %v3089_v35 = vadd.f32 %v6651_v51, %v8225_v36 }
 0x3a2   : > { %4386 = vmatmul.mubr.f32.gmra.mrb[76].mxu1 %v8404_v25  ;;  %v2868_v29 = vpop.f32.mrb[48].mxu0 }
 0x3a3   : > { %4390 = vmatprep.mubr.f32.mxu1 %v3217_v54  ;;  %v3219_v56 = vmax.f32 %v3089_v35, 0.0  ;;  %v6652_v52 = vadd.f32 %v8367_v5, %v2868_v29  ;;  %v2870_v57 = vpop.f32.mrb[49].mxu0 }
 0x3a4   : > { %v8409_v16 = vld [vmem:[#allocation2 + $0x4a] sm:$0xff]  ;;  %v8413_v20 = vld [vmem:[#allocation2 + $0x52] sm:$0xff] }
 0x3a5   : > { %v8411_v6 = vld [vmem:[#allocation2 + $0x50] sm:$0xff]  ;;  %3251 = vst [vmem:[#allocation2 + $0x69] sm:$0xff] %v3219_v56  ;;  %v3094_v23 = vadd.f32 %v6652_v52, %v8235_v11  ;;  %6119 = vmatprep.mubr.f32.mxu0 %v8409_v16 }
 0x3a6   : > { %4391 = vmatmul.mubr.f32.gmra.mrb[78].mxu1 %v8411_v6  ;;  %v2873_v36 = vpop.f32.mrb[50].mxu0  ;;  %6120 = vmatmul.mubr.f32.gmra.mrb[98].mxu0 %v8413_v20 }
 0x3a7   : > { %4395 = vmatprep.mubr.f32.mxu1 %v3218_v48  ;;  %v3220_v54 = vmax.f32 %v3094_v23, 0.0  ;;  %v6653_v27 = vadd.f32 %v8367_v5, %v2873_v36  ;;  %v2875_v30 = vpop.f32.mrb[51].mxu0 }
 0x3a8   : > { %v8420_v38 = vld [vmem:[#allocation2 + $0x60] sm:$0xff] }
 0x3a9   : > { %3252 = vst [vmem:[#allocation2 + $0x79] sm:$0xff] %v3220_v54  ;;  %v3099_v51 = vadd.f32 %v6653_v27, %v8232_v59 }
 0x3aa   : > { %4396 = vmatmul.mubr.f32.gmra.mrb[80].mxu1 %v8420_v38  ;;  %v2878_v11 = vpop.f32.mrb[52].mxu0 }
 0x3ab   : > { %4400 = vmatprep.mubr.f32.mxu1 %v3219_v56  ;;  %v3221_v45 = vmax.f32 %v3099_v51, 0.0  ;;  %v6654_v35 = vadd.f32 %v8367_v5, %v2878_v11  ;;  %v2880_v29 = vpop.f32.mrb[53].mxu0 }
 0x3ac   : > { %v8425_v52 = vld [vmem:[#allocation2 + $0x62] sm:$0xff]  ;;  %v8429_v57 = vld [vmem:[#allocation2 + $0x6a] sm:$0xff] }
 0x3ad   : > { %v8427_v48 = vld [vmem:[#allocation2 + $0x68] sm:$0xff]  ;;  %3253 = vst [vmem:[#allocation2 + $0x81] sm:$0xff] %v3221_v45  ;;  %v3104_v23 = vadd.f32 %v6654_v35, %v8242_v1  ;;  %6122 = vmatprep.mubr.f32.mxu0 %v8425_v52 }
 0x3ae   : > { %4401 = vmatmul.mubr.f32.gmra.mrb[82].mxu1 %v8427_v48  ;;  %v2883_v59 = vpop.f32.mrb[54].mxu0  ;;  %6123 = vmatmul.mubr.f32.gmra.mrb[100].mxu0 %v8429_v57 }
 0x3af   : > { %4405 = vmatprep.mubr.f32.mxu1 %v3220_v54  ;;  %v3222_v56 = vmax.f32 %v3104_v23, 0.0  ;;  %v6655_v36 = vadd.f32 %v8367_v5, %v2883_v59  ;;  %v2885_v27 = vpop.f32.mrb[55].mxu0 }
 0x3b0   : > { %v8436_v30 = vld [vmem:[#allocation2 + $0x78] sm:$0xff] }
 0x3b1   : > { %3254 = vst [vmem:[#allocation2 + $0x91] sm:$0xff] %v3222_v56  ;;  %v3109_v51 = vadd.f32 %v6655_v36, %v8239_v49 }
 0x3b2   : > { %4406 = vmatmul.mubr.f32.gmra.mrb[84].mxu1 %v8436_v30  ;;  %v2888_v1 = vpop.f32.mrb[56].mxu0 }
 0x3b3   : > { %4410 = vmatprep.mubr.f32.mxu1 %v3221_v45  ;;  %v3223_v11 = vmax.f32 %v3109_v51, 0.0  ;;  %v6656_v35 = vadd.f32 %v8367_v5, %v2888_v1  ;;  %v2890_v29 = vpop.f32.mrb[57].mxu0 }
 0x3b4   : > { %v8441_v32 = vld [vmem:[#allocation2 + $0x7a] sm:$0xff]  ;;  %v8445_v23 = vld [vmem:[#allocation2 + $0x82] sm:$0xff] }
 0x3b5   : > { %v8443_v54 = vld [vmem:[#allocation2 + $0x80] sm:$0xff]  ;;  %3255 = vst [vmem:[#allocation2 + $0x99] sm:$0xff] %v3223_v11  ;;  %v3114_v59 = vadd.f32 %v6656_v35, %v8249_v60  ;;  %6125 = vmatprep.mubr.f32.mxu0 %v8441_v32 }
 0x3b6   : > { %4411 = vmatmul.mubr.f32.gmra.mrb[86].mxu1 %v8443_v54  ;;  %v2893_v49 = vpop.f32.mrb[58].mxu0  ;;  %6126 = vmatmul.mubr.f32.gmra.mrb[102].mxu0 %v8445_v23 }
 0x3b7   : > { %4415 = vmatprep.mubr.f32.mxu1 %v3222_v56  ;;  %v3224_v45 = vmax.f32 %v3114_v59, 0.0  ;;  %v6657_v36 = vadd.f32 %v8367_v5, %v2893_v49  ;;  %v2895_v27 = vpop.f32.mrb[59].mxu0 }
 0x3b8   : > { %v8452_v51 = vld [vmem:[#allocation2 + $0x90] sm:$0xff] }
 0x3b9   : > { %3256 = vst [vmem:[#allocation2 + $0xa9] sm:$0xff] %v3224_v45  ;;  %v3119_v1 = vadd.f32 %v6657_v36, %v8246_v18 }
 0x3ba   : > { %4416 = vmatmul.mubr.f32.gmra.mrb[88].mxu1 %v8452_v51  ;;  %v2898_v60 = vpop.f32.mrb[60].mxu0 }
 0x3bb   : > { %4420 = vmatprep.mubr.f32.mxu1 %v3223_v11  ;;  %v3225_v35 = vmax.f32 %v3119_v1, 0.0  ;;  %v6658_v29 = vadd.f32 %v8367_v5, %v2898_v60  ;;  %v2900_v50 = vpop.f32.mrb[61].mxu0 }
 0x3bc   : > { %v8457_v13 = vld [vmem:[#allocation2 + $0x92] sm:$0xff]  ;;  %v8461_v59 = vld [vmem:[#allocation2 + $0x9a] sm:$0xff] }
 0x3bd   : > { %v8459_v56 = vld [vmem:[#allocation2 + $0x98] sm:$0xff]  ;;  %3257 = vst [vmem:[#allocation2 + $0xb1] sm:$0xff] %v3225_v35  ;;  %v3124_v49 = vadd.f32 %v6658_v29, %v8256_v2  ;;  %6128 = vmatprep.mubr.f32.mxu0 %v8457_v13 }
 0x3be   : > { %4421 = vmatmul.mubr.f32.gmra.mrb[90].mxu1 %v8459_v56  ;;  %v2903_v18 = vpop.f32.mrb[62].mxu0  ;;  %6129 = vmatmul.mubr.f32.gmra.mrb[104].mxu0 %v8461_v59 }
 0x3bf   : > { %4425 = vmatprep.mubr.f32.mxu1 %v3224_v45  ;;  %v3226_v11 = vmax.f32 %v3124_v49, 0.0  ;;  %v6659_v50 = vadd.f32 %v8367_v5, %v2903_v18  ;;  %v2905_v36 = vpop.f32.mrb[63].mxu0 }
 0x3c0   : > { %v8468_v27 = vld [vmem:[#allocation2 + $0xa8] sm:$0xff] }
 0x3c1   : > { %3258 = vst [vmem:[#allocation2 + $0xc1] sm:$0xff] %v3226_v11  ;;  %v3129_v1 = vadd.f32 %v6659_v50, %v8253_v61 }
 0x3c2   : > { %4426 = vmatmul.mubr.f32.gmra.mrb[92].mxu1 %v8468_v27  ;;  %v2908_v2 = vpop.f32.mrb[64].mxu0 }
 0x3c3   : > { %4430 = vmatprep.mubr.f32.mxu1 %v3225_v35  ;;  %v3227_v60 = vmax.f32 %v3129_v1, 0.0  ;;  %v6660_v29 = vadd.f32 %v8367_v5, %v2908_v2  ;;  %v2910_v46 = vpop.f32.mrb[65].mxu0 }
 0x3c4   : > { %v8473_v28 = vld [vmem:[#allocation2 + $0xaa] sm:$0xff]  ;;  %v8477_v49 = vld [vmem:[#allocation2 + $0xb2] sm:$0xff] }
 0x3c5   : > { %v8475_v45 = vld [vmem:[#allocation2 + $0xb0] sm:$0xff]  ;;  %3259 = vst [vmem:[#allocation2 + $0xc9] sm:$0xff] %v3227_v60  ;;  %v3134_v18 = vadd.f32 %v6660_v29, %v8262_v7  ;;  %6131 = vmatprep.mubr.f32.mxu0 %v8473_v28 }
 0x3c6   : > { %4431 = vmatmul.mubr.f32.gmra.mrb[94].mxu1 %v8475_v45  ;;  %v2913_v61 = vpop.f32.mrb[66].mxu0  ;;  %6132 = vmatmul.mubr.f32.gmra.mrb[106].mxu0 %v8477_v49 }
 0x3c7   : > { %4435 = vmatprep.mubr.f32.mxu1 %v3226_v11  ;;  %v3228_v35 = vmax.f32 %v3134_v18, 0.0  ;;  %v6661_v46 = vadd.f32 %v8367_v5, %v2913_v61  ;;  %v2915_v50 = vpop.f32.mrb[67].mxu0 }
 0x3c8   : > { %v8484_v36 = vld [vmem:[#allocation2 + $0xc0] sm:$0xff] }
 0x3c9   : > { %3260 = vst [vmem:[#allocation2 + $0xd9] sm:$0xff] %v3228_v35  ;;  %v3139_v1 = vadd.f32 %v6661_v46, %v8259_v37 }
 0x3ca   : > { %4436 = vmatmul.mubr.f32.gmra.mrb[96].mxu1 %v8484_v36  ;;  %v2918_v7 = vpop.f32.mrb[68].mxu0 }
 0x3cb   : > { %4440 = vmatprep.mubr.f32.mxu1 %v3227_v60  ;;  %v3229_v2 = vmax.f32 %v3139_v1, 0.0  ;;  %v6662_v29 = vadd.f32 %v8367_v5, %v2918_v7  ;;  %v2920_v15 = vpop.f32.mrb[69].mxu0 }
 0x3cc   : > { %v8489_v26 = vld [vmem:[#allocation2 + $0xc2] sm:$0xff]  ;;  %v8493_v18 = vld [vmem:[#allocation2 + $0xca] sm:$0xff] }
 0x3cd   : > { %v8491_v11 = vld [vmem:[#allocation2 + $0xc8] sm:$0xff]  ;;  %3261 = vst [vmem:[#allocation2 + $0xe1] sm:$0xff] %v3229_v2  ;;  %v3144_v61 = vadd.f32 %v6662_v29, %v8269_v9  ;;  %6134 = vmatprep.mubr.f32.mxu0 %v8489_v26 }
 0x3ce   : > { %4441 = vmatmul.mubr.f32.gmra.mrb[98].mxu1 %v8491_v11  ;;  %v2923_v37 = vpop.f32.mrb[70].mxu0  ;;  %6135 = vmatmul.mubr.f32.gmra.mrb[108].mxu0 %v8493_v18 }
 0x3cf   : > { %4445 = vmatprep.mubr.f32.mxu1 %v3228_v35  ;;  %v3230_v60 = vmax.f32 %v3144_v61, 0.0  ;;  %v6663_v15 = vadd.f32 %v8367_v5, %v2923_v37  ;;  %v2925_v46 = vpop.f32.mrb[71].mxu0 }
 0x3d0   : > { %v8500_v50 = vld [vmem:[#allocation2 + $0xd8] sm:$0xff] }
 0x3d1   : > { %3262 = vst [vmem:[#allocation2 + $0xf1] sm:$0xff] %v3230_v60  ;;  %v3149_v1 = vadd.f32 %v6663_v15, %v8266_v43 }
 0x3d2   : > { %4446 = vmatmul.mubr.f32.gmra.mrb[100].mxu1 %v8500_v50  ;;  %v2928_v9 = vpop.f32.mrb[72].mxu0 }
 0x3d3   : > { %4450 = vmatprep.mubr.f32.mxu1 %v3229_v2  ;;  %v3231_v7 = vmax.f32 %v3149_v1, 0.0  ;;  %v6664_v29 = vadd.f32 %v8367_v5, %v2928_v9  ;;  %v2930_v12 = vpop.f32.mrb[73].mxu0 }
 0x3d4   : > { %v8505_v3 = vld [vmem:[#allocation2 + $0xda] sm:$0xff]  ;;  %v8509_v61 = vld [vmem:[#allocation2 + $0xe2] sm:$0xff] }
 0x3d5   : > { %v8507_v35 = vld [vmem:[#allocation2 + $0xe0] sm:$0xff]  ;;  %3263 = vst [vmem:[#allocation2 + $0xf9] sm:$0xff] %v3231_v7  ;;  %v3154_v37 = vadd.f32 %v6664_v29, %v8275_v40  ;;  %6137 = vmatprep.mubr.f32.mxu0 %v8505_v3 }
 0x3d6   : > { %4451 = vmatmul.mubr.f32.gmra.mrb[102].mxu1 %v8507_v35  ;;  %v2933_v43 = vpop.f32.mrb[74].mxu0  ;;  %6138 = vmatmul.mubr.f32.gmra.mrb[110].mxu0 %v8509_v61 }
 0x3d7   : > { %4455 = vmatprep.mubr.f32.mxu1 %v3230_v60  ;;  %v3232_v2 = vmax.f32 %v3154_v37, 0.0  ;;  %v6665_v12 = vadd.f32 %v8367_v5, %v2933_v43  ;;  %v2935_v15 = vpop.f32.mrb[75].mxu0 }
 0x3d8   : > { %v8516_v46 = vld [vmem:[#allocation2 + $0xf0] sm:$0xff] }
 0x3d9   : > { %3264 = vst [vmem:[#allocation2 + $0x109] sm:$0xff] %v3232_v2  ;;  %v3159_v1 = vadd.f32 %v6665_v12, %v8272_v31 }
 0x3da   : > { %4456 = vmatmul.mubr.f32.gmra.mrb[104].mxu1 %v8516_v46  ;;  %v2938_v40 = vpop.f32.mrb[76].mxu0 }
 0x3db   : > { %4460 = vmatprep.mubr.f32.mxu1 %v3231_v7  ;;  %v3233_v9 = vmax.f32 %v3159_v1, 0.0  ;;  %v6666_v29 = vadd.f32 %v8367_v5, %v2938_v40  ;;  %v2940_v39 = vpop.f32.mrb[77].mxu0 }
 0x3dc   : > { %v8521_v55 = vld [vmem:[#allocation2 + $0xf2] sm:$0xff]  ;;  %v8525_v37 = vld [vmem:[#allocation2 + $0xfa] sm:$0xff] }
 0x3dd   : > { %v8523_v60 = vld [vmem:[#allocation2 + $0xf8] sm:$0xff]  ;;  %3265 = vst [vmem:[#allocation2 + $0x111] sm:$0xff] %v3233_v9  ;;  %v3164_v43 = vadd.f32 %v6666_v29, %v8281_v21  ;;  %6140 = vmatprep.mubr.f32.mxu0 %v8521_v55 }
 0x3de   : > { %4461 = vmatmul.mubr.f32.gmra.mrb[106].mxu1 %v8523_v60  ;;  %v2943_v31 = vpop.f32.mrb[78].mxu0  ;;  %6141 = vmatmul.mubr.f32.gmra.mrb[112].mxu0 %v8525_v37 }
 0x3df   : > { %4465 = vmatprep.mubr.f32.mxu1 %v3232_v2  ;;  %v3234_v7 = vmax.f32 %v3164_v43, 0.0  ;;  %v6667_v39 = vadd.f32 %v8367_v5, %v2943_v31  ;;  %v2945_v12 = vpop.f32.mrb[79].mxu0 }
 0x3e0   : > { %v8532_v15 = vld [vmem:[#allocation2 + $0x108] sm:$0xff] }
 0x3e1   : > { %3266 = vst [vmem:[#allocation2 + $0x121] sm:$0xff] %v3234_v7  ;;  %v3169_v1 = vadd.f32 %v6667_v39, %v8278_v34 }
 0x3e2   : > { %4466 = vmatmul.mubr.f32.gmra.mrb[108].mxu1 %v8532_v15  ;;  %v2948_v21 = vpop.f32.mrb[80].mxu0 }
 0x3e3   : > { %4470 = vmatprep.mubr.f32.mxu1 %v3233_v9  ;;  %v3235_v40 = vmax.f32 %v3169_v1, 0.0  ;;  %v6668_v29 = vadd.f32 %v8367_v5, %v2948_v21  ;;  %v2950_v0 = vpop.f32.mrb[81].mxu0 }
 0x3e4   : > { %v8537_v44 = vld [vmem:[#allocation2 + $0x10a] sm:$0xff]  ;;  %v8541_v43 = vld [vmem:[#allocation2 + $0x112] sm:$0xff] }
 0x3e5   : > { %9327 = vst [vmem:[#allocation19_spill] sm:$0xff] %v8537_v44  ;;  %v8539_v2 = vld [vmem:[#allocation2 + $0x110] sm:$0xff]  ;;  %3267 = vst [vmem:[#allocation2 + $0x129] sm:$0xff] %v3235_v40  ;;  %v3174_v31 = vadd.f32 %v6668_v29, %v8286_v14  ;;  %6143 = vmatprep.mubr.f32.mxu0 %v8537_v44 }
 0x3e6   : > { %4471 = vmatmul.mubr.f32.gmra.mrb[110].mxu1 %v8539_v2  ;;  %v2953_v34 = vpop.f32.mrb[82].mxu0  ;;  %6144 = vmatmul.mubr.f32.gmra.mrb[114].mxu0 %v8541_v43 }
 0x3e7   : > { %4475 = vmatprep.mubr.f32.mxu1 %v3234_v7  ;;  %v3236_v9 = vmax.f32 %v3174_v31, 0.0  ;;  %v6669_v0 = vadd.f32 %v8367_v5, %v2953_v34  ;;  %v2955_v39 = vpop.f32.mrb[83].mxu0 }
 0x3e8   : > { %v8548_v12 = vld [vmem:[#allocation2 + $0x120] sm:$0xff] }
 0x3e9   : > { %3268 = vst [vmem:[#allocation2 + $0x139] sm:$0xff] %v3236_v9  ;;  %v3179_v1 = vadd.f32 %v6669_v0, %v8283_v47 }
 0x3ea   : > { %4476 = vmatmul.mubr.f32.gmra.mrb[112].mxu1 %v8548_v12  ;;  %v2958_v14 = vpop.f32.mrb[84].mxu0 }
 0x3eb   : > { %4480 = vmatprep.mubr.f32.mxu1 %v3235_v40  ;;  %v3237_v21 = vmax.f32 %v3179_v1, 0.0  ;;  %v6670_v29 = vadd.f32 %v8367_v5, %v2958_v14  ;;  %v2960_v53 = vpop.f32.mrb[85].mxu0 }
 0x3ec   : > { %v8553_v44 = vld [vmem:[#allocation2 + $0x122] sm:$0xff]  ;;  %v8557_v31 = vld [vmem:[#allocation2 + $0x12a] sm:$0xff] }
 0x3ed   : > { %9328 = vst [vmem:[#allocation22_spill] sm:$0xff] %v8553_v44  ;;  %v8555_v7 = vld [vmem:[#allocation2 + $0x128] sm:$0xff]  ;;  %9329 = vst [vmem:[#allocation21_spill] sm:$0xff] %v8557_v31  ;;  %v3184_v34 = vadd.f32 %v6670_v29, %v8292_v58  ;;  %6146 = vmatprep.mubr.f32.mxu0 %v8553_v44 }
 0x3ee   : > { %3269 = vst [vmem:[#allocation2 + $0x141] sm:$0xff] %v3237_v21  ;;  %4481 = vmatmul.mubr.f32.gmra.mrb[114].mxu1 %v8555_v7  ;;  %v2963_v47 = vpop.f32.mrb[86].mxu0  ;;  %6147 = vmatmul.mubr.f32.gmra.mrb[116].mxu0 %v8557_v31 }
 0x3ef   : > { %4485 = vmatprep.mubr.f32.mxu1 %v3236_v9  ;;  %v3238_v40 = vmax.f32 %v3184_v34, 0.0  ;;  %v6671_v53 = vadd.f32 %v8367_v5, %v2963_v47  ;;  %v2965_v0 = vpop.f32.mrb[87].mxu0 }
 0x3f0   : > { %v8564_v39 = vld [vmem:[#allocation2 + $0x138] sm:$0xff] }
 0x3f1   : > { %3270 = vst [vmem:[#allocation2 + $0x151] sm:$0xff] %v3238_v40  ;;  %v3189_v1 = vadd.f32 %v6671_v53, %v8289_v19 }
 0x3f2   : > { %4486 = vmatmul.mubr.f32.gmra.mrb[116].mxu1 %v8564_v39  ;;  %v2968_v58 = vpop.f32.mrb[88].mxu0 }
 0x3f3   : > { %4490 = vmatprep.mubr.f32.mxu1 %v3237_v21  ;;  %v8568_v14 = vmax.f32 %v3189_v1, 0.0  ;;  %v6672_v29 = vadd.f32 %v8367_v5, %v2968_v58  ;;  %v2970_v44 = vpop.f32.mrb[89].mxu0 }
 0x3f5   : > { %9330 = vst [vmem:[#allocation24_spill] sm:$0xff] %v8568_v14  ;;  %v8571_v31 = vld [vmem:[#allocation2 + $0x13a] sm:$0xff]  ;;  %v8575_v34 = vld [vmem:[#allocation2 + $0x142] sm:$0xff]  ;;  %3271 = vst [vmem:[#allocation2 + $0x159] sm:$0xff] %v8568_v14  ;;  %v3194_v47 = vadd.f32 %v6672_v29, %v8297_v33 }
 0x3f6   : > { %v8573_v9 = vld [vmem:[#allocation2 + $0x140] sm:$0xff]  ;;  %6149 = vmatprep.mubr.f32.mxu0 %v8571_v31  ;;  %v2973_v19 = vpop.f32.mrb[90].mxu0 }
 0x3f7   : > { %4491 = vmatmul.mubr.f32.gmra.mrb[118].mxu1 %v8573_v9  ;;  %6150 = vmatmul.mubr.f32.gmra.mrb[118].mxu0 %v8575_v34  ;;  %v8582_v21 = vmax.f32 %v3194_v47, 0.0  ;;  %v6673_v44 = vadd.f32 %v8367_v5, %v2973_v19  ;;  %v2975_v53 = vpop.f32.mrb[91].mxu0 }
 0x3f8   : > { %4495 = vmatprep.mubr.f32.mxu1 %v3238_v40  ;;  %v8585_v0 = vld [vmem:[#allocation2 + $0x150] sm:$0xff] }
 0x3f9   : > { %9331 = vst [vmem:[#allocation23_spill] sm:$0xff] %v8582_v21  ;;  %3272 = vst [vmem:[#allocation2 + $0x169] sm:$0xff] %v8582_v21  ;;  %v3199_v1 = vadd.f32 %v6673_v44, %v8294_v42 }
 0x3fa   : > { %v2978_v33 = vpop.f32.mrb[92].mxu0 }
 0x3fb   : > { %4496 = vmatmul.mubr.f32.gmra.mrb[120].mxu1 %v8585_v0  ;;  %v8591_v58 = vmax.f32 %v3199_v1, 0.0  ;;  %v6674_v40 = vadd.f32 %v8367_v5, %v2978_v33  ;;  %v2980_v29 = vpop.f32.mrb[93].mxu0 }
 0x3fc   : > { %4500 = vmatprep.mubr.f32.mxu1 %v8568_v14  ;;  %v8594_v47 = vld [vmem:[#allocation2 + $0x152] sm:$0xff]  ;;  %v8598_v53 = vld [vmem:[#allocation2 + $0x15a] sm:$0xff] }
 0x3fd   : > { %9332 = vst [vmem:[#allocation26_spill] sm:$0xff] %v8591_v58  ;;  %9333 = vst [vmem:[#allocation25_spill] sm:$0xff] %v8594_v47  ;;  %v8596_v19 = vld [vmem:[#allocation2 + $0x158] sm:$0xff]  ;;  %v8602_v42 = vadd.f32 %v6674_v40, %v8361_v17  ;;  %6152 = vmatprep.mubr.f32.mxu0 %v8594_v47 }
 0x3fe   : > { %9334 = vst [vmem:[#allocation27_spill] sm:$0xff] %v8598_v53  ;;  %3273 = vst [vmem:[#allocation2 + $0x171] sm:$0xff] %v8591_v58  ;;  %v2983_v44 = vpop.f32.mrb[94].mxu0  ;;  %6153 = vmatmul.mubr.f32.gmra.mrb[120].mxu0 %v8598_v53  ;;  %v4205_v53 = vld [vmem:[#allocation8 + $0x208] sm:$0xff] }
 0x3ff   : > { %9335 = vst [vmem:[#allocation28_spill] sm:$0xff] %v8602_v42  ;;  %4501 = vmatmul.mubr.f32.gmra.mrb[122].mxu1 %v8596_v19  ;;  %v9203_v1 = vmax.f32 %v8602_v42, 0.0  ;;  %v6675_v33 = vadd.f32 %v8367_v5, %v2983_v44  ;;  %v2985_v29 = vpop.f32.mrb[95].mxu0  ;;  %v3405_v42 = vld [vmem:[#allocation2 + $0xa] sm:$0xff] }
 0x400   : > { %4505 = vmatprep.mubr.f32.mxu1 %v8582_v21  ;;  %v8610_v14 = vld [vmem:[#allocation2 + $0x168] sm:$0xff]  ;;  %v4204_v21 = vld [vmem:[#allocation8 + $0x200] sm:$0xff]  ;;  %v4206_v29 = vld [vmem:[#allocation8 + $0x210] sm:$0xff] }
 0x401   : > { %3274 = vst [vmem:[#allocation2 + $0x181] sm:$0xff] %v9203_v1  ;;  %v8615_v17 = vadd.f32 %v6675_v33, %v8359_v8  ;;  %v3404_v8 = vld [vmem:[#allocation2 + $0x2] sm:$0xff]  ;;  %v6517_v33 = vpack.c.bf16 %v4205_v53, %v4204_v21 }
 0x402   : > { %v4207_v1 = vld [vmem:[#allocation8 + $0x218] sm:$0xff]  ;;  %v4210_v21 = vld [vmem:[#allocation8 + $0x230] sm:$0xff] }
 0x403   : > { %9336 = vst [vmem:[#allocation29_spill] sm:$0xff] %v8615_v17  ;;  %4506 = vmatmul.mubr.f32.gmra.mrb[124].mxu1 %v8610_v14  ;;  %v9205_v40 = vmax.f32 %v8615_v17, 0.0  ;;  %v4208_v17 = vld [vmem:[#allocation8 + $0x220] sm:$0xff]  ;;  %v4211_v53 = vld [vmem:[#allocation8 + $0x238] sm:$0xff] }
 0x404   : > { %4510 = vmatprep.mubr.f32.mxu1 %v8591_v58 }
 0x405   : > { %v8620_v47 = vld [vmem:[#allocation2 + $0x16a] sm:$0xff]  ;;  %v8624_v44 = vld [vmem:[#allocation2 + $0x172] sm:$0xff]  ;;  %3275 = vst [vmem:[#allocation2 + $0x189] sm:$0xff] %v9205_v40  ;;  %v6520_v40 = vpack.c.bf16 %v4207_v1, %v4206_v29  ;;  %v6526_v1 = vpack.c.bf16 %v4211_v53, %v4210_v21 }
 0x406   : > { %9337 = vst [vmem:[#allocation30_spill] sm:$0xff] %v8620_v47  ;;  %v8622_v5 = vld [vmem:[#allocation2 + $0x170] sm:$0xff]  ;;  %9338 = vst [vmem:[#allocation32_spill] sm:$0xff] %v8624_v44  ;;  %6155 = vmatprep.mubr.f32.mxu0 %v8620_v47  ;;  %v4217_v29 = vld [vmem:[#allocation8 + $0x268] sm:$0xff] }
 0x407   : > { %4511 = vmatmul.mubr.f32.gmra.mrb[126].mxu1 %v8622_v5  ;;  %6156 = vmatmul.mubr.f32.gmra.mrb[122].mxu0 %v8624_v44  ;;  %v4209_v44 = vld [vmem:[#allocation8 + $0x228] sm:$0xff]  ;;  %v4219_v21 = vld [vmem:[#allocation8 + $0x278] sm:$0xff] }
 0x408   : > { %4580 = vmatprep.mubr.f32.mxu1 %v8378_v22  ;;  %v6523_v22 = vpack.c.bf16 %v4209_v44, %v4208_v17  ;;  %v4215_v44 = vld [vmem:[#allocation8 + $0x258] sm:$0xff]  ;;  %v4221_v53 = vld [vmem:[#allocation8 + $0x288] sm:$0xff] }
 0x40b   : > { %4581 = vmatmul.mubr.f32.vlgmr.msra.gmra.mrb[64].mxu1 %v3404_v8  ;;  %v8646_v8 = vld [vmem:[#allocation2 + $0x22] sm:$0xff] }
 0x40c   : > { %6518 = vmatpush1.bf16.msra.mxu1 %v6517_v33  ;;  %4585 = vmatprep.mubr.f32.mxu1 %v8383_v10  ;;  %v8634_v58 = vld [vmem:[#allocation2 + $0x182] sm:$0xff]  ;;  %v8636_v47 = vld [vmem:[#allocation2 + $0x18a] sm:$0xff]  ;;  %v8641_v10 = vld [vmem:[#allocation2 + $0x1a] sm:$0xff] }
 0x40d   : > { %6519 = vmatprep.subr.bf16.mxu1 %v9258_v62  ;;  %6158 = vmatprep.mubr.f32.mxu0 %v8634_v58  ;;  %v4216_v33 = vld [vmem:[#allocation8 + $0x260] sm:$0xff] }
 0x40e   : > { %6159 = vmatmul.mubr.f32.gmra.mrb[124].mxu0 %v8636_v47 }
 0x40f   : > { %4586 = vmatmul.mubr.f32.gmra.mrb[66].mxu1 %v3405_v42  ;;  %v4212_v42 = vld [vmem:[#allocation8 + $0x240] sm:$0xff] }
 0x410   : > { %4590 = vmatprep.mubr.f32.mxu1 %v8388_v4  ;;  %6521 = vmatpush1.bf16.msra.mxu1 %v6520_v40  ;;  %v4213_v4 = vld [vmem:[#allocation8 + $0x248] sm:$0xff]  ;;  %v4214_v40 = vld [vmem:[#allocation8 + $0x250] sm:$0xff] }
 0x411   : > { %6522 = vmatprep.subr.bf16.mxu1 %v9258_v62  ;;  %v6529_v17 = vpack.c.bf16 %v4213_v4, %v4212_v42  ;;  %v4225_v42 = vld [vmem:[#allocation8 + $0x2a8] sm:$0xff]  ;;  %v4227_v4 = vld [vmem:[#allocation8 + $0x2b8] sm:$0xff] }
 0x413   : > { %4591 = vmatmul.mubr.f32.gmra.mrb[68].mxu1 %v8641_v10 }
 0x414   : > { %4595 = vmatprep.mubr.f32.mxu1 %v8395_v41  ;;  %6524 = vmatpush1.bf16.msra.mxu1 %v6523_v22  ;;  %v6532_v41 = vpack.c.bf16 %v4215_v44, %v4214_v40  ;;  %v4218_v22 = vld [vmem:[#allocation8 + $0x270] sm:$0xff]  ;;  %v4231_v40 = vld [vmem:[#allocation8 + $0x2d8] sm:$0xff]  ;;  %v4233_v44 = vld [vmem:[#allocation8 + $0x2e8] sm:$0xff] }
 0x415   : > { %6525 = vmatprep.subr.bf16.mxu1 %v9258_v62 }
 0x417   : > { %4596 = vmatmul.mubr.f32.gmra.mrb[70].mxu1 %v8646_v8 }
 0x418   : > { %4600 = vmatprep.mubr.f32.mxu1 %v8404_v25  ;;  %6527 = vmatpush1.bf16.msra.mxu1 %v6526_v1  ;;  %v6535_v25 = vpack.c.bf16 %v4217_v29, %v4216_v33  ;;  %v4223_v1 = vld [vmem:[#allocation8 + $0x298] sm:$0xff]  ;;  %v4240_v33 = vld [vmem:[#allocation8 + $0x320] sm:$0xff]  ;;  %v4241_v29 = vld [vmem:[#allocation8 + $0x328] sm:$0xff] }
 0x419   : > { %6528 = vmatprep.subr.bf16.mxu1 %v9258_v62 }
 0x41b   : > { %4601 = vmatmul.mubr.f32.gmra.mrb[72].mxu1 %v8393_v24  ;;  %v6538_v24 = vpack.c.bf16 %v4219_v21, %v4218_v22  ;;  %v6571_v22 = vpack.c.bf16 %v4241_v29, %v4240_v33  ;;  %v4242_v21 = vld [vmem:[#allocation8 + $0x330] sm:$0xff] }
 0x41c   : > { %4605 = vmatprep.mubr.f32.mxu1 %v8411_v6  ;;  %6530 = vmatpush1.bf16.msra.mxu1 %v6529_v17  ;;  %v4220_v6 = vld [vmem:[#allocation8 + $0x280] sm:$0xff]  ;;  %v4229_v17 = vld [vmem:[#allocation8 + $0x2c8] sm:$0xff] }
 0x41d   : > { %6531 = vmatprep.subr.bf16.mxu1 %v9258_v62  ;;  %v3604_v33 = vld [vmem:[#allocation2 + $0x7a] sm:$0xff] }
 0x41f   : > { %4606 = vmatmul.mubr.f32.gmra.mrb[74].mxu1 %v8397_v63  ;;  %v6541_v63 = vpack.c.bf16 %v4221_v53, %v4220_v6  ;;  %v8743_v6 = vld [vmem:[#allocation2 + $0x31] sm:$0xff] }
 0x420   : > { %4610 = vmatprep.mubr.f32.mxu1 %v8420_v38  ;;  %6533 = vmatpush1.bf16.msra.mxu1 %v6532_v41  ;;  %v4222_v38 = vld [vmem:[#allocation8 + $0x290] sm:$0xff]  ;;  %v4235_v41 = vld [vmem:[#allocation8 + $0x2f8] sm:$0xff] }
 0x421   : > { %6534 = vmatprep.subr.bf16.mxu1 %v9258_v62 }
 0x423   : > { %4611 = vmatmul.mubr.f32.gmra.mrb[76].mxu1 %v8409_v16  ;;  %v6544_v16 = vpack.c.bf16 %v4223_v1, %v4222_v38  ;;  %v4244_v1 = vld [vmem:[#allocation8 + $0x340] sm:$0xff] }
 0x424   : > { %4615 = vmatprep.mubr.f32.mxu1 %v8427_v48  ;;  %6536 = vmatpush1.bf16.msra.mxu1 %v6535_v25  ;;  %v4224_v48 = vld [vmem:[#allocation8 + $0x2a0] sm:$0xff]  ;;  %v3533_v25 = vld [vmem:[#allocation2 + $0x21] sm:$0xff] }
 0x425   : > { %6537 = vmatprep.subr.bf16.mxu1 %v9258_v62 }
 0x427   : > { %4616 = vmatmul.mubr.f32.gmra.mrb[78].mxu1 %v8413_v20  ;;  %v6547_v20 = vpack.c.bf16 %v4225_v42, %v4224_v48  ;;  %v8751_v48 = vld [vmem:[#allocation2 + $0x39] sm:$0xff]  ;;  %v3600_v42 = vld [vmem:[#allocation2 + $0x4a] sm:$0xff] }
 0x428   : > { %4620 = vmatprep.mubr.f32.mxu1 %v8436_v30  ;;  %6539 = vmatpush1.bf16.msra.mxu1 %v6538_v24  ;;  %v4226_v30 = vld [vmem:[#allocation8 + $0x2b0] sm:$0xff]  ;;  %v4243_v24 = vld [vmem:[#allocation8 + $0x338] sm:$0xff] }
 0x429   : > { %6540 = vmatprep.subr.bf16.mxu1 %v9258_v62  ;;  %v6574_v38 = vpack.c.bf16 %v4243_v24, %v4242_v21  ;;  %v3605_v24 = vld [vmem:[#allocation2 + $0x82] sm:$0xff] }
 0x42b   : > { %4621 = vmatmul.mubr.f32.gmra.mrb[80].mxu1 %v8425_v52  ;;  %v6550_v52 = vpack.c.bf16 %v4227_v4, %v4226_v30  ;;  %v4246_v30 = vld [vmem:[#allocation8 + $0x350] sm:$0xff]  ;;  %v4247_v4 = vld [vmem:[#allocation8 + $0x358] sm:$0xff] }
 0x42c   : > { %4625 = vmatprep.mubr.f32.mxu1 %v8443_v54  ;;  %6542 = vmatpush1.bf16.msra.mxu1 %v6541_v63  ;;  %v4228_v54 = vld [vmem:[#allocation8 + $0x2c0] sm:$0xff] }
 0x42d   : > { %6543 = vmatprep.subr.bf16.mxu1 %v9258_v62 }
 0x42f   : > { %4626 = vmatmul.mubr.f32.gmra.mrb[82].mxu1 %v8429_v57  ;;  %v6553_v57 = vpack.c.bf16 %v4229_v17, %v4228_v54  ;;  %v3601_v17 = vld [vmem:[#allocation2 + $0x52] sm:$0xff] }
 0x430   : > { %4630 = vmatprep.mubr.f32.mxu1 %v8452_v51  ;;  %6545 = vmatpush1.bf16.msra.mxu1 %v6544_v16  ;;  %v4230_v51 = vld [vmem:[#allocation8 + $0x2d0] sm:$0xff]  ;;  %v4245_v16 = vld [vmem:[#allocation8 + $0x348] sm:$0xff] }
 0x431   : > { %6546 = vmatprep.subr.bf16.mxu1 %v9258_v62 }
 0x433   : > { %4631 = vmatmul.mubr.f32.gmra.mrb[84].mxu1 %v8441_v32  ;;  %v6556_v32 = vpack.c.bf16 %v4231_v40, %v4230_v51  ;;  %v6580_v51 = vpack.c.bf16 %v4247_v4, %v4246_v30  ;;  %v4248_v40 = vld [vmem:[#allocation8 + $0x360] sm:$0xff]  ;;  %v4258_v4 = vld [vmem:[#allocation8 + $0x3b0] sm:$0xff] }
 0x434   : > { %4635 = vmatprep.mubr.f32.mxu1 %v8459_v56  ;;  %6548 = vmatpush1.bf16.msra.mxu1 %v6547_v20  ;;  %v4232_v56 = vld [vmem:[#allocation8 + $0x2e0] sm:$0xff]  ;;  %v6577_v20 = vpack.c.bf16 %v4245_v16, %v4244_v1  ;;  %v4257_v16 = vld [vmem:[#allocation8 + $0x3a8] sm:$0xff] }
 0x435   : > { %6549 = vmatprep.subr.bf16.mxu1 %v9258_v62  ;;  %v4256_v1 = vld [vmem:[#allocation8 + $0x3a0] sm:$0xff] }
 0x436   : > { %v6595_v30 = vpack.c.bf16 %v4257_v16, %v4256_v1  ;;  %v4264_v1 = vld [vmem:[#allocation8 + $0x3e0] sm:$0xff]  ;;  %v4265_v16 = vld [vmem:[#allocation8 + $0x3e8] sm:$0xff] }
 0x437   : > { %4636 = vmatmul.mubr.f32.gmra.mrb[86].mxu1 %v8445_v23  ;;  %v6559_v23 = vpack.c.bf16 %v4233_v44, %v4232_v56  ;;  %v8763_v56 = vld [vmem:[#allocation2 + $0x51] sm:$0xff]  ;;  %v3602_v44 = vld [vmem:[#allocation2 + $0x62] sm:$0xff] }
 0x438   : > { %4640 = vmatprep.mubr.f32.mxu1 %v8468_v27  ;;  %6551 = vmatpush1.bf16.msra.mxu1 %v6550_v52  ;;  %v4234_v27 = vld [vmem:[#allocation8 + $0x2f0] sm:$0xff]  ;;  %v8755_v52 = vld [vmem:[#allocation2 + $0x49] sm:$0xff] }
 0x439   : > { %6552 = vmatprep.subr.bf16.mxu1 %v9258_v62 }
 0x43b   : > { %4641 = vmatmul.mubr.f32.gmra.mrb[88].mxu1 %v8457_v13  ;;  %v6562_v13 = vpack.c.bf16 %v4235_v41, %v4234_v27  ;;  %v4250_v27 = vld [vmem:[#allocation8 + $0x370] sm:$0xff]  ;;  %v4251_v41 = vld [vmem:[#allocation8 + $0x378] sm:$0xff] }
 0x43c   : > { %4645 = vmatprep.mubr.f32.mxu1 %v8475_v45  ;;  %6554 = vmatpush1.bf16.msra.mxu1 %v6553_v57 }
 0x43d   : > { %6555 = vmatprep.subr.bf16.mxu1 %v9258_v62 }
 0x43f   : > { %4646 = vmatmul.mubr.f32.gmra.mrb[90].mxu1 %v8461_v59 }
 0x440   : > { %4650 = vmatprep.mubr.f32.mxu1 %v8484_v36  ;;  %6557 = vmatpush1.bf16.msra.mxu1 %v6556_v32  ;;  %v9342_v36 = vld [vmem:[#allocation25_spill] sm:$0xff]  ;;  %v4249_v32 = vld [vmem:[#allocation8 + $0x368] sm:$0xff] }
 0x441   : > { %6558 = vmatprep.subr.bf16.mxu1 %v9258_v62 }
 0x443   : > { %4651 = vmatmul.mubr.f32.gmra.mrb[92].mxu1 %v8473_v28  ;;  %v9341_v28 = vld [vmem:[#allocation21_spill] sm:$0xff] }
 0x444   : > { %4655 = vmatprep.mubr.f32.mxu1 %v8491_v11  ;;  %6560 = vmatpush1.bf16.msra.mxu1 %v6559_v23  ;;  %v6583_v23 = vpack.c.bf16 %v4249_v32, %v4248_v40  ;;  %v3607_v32 = vld [vmem:[#allocation2 + $0x9a] sm:$0xff] }
 0x445   : > { %6561 = vmatprep.subr.bf16.mxu1 %v9258_v62 }
 0x447   : > { %4656 = vmatmul.mubr.f32.gmra.mrb[94].mxu1 %v8477_v49 }
 0x448   : > { %4660 = vmatprep.mubr.f32.mxu1 %v8500_v50  ;;  %6563 = vmatpush1.bf16.msra.mxu1 %v6562_v13  ;;  %v8723_v50 = vld [vmem:[#allocation2 + $0x180] sm:$0xff] }
 0x449   : > { %6564 = vmatprep.subr.bf16.mxu1 %v9258_v62  ;;  %v8767_v13 = vld [vmem:[#allocation2 + $0x61] sm:$0xff] }
 0x44b   : > { %4661 = vmatmul.mubr.f32.gmra.mrb[96].mxu1 %v8489_v26  ;;  %v9339_v26 = vld [vmem:[#allocation19_spill] sm:$0xff] }
 0x44c   : > { %4665 = vmatprep.mubr.f32.mxu1 %v8507_v35 }
 0x44f   : > { %4666 = vmatmul.mubr.f32.gmra.mrb[98].mxu1 %v8493_v18  ;;  %v9343_v18 = vld [vmem:[#allocation27_spill] sm:$0xff] }
 0x450   : > { %4670 = vmatprep.mubr.f32.mxu1 %v8516_v46  ;;  %v8729_v46 = vld [vmem:[#allocation2 + $0x188] sm:$0xff] }
 0x453   : > { %4671 = vmatmul.mubr.f32.gmra.mrb[100].mxu1 %v8505_v3  ;;  %v9340_v3 = vld [vmem:[#allocation22_spill] sm:$0xff] }
 0x454   : > { %4675 = vmatprep.mubr.f32.mxu1 %v8523_v60 }
 0x457   : > { %4676 = vmatmul.mubr.f32.gmra.mrb[102].mxu1 %v8509_v61  ;;  %v9344_v61 = vld [vmem:[#allocation30_spill] sm:$0xff] }
 0x458   : > { %4680 = vmatprep.mubr.f32.mxu1 %v8532_v15  ;;  %v4236_v15 = vld [vmem:[#allocation8 + $0x300] sm:$0xff] }
 0x45b   : > { %4681 = vmatmul.mubr.f32.gmra.mrb[104].mxu1 %v8521_v55 }
 0x45c   : > { %4685 = vmatprep.mubr.f32.mxu1 %v8539_v2  ;;  %v4237_v2 = vld [vmem:[#allocation8 + $0x308] sm:$0xff] }
 0x45f   : > { %4686 = vmatmul.mubr.f32.gmra.mrb[106].mxu1 %v8525_v37 }
 0x460   : > { %4690 = vmatprep.mubr.f32.mxu1 %v8548_v12  ;;  %v9345_v12 = vld [vmem:[#allocation32_spill] sm:$0xff] }
 0x463   : > { %4691 = vmatmul.mubr.f32.gmra.mrb[108].mxu1 %v9339_v26 }
 0x464   : > { %4695 = vmatprep.mubr.f32.mxu1 %v8555_v7  ;;  %v6565_v7 = vpack.c.bf16 %v4237_v2, %v4236_v15  ;;  %v3603_v2 = vld [vmem:[#allocation2 + $0x6a] sm:$0xff] }
 0x467   : > { %4696 = vmatmul.mubr.f32.gmra.mrb[110].mxu1 %v8541_v43 }
 0x468   : > { %4700 = vmatprep.mubr.f32.mxu1 %v8564_v39  ;;  %v4238_v39 = vld [vmem:[#allocation8 + $0x310] sm:$0xff] }
 0x46b   : > { %4701 = vmatmul.mubr.f32.gmra.mrb[112].mxu1 %v9340_v3 }
 0x46c   : > { %4705 = vmatprep.mubr.f32.mxu1 %v8573_v9  ;;  %v3532_v9 = vld [vmem:[#allocation2 + $0x19] sm:$0xff] }
 0x46f   : > { %4706 = vmatmul.mubr.f32.gmra.mrb[114].mxu1 %v9341_v28 }
 0x470   : > { %4710 = vmatprep.mubr.f32.mxu1 %v8585_v0 }
 0x471   : > { %v8708_v59 = vpop.f32.mrb[96].mxu0 }
 0x472   : > { %v8711_v45 = vpop.f32.mrb[97].mxu0 }
 0x473   : > { %4711 = vmatmul.mubr.f32.gmra.mrb[116].mxu1 %v8571_v31 }
 0x474   : > { %4715 = vmatprep.mubr.f32.mxu1 %v8596_v19 }
 0x477   : > { %4716 = vmatmul.mubr.f32.gmra.mrb[118].mxu1 %v8575_v34 }
 0x478   : > { %4720 = vmatprep.mubr.f32.mxu1 %v8610_v14  ;;  %v4239_v14 = vld [vmem:[#allocation8 + $0x318] sm:$0xff] }
 0x479   : > { %v8716_v49 = vpop.f32.mrb[98].mxu0 }
 0x47a   : > { %v8719_v11 = vpop.f32.mrb[99].mxu0 }
 0x47b   : > { %4721 = vmatmul.mubr.f32.gmra.mrb[120].mxu1 %v9342_v36 }
 0x47c   : > { %4725 = vmatprep.mubr.f32.mxu1 %v8622_v5  ;;  %v6568_v5 = vpack.c.bf16 %v4239_v14, %v4238_v39  ;;  %v6586_v39 = vpack.c.bf16 %v4251_v41, %v4250_v27  ;;  %v4252_v14 = vld [vmem:[#allocation8 + $0x380] sm:$0xff]  ;;  %v4261_v41 = vld [vmem:[#allocation8 + $0x3c8] sm:$0xff] }
 0x47d   : > { %v4260_v27 = vld [vmem:[#allocation8 + $0x3c0] sm:$0xff] }
 0x47f   : > { %4726 = vmatmul.mubr.f32.gmra.mrb[122].mxu1 %v9343_v18 }
 0x480   : > { %4730 = vmatprep.mubr.f32.mxu1 %v8723_v50 }
 0x481   : > { %v8726_v35 = vpop.f32.mrb[100].mxu0 }
 0x482   : > { %v8731_v60 = vpop.f32.mrb[101].mxu0 }
 0x483   : > { %4731 = vmatmul.mubr.f32.gmra.mrb[124].mxu1 %v9344_v61 }
 0x484   : > { %4735 = vmatprep.mubr.f32.mxu1 %v8729_v46 }
 0x487   : > { %4736 = vmatmul.mubr.f32.gmra.mrb[126].mxu1 %v9345_v12 }
 0x488   : > { %4805 = vmatprep.mubr.f32.mxu1 %v8641_v10  ;;  %v3598_v10 = vld [vmem:[#allocation2 + $0x32] sm:$0xff] }
 0x489   : > { %v8736_v0 = vpop.f32.mrb[102].mxu0 }
 0x48a   : > { %v8738_v19 = vpop.f32.mrb[103].mxu0 }
 0x48b   : > { %4806 = vmatmul.mubr.f32.vlgmr.msra.gmra.mrb[64].mxu1 %v3532_v9  ;;  %v4253_v9 = vld [vmem:[#allocation8 + $0x388] sm:$0xff] }
 0x48c   : > { %6566 = vmatpush1.bf16.msra.mxu1 %v6565_v7  ;;  %4810 = vmatprep.mubr.f32.mxu1 %v8646_v8  ;;  %v3599_v8 = vld [vmem:[#allocation2 + $0x3a] sm:$0xff]  ;;  %v6589_v29 = vpack.c.bf16 %v4253_v9, %v4252_v14  ;;  %v6601_v14 = vpack.c.bf16 %v4261_v41, %v4260_v27  ;;  %v3611_v41 = vld [vmem:[#allocation2 + $0xca] sm:$0xff] }
 0x48d   : > { %6567 = vmatprep.subr.bf16.mxu1 %v9258_v62  ;;  %v4262_v9 = vld [vmem:[#allocation8 + $0x3d0] sm:$0xff] }
 0x48f   : > { %4811 = vmatmul.mubr.f32.gmra.mrb[66].mxu1 %v3533_v25  ;;  %v4254_v25 = vld [vmem:[#allocation8 + $0x390] sm:$0xff] }
 0x490   : > { %4815 = vmatprep.mubr.f32.mxu1 %v3598_v10  ;;  %6569 = vmatpush1.bf16.msra.mxu1 %v6568_v5  ;;  %v8775_v5 = vld [vmem:[#allocation2 + $0x69] sm:$0xff] }
 0x491   : > { %6570 = vmatprep.subr.bf16.mxu1 %v9258_v62  ;;  %v8745_v53 = vpop.f32.mrb[104].mxu0  ;;  %v4255_v10 = vld [vmem:[#allocation8 + $0x398] sm:$0xff] }
 0x492   : > { %v8748_v63 = vpop.f32.mrb[105].mxu0 }
 0x493   : > { %4816 = vmatmul.mubr.f32.gmra.mrb[68].mxu1 %v8743_v6 }
 0x494   : > { %4820 = vmatprep.mubr.f32.mxu1 %v3599_v8  ;;  %6572 = vmatpush1.bf16.msra.mxu1 %v6571_v22  ;;  %v8779_v22 = vld [vmem:[#allocation2 + $0x79] sm:$0xff] }
 0x495   : > { %6573 = vmatprep.subr.bf16.mxu1 %v9258_v62 }
 0x497   : > { %4821 = vmatmul.mubr.f32.gmra.mrb[70].mxu1 %v8751_v48 }
 0x498   : > { %4825 = vmatprep.mubr.f32.mxu1 %v3600_v42  ;;  %6575 = vmatpush1.bf16.msra.mxu1 %v6574_v38  ;;  %v6592_v38 = vpack.c.bf16 %v4255_v10, %v4254_v25  ;;  %v8787_v42 = vld [vmem:[#allocation2 + $0x81] sm:$0xff]  ;;  %v3609_v10 = vld [vmem:[#allocation2 + $0xb2] sm:$0xff] }
 0x499   : > { %6576 = vmatprep.subr.bf16.mxu1 %v9258_v62  ;;  %v8757_v54 = vpop.f32.mrb[106].mxu0 }
 0x49a   : > { %v8760_v57 = vpop.f32.mrb[107].mxu0 }
 0x49b   : > { %4826 = vmatmul.mubr.f32.gmra.mrb[72].mxu1 %v8755_v52 }
 0x49c   : > { %4830 = vmatprep.mubr.f32.mxu1 %v3601_v17  ;;  %6578 = vmatpush1.bf16.msra.mxu1 %v6577_v20  ;;  %v3606_v20 = vld [vmem:[#allocation2 + $0x92] sm:$0xff]  ;;  %v4259_v17 = vld [vmem:[#allocation8 + $0x3b8] sm:$0xff] }
 0x49d   : > { %6579 = vmatprep.subr.bf16.mxu1 %v9258_v62 }
 0x49f   : > { %4831 = vmatmul.mubr.f32.gmra.mrb[74].mxu1 %v8763_v56 }
 0x4a0   : > { %4835 = vmatprep.mubr.f32.mxu1 %v3602_v44  ;;  %6581 = vmatpush1.bf16.msra.mxu1 %v6580_v51  ;;  %v8791_v51 = vld [vmem:[#allocation2 + $0x91] sm:$0xff] }
 0x4a1   : > { %6582 = vmatprep.subr.bf16.mxu1 %v9258_v62  ;;  %v8769_v15 = vpop.f32.mrb[108].mxu0 }
 0x4a2   : > { %v8772_v7 = vpop.f32.mrb[109].mxu0 }
 0x4a3   : > { %4836 = vmatmul.mubr.f32.gmra.mrb[76].mxu1 %v8767_v13 }
 0x4a4   : > { %4840 = vmatprep.mubr.f32.mxu1 %v3603_v2  ;;  %6584 = vmatpush1.bf16.msra.mxu1 %v6583_v23  ;;  %v6598_v23 = vpack.c.bf16 %v4259_v17, %v4258_v4  ;;  %v8799_v2 = vld [vmem:[#allocation2 + $0x99] sm:$0xff]  ;;  %v6607_v4 = vpack.c.bf16 %v4265_v16, %v4264_v1  ;;  %v3613_v1 = vld [vmem:[#allocation2 + $0xe2] sm:$0xff] }
 0x4a5   : > { %6585 = vmatprep.subr.bf16.mxu1 %v9258_v62  ;;  %v4266_v17 = vld [vmem:[#allocation8 + $0x3f0] sm:$0xff] }
 0x4a7   : > { %4841 = vmatmul.mubr.f32.gmra.mrb[78].mxu1 %v8775_v5 }
 0x4a8   : > { %4845 = vmatprep.mubr.f32.mxu1 %v3604_v33  ;;  %6587 = vmatpush1.bf16.msra.mxu1 %v6586_v39  ;;  %v3608_v39 = vld [vmem:[#allocation2 + $0xaa] sm:$0xff] }
 0x4a9   : > { %6588 = vmatprep.subr.bf16.mxu1 %v9258_v62  ;;  %v8781_v21 = vpop.f32.mrb[110].mxu0  ;;  %v4263_v33 = vld [vmem:[#allocation8 + $0x3d8] sm:$0xff] }
 0x4aa   : > { %v8784_v8 = vpop.f32.mrb[111].mxu0 }
 0x4ab   : > { %4846 = vmatmul.mubr.f32.gmra.mrb[80].mxu1 %v8779_v22 }
 0x4ac   : > { %4850 = vmatprep.mubr.f32.mxu1 %v3605_v24  ;;  %6590 = vmatpush1.bf16.msra.mxu1 %v6589_v29  ;;  %v8803_v29 = vld [vmem:[#allocation2 + $0xa9] sm:$0xff] }
 0x4ad   : > { %6591 = vmatprep.subr.bf16.mxu1 %v9258_v62 }
 0x4af   : > { %4851 = vmatmul.mubr.f32.gmra.mrb[82].mxu1 %v8787_v42 }
 0x4b0   : > { %4855 = vmatprep.mubr.f32.mxu1 %v3606_v20  ;;  %6593 = vmatpush1.bf16.msra.mxu1 %v6592_v38  ;;  %v6604_v38 = vpack.c.bf16 %v4263_v33, %v4262_v9  ;;  %v8811_v20 = vld [vmem:[#allocation2 + $0xb1] sm:$0xff]  ;;  %v8823_v9 = vld [vmem:[#allocation2 + $0xc9] sm:$0xff]  ;;  %v3612_v33 = vld [vmem:[#allocation2 + $0xda] sm:$0xff] }
 0x4b1   : > { %6594 = vmatprep.subr.bf16.mxu1 %v9258_v62  ;;  %v8793_v40 = vpop.f32.mrb[112].mxu0 }
 0x4b2   : > { %v8796_v44 = vpop.f32.mrb[113].mxu0 }
 0x4b3   : > { %4856 = vmatmul.mubr.f32.gmra.mrb[84].mxu1 %v8791_v51 }
 0x4b4   : > { %4860 = vmatprep.mubr.f32.mxu1 %v3607_v32  ;;  %6596 = vmatpush1.bf16.msra.mxu1 %v6595_v30  ;;  %v3610_v30 = vld [vmem:[#allocation2 + $0xc2] sm:$0xff] }
 0x4b5   : > { %6597 = vmatprep.subr.bf16.mxu1 %v9258_v62  ;;  %v4267_v32 = vld [vmem:[#allocation8 + $0x3f8] sm:$0xff] }
 0x4b7   : > { %4861 = vmatmul.mubr.f32.gmra.mrb[86].mxu1 %v8799_v2 }
 0x4b8   : > { %4865 = vmatprep.mubr.f32.mxu1 %v3608_v39  ;;  %6599 = vmatpush1.bf16.msra.mxu1 %v6598_v23  ;;  %v8815_v23 = vld [vmem:[#allocation2 + $0xc1] sm:$0xff] }
 0x4b9   : > { %6600 = vmatprep.subr.bf16.mxu1 %v9258_v62  ;;  %v8805_v25 = vpop.f32.mrb[114].mxu0 }
 0x4ba   : > { %v8808_v24 = vpop.f32.mrb[115].mxu0 }
 0x4bb   : > { %4866 = vmatmul.mubr.f32.gmra.mrb[88].mxu1 %v8803_v29 }
 0x4bc   : > { %4870 = vmatprep.mubr.f32.mxu1 %v3609_v10  ;;  %6602 = vmatpush1.bf16.msra.mxu1 %v6601_v14  ;;  %v6610_v14 = vpack.c.bf16 %v4267_v32, %v4266_v17  ;;  %v8826_v10 = vld [vmem:[#allocation2 + $0xd9] sm:$0xff] }
 0x4bd   : > { %6603 = vmatprep.subr.bf16.mxu1 %v9258_v62  ;;  %v8845_v32 = vld [vmem:[#allocation2 + $0xf9] sm:$0xff] }
 0x4bf   : > { %4871 = vmatmul.mubr.f32.gmra.mrb[90].mxu1 %v8811_v20 }
 0x4c0   : > { %4875 = vmatprep.mubr.f32.mxu1 %v3610_v30  ;;  %6605 = vmatpush1.bf16.msra.mxu1 %v6604_v38  ;;  %v8833_v30 = vld [vmem:[#allocation2 + $0xe1] sm:$0xff] }
 0x4c1   : > { %6606 = vmatprep.subr.bf16.mxu1 %v9258_v62  ;;  %v8817_v27 = vpop.f32.mrb[116].mxu0 }
 0x4c2   : > { %v8820_v39 = vpop.f32.mrb[117].mxu0 }
 0x4c3   : > { %4876 = vmatmul.mubr.f32.gmra.mrb[92].mxu1 %v8815_v23 }
 0x4c4   : > { %4880 = vmatprep.mubr.f32.mxu1 %v3611_v41  ;;  %6608 = vmatpush1.bf16.msra.mxu1 %v6607_v4  ;;  %v8849_v41 = vld [vmem:[#allocation2 + $0x109] sm:$0xff] }
 0x4c5   : > { %6609 = vmatprep.subr.bf16.mxu1 %v9258_v62  ;;  %v8837_v62 = vld [vmem:[#allocation2 + $0xf1] sm:$0xff] }
 0x4c7   : > { %4881 = vmatmul.mubr.f32.gmra.mrb[94].mxu1 %v8823_v9 }
 0x4c8   : > { %4885 = vmatprep.mubr.f32.mxu1 %v3612_v33  ;;  %6611 = vmatpush1.bf16.msra.mxu1 %v6610_v14  ;;  %v8857_v33 = vld [vmem:[#allocation2 + $0x111] sm:$0xff] }
 0x4ca   : > { %v8828_v38 = vpop.f32.mrb[118].mxu0 }
 0x4cb   : > { %4886 = vmatmul.mubr.f32.gmra.mrb[96].mxu1 %v8826_v10  ;;  %v8831_v16 = vpop.f32.mrb[119].mxu0 }
 0x4cc   : > { %4890 = vmatprep.mubr.f32.mxu1 %v3613_v1 }
 0x4cf   : > { %4891 = vmatmul.mubr.f32.gmra.mrb[98].mxu1 %v8833_v30 }
 0x4d0   : > { %4895 = vmatprep.mubr.f32.mxu1 %v8521_v55 }
 0x4d1   : > { %v8839_v4 = vpop.f32.mrb[120].mxu0 }
 0x4d2   : > { %9346 = vst [vmem:[#allocation31_spill] sm:$0xff] %v8839_v4  ;;  %v8842_v17 = vpop.f32.mrb[121].mxu0  ;;  %v3819_v4 = vld [vmem:[#allocation2 + $0x1a2] sm:$0xff] }
 0x4d3   : > { %4896 = vmatmul.mubr.f32.gmra.mrb[100].mxu1 %v8837_v62 }
 0x4d4   : > { %4900 = vmatprep.mubr.f32.mxu1 %v8525_v37  ;;  %v8861_v37 = vld [vmem:[#allocation2 + $0x121] sm:$0xff] }
 0x4d7   : > { %4901 = vmatmul.mubr.f32.gmra.mrb[102].mxu1 %v8845_v32 }
 0x4d8   : > { %4905 = vmatprep.mubr.f32.mxu1 %v9339_v26 }
 0x4da   : > { %v8851_v14 = vpop.f32.mrb[122].mxu0 }
 0x4db   : > { %9347 = vst [vmem:[#allocation34_spill] sm:$0xff] %v8851_v14  ;;  %4906 = vmatmul.mubr.f32.gmra.mrb[104].mxu1 %v8849_v41  ;;  %v8854_v55 = vpop.f32.mrb[123].mxu0  ;;  %v8869_v14 = vld [vmem:[#allocation2 + $0x129] sm:$0xff] }
 0x4dc   : > { %9348 = vst [vmem:[#allocation33_spill] sm:$0xff] %v8854_v55  ;;  %4910 = vmatprep.mubr.f32.mxu1 %v8541_v43  ;;  %v8873_v43 = vld [vmem:[#allocation2 + $0x139] sm:$0xff] }
 0x4dd   : > { %v3818_v55 = vld [vmem:[#allocation2 + $0x19a] sm:$0xff] }
 0x4de   : > { %6161 = vmatprep.mubr.f32.mxu0 %v3818_v55  ;;  %v3684_v55 = vld [vmem:[#allocation2 + $0x150] sm:$0xff] }
 0x4df   : > { %4911 = vmatmul.mubr.f32.gmra.mrb[106].mxu1 %v8857_v33  ;;  %6162 = vmatmul.mubr.f32.gmra.mrb[126].mxu0 %v3819_v4  ;;  %v3664_v4 = vld [vmem:[#allocation2 + $0x60] sm:$0xff] }
 0x4e0   : > { %4915 = vmatprep.mubr.f32.mxu1 %v9340_v3  ;;  %v8877_v3 = vld [vmem:[#allocation2 + $0x141] sm:$0xff] }
 0x4e1   : > { %v8863_v1 = vpop.f32.mrb[124].mxu0 }
 0x4e2   : > { %9349 = vst [vmem:[#allocation36_spill] sm:$0xff] %v8863_v1  ;;  %v8866_v26 = vpop.f32.mrb[125].mxu0  ;;  %v8881_v1 = vld [vmem:[#allocation2 + $0x151] sm:$0xff] }
 0x4e3   : > { %4916 = vmatmul.mubr.f32.gmra.mrb[108].mxu1 %v8861_v37  ;;  %9350 = vst [vmem:[#allocation35_spill] sm:$0xff] %v8866_v26  ;;  %v9354_v26 = vld [vmem:[#allocation28_spill] sm:$0xff] }
 0x4e4   : > { %4920 = vmatprep.mubr.f32.mxu1 %v9341_v28  ;;  %v9351_v28 = vld [vmem:[#allocation24_spill] sm:$0xff] }
 0x4e7   : > { %4921 = vmatmul.mubr.f32.gmra.mrb[110].mxu1 %v8869_v14 }
 0x4e8   : > { %4925 = vmatprep.mubr.f32.mxu1 %v8571_v31  ;;  %v9352_v31 = vld [vmem:[#allocation23_spill] sm:$0xff] }
 0x4eb   : > { %4926 = vmatmul.mubr.f32.gmra.mrb[112].mxu1 %v8873_v43 }
 0x4ec   : > { %4930 = vmatprep.mubr.f32.mxu1 %v8575_v34  ;;  %v9353_v34 = vld [vmem:[#allocation26_spill] sm:$0xff] }
 0x4ef   : > { %4931 = vmatmul.mubr.f32.gmra.mrb[114].mxu1 %v8877_v3 }
 0x4f0   : > { %4935 = vmatprep.mubr.f32.mxu1 %v9342_v36  ;;  %v9355_v36 = vmax.f32 %v9354_v26, 0.0  ;;  %v3750_v26 = vld [vmem:[#allocation2 + $0x169] sm:$0xff] }
 0x4f3   : > { %4936 = vmatmul.mubr.f32.gmra.mrb[116].mxu1 %v8881_v1 }
 0x4f4   : > { %4940 = vmatprep.mubr.f32.mxu1 %v9343_v18  ;;  %v9356_v18 = vld [vmem:[#allocation29_spill] sm:$0xff] }
 0x4f7   : > { %4941 = vmatmul.mubr.f32.gmra.mrb[118].mxu1 %v9351_v28  ;;  %v9357_v28 = vmax.f32 %v9356_v18, 0.0  ;;  %v7163_v18 = vld [vmem:[#allocation2] sm:$0xff] }
 0x4f8   : > { %4945 = vmatprep.mubr.f32.mxu1 %v9344_v61  ;;  %v3660_v61 = vld [vmem:[#allocation2 + $0x30] sm:$0xff] }
 0x4fb   : > { %4946 = vmatmul.mubr.f32.gmra.mrb[120].mxu1 %v9352_v31  ;;  %v3751_v31 = vld [vmem:[#allocation2 + $0x171] sm:$0xff] }
 0x4fc   : > { %4950 = vmatprep.mubr.f32.mxu1 %v9345_v12  ;;  %v3661_v12 = vld [vmem:[#allocation2 + $0x38] sm:$0xff] }
 0x4ff   : > { %4951 = vmatmul.mubr.f32.gmra.mrb[122].mxu1 %v9353_v34  ;;  %v3752_v34 = vld [vmem:[#allocation2 + $0x181] sm:$0xff] }
 0x500   : > { %4955 = vmatprep.mubr.f32.mxu1 %v8634_v58  ;;  %v3662_v58 = vld [vmem:[#allocation2 + $0x48] sm:$0xff] }
 0x503   : > { %4956 = vmatmul.mubr.f32.gmra.mrb[124].mxu1 %v9355_v36  ;;  %v3755_v36 = vld [vmem:[#allocation2 + $0x1a1] sm:$0xff] }
 0x504   : > { %4960 = vmatprep.mubr.f32.mxu1 %v8636_v47  ;;  %v3663_v47 = vld [vmem:[#allocation2 + $0x50] sm:$0xff] }
 0x507   : > { %4961 = vmatmul.mubr.f32.gmra.mrb[126].mxu1 %v9357_v28 }
 0x508   : > { %5030 = vmatprep.mubr.f32.mxu1 %v8743_v6  ;;  %v3665_v6 = vld [vmem:[#allocation2 + $0x68] sm:$0xff] }
 0x50b   : > { %5031 = vmatmul.mubr.f32.vlgmr.msra.gmra.mrb[64].mxu1 %v3660_v61 }
 0x50c   : > { %5035 = vmatprep.mubr.f32.mxu1 %v8751_v48  ;;  %v3666_v48 = vld [vmem:[#allocation2 + $0x78] sm:$0xff] }
 0x50f   : > { %5036 = vmatmul.mubr.f32.gmra.mrb[66].mxu1 %v3661_v12 }
 0x510   : > { %5040 = vmatprep.mubr.f32.mxu1 %v8755_v52  ;;  %v3667_v52 = vld [vmem:[#allocation2 + $0x80] sm:$0xff] }
 0x513   : > { %5041 = vmatmul.mubr.f32.gmra.mrb[68].mxu1 %v3662_v58 }
 0x514   : > { %5045 = vmatprep.mubr.f32.mxu1 %v8763_v56  ;;  %v3668_v56 = vld [vmem:[#allocation2 + $0x90] sm:$0xff] }
 0x517   : > { %5046 = vmatmul.mubr.f32.gmra.mrb[70].mxu1 %v3663_v47 }
 0x518   : > { %5050 = vmatprep.mubr.f32.mxu1 %v8767_v13  ;;  %v3669_v13 = vld [vmem:[#allocation2 + $0x98] sm:$0xff] }
 0x51b   : > { %5051 = vmatmul.mubr.f32.gmra.mrb[72].mxu1 %v3664_v4 }
 0x51c   : > { %5055 = vmatprep.mubr.f32.mxu1 %v8775_v5  ;;  %v3670_v5 = vld [vmem:[#allocation2 + $0xa8] sm:$0xff] }
 0x51f   : > { %5056 = vmatmul.mubr.f32.gmra.mrb[74].mxu1 %v3665_v6  ;;  %v8940_v6 = vld [vmem:[%s9144_s6] ss:$0 sm:$0xff] }
 0x520   : > { %5060 = vmatprep.mubr.f32.mxu1 %v8779_v22  ;;  %v3671_v22 = vld [vmem:[#allocation2 + $0xb0] sm:$0xff] }
 0x523   : > { %5061 = vmatmul.mubr.f32.gmra.mrb[76].mxu1 %v3666_v48  ;;  %v9358_v48 = vld [vmem:[#allocation52_spill] sm:$0xff] }
 0x524   : > { %5065 = vmatprep.mubr.f32.mxu1 %v8787_v42  ;;  %v3672_v42 = vld [vmem:[#allocation2 + $0xc0] sm:$0xff] }
 0x527   : > { %5066 = vmatmul.mubr.f32.gmra.mrb[78].mxu1 %v3667_v52  ;;  %v1458_v52 = vadd.f32 %v8940_v6, %v9358_v48 }
 0x528   : > { %5070 = vmatprep.mubr.f32.mxu1 %v8791_v51  ;;  %v3673_v51 = vld [vmem:[#allocation2 + $0xc8] sm:$0xff] }
 0x52b   : > { %5071 = vmatmul.mubr.f32.gmra.mrb[80].mxu1 %v3668_v56 }
 0x52c   : > { %5075 = vmatprep.mubr.f32.mxu1 %v8799_v2  ;;  %v3674_v2 = vld [vmem:[#allocation2 + $0xd8] sm:$0xff] }
 0x52f   : > { %5076 = vmatmul.mubr.f32.gmra.mrb[82].mxu1 %v3669_v13 }
 0x530   : > { %5080 = vmatprep.mubr.f32.mxu1 %v8803_v29  ;;  %v3675_v29 = vld [vmem:[#allocation2 + $0xe0] sm:$0xff] }
 0x533   : > { %5081 = vmatmul.mubr.f32.gmra.mrb[84].mxu1 %v3670_v5 }
 0x534   : > { %5085 = vmatprep.mubr.f32.mxu1 %v8811_v20  ;;  %v3676_v20 = vld [vmem:[#allocation2 + $0xf0] sm:$0xff] }
 0x537   : > { %5086 = vmatmul.mubr.f32.gmra.mrb[86].mxu1 %v3671_v22 }
 0x538   : > { %5090 = vmatprep.mubr.f32.mxu1 %v8815_v23  ;;  %v3677_v23 = vld [vmem:[#allocation2 + $0xf8] sm:$0xff] }
 0x53b   : > { %5091 = vmatmul.mubr.f32.gmra.mrb[88].mxu1 %v3672_v42 }
 0x53c   : > { %5095 = vmatprep.mubr.f32.mxu1 %v8823_v9  ;;  %v3678_v9 = vld [vmem:[#allocation2 + $0x108] sm:$0xff] }
 0x53f   : > { %5096 = vmatmul.mubr.f32.gmra.mrb[90].mxu1 %v3673_v51 }
 0x540   : > { %5100 = vmatprep.mubr.f32.mxu1 %v8826_v10  ;;  %v3679_v10 = vld [vmem:[#allocation2 + $0x110] sm:$0xff] }
 0x543   : > { %5101 = vmatmul.mubr.f32.gmra.mrb[92].mxu1 %v3674_v2  ;;  %v9359_v2 = vld [vmem:[#allocation51_spill] sm:$0xff] }
 0x544   : > { %5105 = vmatprep.mubr.f32.mxu1 %v8833_v30  ;;  %v3680_v30 = vld [vmem:[#allocation2 + $0x120] sm:$0xff] }
 0x547   : > { %5106 = vmatmul.mubr.f32.gmra.mrb[94].mxu1 %v3675_v29 }
 0x548   : > { %5110 = vmatprep.mubr.f32.mxu1 %v8837_v62  ;;  %v3681_v62 = vld [vmem:[#allocation2 + $0x128] sm:$0xff] }
 0x54b   : > { %5111 = vmatmul.mubr.f32.gmra.mrb[96].mxu1 %v3676_v20 }
 0x54c   : > { %5115 = vmatprep.mubr.f32.mxu1 %v8845_v32  ;;  %v3682_v32 = vld [vmem:[#allocation2 + $0x138] sm:$0xff] }
 0x54f   : > { %5116 = vmatmul.mubr.f32.gmra.mrb[98].mxu1 %v3677_v23 }
 0x550   : > { %5120 = vmatprep.mubr.f32.mxu1 %v8849_v41  ;;  %v3683_v41 = vld [vmem:[#allocation2 + $0x140] sm:$0xff] }
 0x553   : > { %5121 = vmatmul.mubr.f32.gmra.mrb[100].mxu1 %v3678_v9 }
 0x554   : > { %5125 = vmatprep.mubr.f32.mxu1 %v8857_v33  ;;  %v3749_v33 = vld [vmem:[#allocation2 + $0x159] sm:$0xff] }
 0x557   : > { %5126 = vmatmul.mubr.f32.gmra.mrb[102].mxu1 %v3679_v10 }
 0x558   : > { %5130 = vmatprep.mubr.f32.mxu1 %v8861_v37  ;;  %v3685_v37 = vld [vmem:[#allocation2 + $0x158] sm:$0xff] }
 0x55b   : > { %5131 = vmatmul.mubr.f32.gmra.mrb[104].mxu1 %v3680_v30 }
 0x55c   : > { %5135 = vmatprep.mubr.f32.mxu1 %v8869_v14  ;;  %v3686_v14 = vld [vmem:[#allocation2 + $0x168] sm:$0xff] }
 0x55f   : > { %5136 = vmatmul.mubr.f32.gmra.mrb[106].mxu1 %v3681_v62  ;;  %v9360_v62 = vld [vmem:[#allocation54_spill] sm:$0xff] }
 0x560   : > { %5140 = vmatprep.mubr.f32.mxu1 %v8873_v43  ;;  %v3687_v43 = vld [vmem:[#allocation2 + $0x170] sm:$0xff] }
 0x563   : > { %5141 = vmatmul.mubr.f32.gmra.mrb[108].mxu1 %v3682_v32 }
 0x564   : > { %5145 = vmatprep.mubr.f32.mxu1 %v8877_v3  ;;  %v3754_v3 = vld [vmem:[#allocation2 + $0x199] sm:$0xff] }
 0x567   : > { %5146 = vmatmul.mubr.f32.gmra.mrb[110].mxu1 %v3683_v41 }
 0x568   : > { %5150 = vmatprep.mubr.f32.mxu1 %v8881_v1  ;;  %v3753_v1 = vld [vmem:[#allocation2 + $0x189] sm:$0xff] }
 0x56b   : > { %5151 = vmatmul.mubr.f32.gmra.mrb[112].mxu1 %v3684_v55 }
 0x56c   : > { %5155 = vmatprep.mubr.f32.mxu1 %v3749_v33 }
 0x56f   : > { %5156 = vmatmul.mubr.f32.gmra.mrb[114].mxu1 %v3685_v37 }
 0x570   : > { %5160 = vmatprep.mubr.f32.mxu1 %v3750_v26 }
 0x573   : > { %5161 = vmatmul.mubr.f32.gmra.mrb[116].mxu1 %v3686_v14  ;;  %v9361_v14 = vld [vmem:[#allocation53_spill] sm:$0xff] }
 0x574   : > { %5165 = vmatprep.mubr.f32.mxu1 %v3751_v31  ;;  %v1473_v31 = vadd.f32 %v8940_v6, %v9361_v14 }
 0x577   : > { %5166 = vmatmul.mubr.f32.gmra.mrb[118].mxu1 %v3687_v43 }
 0x578   : > { %5170 = vmatprep.mubr.f32.mxu1 %v3752_v34 }
 0x57b   : > { %5171 = vmatmul.mubr.f32.gmra.mrb[120].mxu1 %v8723_v50  ;;  %v8930_v50 = vld [vmem:[%s9142_s4] ss:$0 sm:$0xff] }
 0x57c   : > { %5175 = vmatprep.mubr.f32.mxu1 %v3753_v1 }
 0x57f   : > { %5176 = vmatmul.mubr.f32.gmra.mrb[122].mxu1 %v8729_v46 }
 0x580   : > { %5180 = vmatprep.mubr.f32.mxu1 %v3754_v3 }
 0x583   : > { %5181 = vmatmul.mubr.f32.gmra.mrb[124].mxu1 %v7163_v18 }
 0x584   : > { %5185 = vmatprep.mubr.f32.mxu1 %v3755_v36 }
 0x587   : > { %5186 = vmatmul.mubr.f32.gmra.mrb[126].mxu1 %v7163_v18  ;;  %v9362_v18 = vld [vmem:[#allocation56_spill] sm:$0xff] }
 0x5b2   : > { %v8923_v28 = vpop.f32.mrb[126].mxu0 }
 0x5b3   : > { %v8925_v61 = vpop.f32.mrb[127].mxu0 }
 0x5de   : > { %v5032_v12 = vpop.f32.mrb[64].mxu1 }
 0x5df   : > { %v6676_v58 = vadd.f32 %v8930_v50, %v5032_v12  ;;  %v5034_v46 = vpop.f32.mrb[65].mxu1  ;;  %v1478_v12 = vadd.f32 %v8940_v6, %v9362_v18 }
 0x5e1   : > { %v5258_v47 = vadd.f32 %v6676_v58, %v8711_v45  ;;  %v1463_v45 = vadd.f32 %v8940_v6, %v9359_v2  ;;  %v9364_v2 = vld [vmem:[#allocation58_spill] sm:$0xff] }
 0x5e2   : > { %v5037_v4 = vpop.f32.mrb[66].mxu1 }
 0x5e3   : > { %v5416_v56 = vmax.f32 %v5258_v47, 0.0  ;;  %v6677_v13 = vadd.f32 %v8930_v50, %v5037_v4  ;;  %v5039_v5 = vpop.f32.mrb[67].mxu1 }
 0x5e5   : > { %v5480_v22 = vadd.f32 %v5416_v56, %v1458_v52  ;;  %v5263_v42 = vadd.f32 %v6677_v13, %v8708_v59  ;;  %v1468_v59 = vadd.f32 %v8940_v6, %v9360_v62  ;;  %v9363_v52 = vld [vmem:[#allocation55_spill] sm:$0xff] }
 0x5e6   : > { %v5042_v51 = vpop.f32.mrb[68].mxu1  ;;  %v1483_v56 = vadd.f32 %v8940_v6, %v9363_v52 }
 0x5e7   : > { %5512 = vst [vmem:[%s8948_s18] sm:$0xff] %v5480_v22  ;;  %v5417_v29 = vmax.f32 %v5263_v42, 0.0  ;;  %v6678_v20 = vadd.f32 %v8930_v50, %v5042_v51  ;;  %v5044_v23 = vpop.f32.mrb[69].mxu1 }
 0x5e9   : > { %v5481_v9 = vadd.f32 %v5417_v29, %v1463_v45  ;;  %v5268_v10 = vadd.f32 %v6678_v20, %v8719_v11  ;;  %v1488_v45 = vadd.f32 %v8940_v6, %v9364_v2 }
 0x5ea   : > { %v5047_v30 = vpop.f32.mrb[70].mxu1 }
 0x5eb   : > { %5513 = vst [vmem:[%s8948_s18 + $0x8] sm:$0xff] %v5481_v9  ;;  %v5418_v32 = vmax.f32 %v5268_v10, 0.0  ;;  %v6679_v41 = vadd.f32 %v8930_v50, %v5047_v30  ;;  %v5049_v55 = vpop.f32.mrb[71].mxu1  ;;  %v9365_v30 = vld [vmem:[#allocation57_spill] sm:$0xff] }
 0x5ec   : > { %v1493_v62 = vadd.f32 %v8940_v6, %v9365_v30 }
 0x5ed   : > { %v5482_v33 = vadd.f32 %v5418_v32, %v1468_v59  ;;  %v5273_v37 = vadd.f32 %v6679_v41, %v8716_v49 }
 0x5ee   : > { %v5052_v26 = vpop.f32.mrb[72].mxu1 }
 0x5ef   : > { %5514 = vst [vmem:[%s8948_s18 + $0x10] sm:$0xff] %v5482_v33  ;;  %v5419_v11 = vmax.f32 %v5273_v37, 0.0  ;;  %v6680_v43 = vadd.f32 %v8930_v50, %v5052_v26  ;;  %v5054_v34 = vpop.f32.mrb[73].mxu1  ;;  %v9366_v37 = vld [vmem:[#allocation60_spill] sm:$0xff] }
 0x5f0   : > { %v1498_v26 = vadd.f32 %v8940_v6, %v9366_v37  ;;  %v9372_v37 = vld [vmem:[#allocation50_spill] sm:$0xff] }
 0x5f1   : > { %v5483_v1 = vadd.f32 %v5419_v11, %v1473_v31  ;;  %v5278_v3 = vadd.f32 %v6680_v43, %v8731_v60 }
 0x5f2   : > { %v5057_v36 = vpop.f32.mrb[74].mxu1 }
 0x5f3   : > { %5515 = vst [vmem:[%s8948_s18 + $0x18] sm:$0xff] %v5483_v1  ;;  %v5420_v49 = vmax.f32 %v5278_v3, 0.0  ;;  %v6681_v58 = vadd.f32 %v8930_v50, %v5057_v36  ;;  %v5059_v46 = vpop.f32.mrb[75].mxu1  ;;  %v9367_v1 = vld [vmem:[#allocation59_spill] sm:$0xff] }
 0x5f4   : > { %v1503_v3 = vadd.f32 %v8940_v6, %v9367_v1  ;;  %v9368_v46 = vld [vmem:[#allocation62_spill] sm:$0xff] }
 0x5f5   : > { %v5484_v47 = vadd.f32 %v5420_v49, %v1478_v12  ;;  %v5283_v4 = vadd.f32 %v6681_v58, %v8726_v35 }
 0x5f6   : > { %v5062_v48 = vpop.f32.mrb[76].mxu1 }
 0x5f7   : > { %5516 = vst [vmem:[%s8948_s18 + $0x20] sm:$0xff] %v5484_v47  ;;  %v5421_v60 = vmax.f32 %v5283_v4, 0.0  ;;  %v6682_v13 = vadd.f32 %v8930_v50, %v5062_v48  ;;  %v5064_v5 = vpop.f32.mrb[77].mxu1  ;;  %v1508_v47 = vadd.f32 %v8940_v6, %v9368_v46  ;;  %v9374_v46 = vld [vmem:[#allocation64_spill] sm:$0xff] }
 0x5f9   : > { %v5485_v22 = vadd.f32 %v5421_v60, %v1483_v56  ;;  %v5288_v42 = vadd.f32 %v6682_v13, %v8738_v19  ;;  %v9369_v13 = vld [vmem:[#allocation61_spill] sm:$0xff] }
 0x5fa   : > { %v5067_v51 = vpop.f32.mrb[78].mxu1  ;;  %v1513_v5 = vadd.f32 %v8940_v6, %v9369_v13 }
 0x5fb   : > { %5517 = vst [vmem:[%s8948_s18 + $0x28] sm:$0xff] %v5485_v22  ;;  %v5422_v35 = vmax.f32 %v5288_v42, 0.0  ;;  %v6683_v29 = vadd.f32 %v8930_v50, %v5067_v51  ;;  %v5069_v20 = vpop.f32.mrb[79].mxu1 }
 0x5fd   : > { %v5486_v23 = vadd.f32 %v5422_v35, %v1488_v45  ;;  %v5293_v9 = vadd.f32 %v6683_v29, %v8736_v0  ;;  %v9370_v35 = vld [vmem:[#allocation48_spill] sm:$0xff] }
 0x5fe   : > { %v5072_v10 = vpop.f32.mrb[80].mxu1  ;;  %v1518_v29 = vadd.f32 %v8940_v6, %v9370_v35 }
 0x5ff   : > { %5518 = vst [vmem:[%s8948_s18 + $0x30] sm:$0xff] %v5486_v23  ;;  %v5423_v19 = vmax.f32 %v5293_v9, 0.0  ;;  %v6684_v59 = vadd.f32 %v8930_v50, %v5072_v10  ;;  %v5074_v32 = vpop.f32.mrb[81].mxu1 }
 0x601   : > { %v5487_v41 = vadd.f32 %v5423_v19, %v1493_v62  ;;  %v5298_v55 = vadd.f32 %v6684_v59, %v8748_v63  ;;  %v9371_v62 = vld [vmem:[#allocation63_spill] sm:$0xff] }
 0x602   : > { %v5077_v33 = vpop.f32.mrb[82].mxu1  ;;  %v1523_v19 = vadd.f32 %v8940_v6, %v9371_v62  ;;  %v9378_v62 = vld [vmem:[#allocation66_spill] sm:$0xff] }
 0x603   : > { %5519 = vst [vmem:[%s8948_s18 + $0x38] sm:$0xff] %v5487_v41  ;;  %v5424_v0 = vmax.f32 %v5298_v55, 0.0  ;;  %v6685_v14 = vadd.f32 %v8930_v50, %v5077_v33  ;;  %v5079_v31 = vpop.f32.mrb[83].mxu1 }
 0x605   : > { %v5488_v11 = vadd.f32 %v5424_v0, %v1498_v26  ;;  %v5303_v43 = vadd.f32 %v6685_v14, %v8745_v53  ;;  %v1528_v26 = vadd.f32 %v8940_v6, %v9372_v37 }
 0x606   : > { %v5082_v34 = vpop.f32.mrb[84].mxu1 }
 0x607   : > { %5520 = vst [vmem:[%s8948_s18 + $0x40] sm:$0xff] %v5488_v11  ;;  %v5425_v63 = vmax.f32 %v5303_v43, 0.0  ;;  %v6686_v36 = vadd.f32 %v8930_v50, %v5082_v34  ;;  %v5084_v18 = vpop.f32.mrb[85].mxu1  ;;  %v9373_v34 = vld [vmem:[#allocation43_spill] sm:$0xff] }
 0x608   : > { %v1533_v1 = vadd.f32 %v8940_v6, %v9373_v34 }
 0x609   : > { %v5489_v12 = vadd.f32 %v5425_v63, %v1503_v3  ;;  %v5308_v49 = vadd.f32 %v6686_v36, %v8760_v57 }
 0x60a   : > { %v5087_v58 = vpop.f32.mrb[86].mxu1 }
 0x60b   : > { %5521 = vst [vmem:[%s8948_s18 + $0x48] sm:$0xff] %v5489_v12  ;;  %v5426_v53 = vmax.f32 %v5308_v49, 0.0  ;;  %v6687_v4 = vadd.f32 %v8930_v50, %v5087_v58  ;;  %v5089_v48 = vpop.f32.mrb[87].mxu1 }
 0x60d   : > { %v5490_v52 = vadd.f32 %v5426_v53, %v1508_v47  ;;  %v5313_v56 = vadd.f32 %v6687_v4, %v8757_v54 }
 0x60e   : > { %v5092_v60 = vpop.f32.mrb[88].mxu1 }
 0x60f   : > { %5522 = vst [vmem:[%s8948_s18 + $0x50] sm:$0xff] %v5490_v52  ;;  %v5427_v57 = vmax.f32 %v5313_v56, 0.0  ;;  %v6688_v22 = vadd.f32 %v8930_v50, %v5092_v60  ;;  %v5094_v42 = vpop.f32.mrb[89].mxu1  ;;  %v9375_v56 = vld [vmem:[#allocation45_spill] sm:$0xff] }
 0x610   : > { %v9376_v42 = vld [vmem:[#allocation65_spill] sm:$0xff] }
 0x611   : > { %v5491_v51 = vadd.f32 %v5427_v57, %v1513_v5  ;;  %v5318_v2 = vadd.f32 %v6688_v22, %v8772_v7 }
 0x612   : > { %v5097_v45 = vpop.f32.mrb[90].mxu1 }
 0x613   : > { %5523 = vst [vmem:[%s8948_s18 + $0x58] sm:$0xff] %v5491_v51  ;;  %v5428_v54 = vmax.f32 %v5318_v2, 0.0  ;;  %v6689_v20 = vadd.f32 %v8930_v50, %v5097_v45  ;;  %v5099_v23 = vpop.f32.mrb[91].mxu1 }
 0x615   : > { %v5492_v9 = vadd.f32 %v5428_v54, %v1518_v29  ;;  %v5323_v10 = vadd.f32 %v6689_v20, %v8769_v15  ;;  %v9377_v54 = vld [vmem:[#allocation44_spill] sm:$0xff] }
 0x616   : > { %v5102_v30 = vpop.f32.mrb[92].mxu1 }
 0x617   : > { %5524 = vst [vmem:[%s8948_s18 + $0x60] sm:$0xff] %v5492_v9  ;;  %v5429_v7 = vmax.f32 %v5323_v10, 0.0  ;;  %v6690_v59 = vadd.f32 %v8930_v50, %v5102_v30  ;;  %v5104_v32 = vpop.f32.mrb[93].mxu1 }
 0x619   : > { %v5493_v41 = vadd.f32 %v5429_v7, %v1523_v19  ;;  %v5328_v55 = vadd.f32 %v6690_v59, %v8784_v8 }
 0x61a   : > { %v5107_v33 = vpop.f32.mrb[94].mxu1 }
 0x61b   : > { %5525 = vst [vmem:[%s8948_s18 + $0x68] sm:$0xff] %v5493_v41  ;;  %v5430_v15 = vmax.f32 %v5328_v55, 0.0  ;;  %v6691_v0 = vadd.f32 %v8930_v50, %v5107_v33  ;;  %v5109_v14 = vpop.f32.mrb[95].mxu1  ;;  %v9379_v55 = vld [vmem:[#allocation46_spill] sm:$0xff] }
 0x61c   : > { %v9380_v14 = vld [vmem:[#allocation67_spill] sm:$0xff] }
 0x61d   : > { %v5494_v31 = vadd.f32 %v5430_v15, %v1528_v26  ;;  %v5333_v11 = vadd.f32 %v6691_v0, %v8781_v21 }
 0x61e   : > { %v5112_v43 = vpop.f32.mrb[96].mxu1 }
 0x61f   : > { %5526 = vst [vmem:[%s8948_s18 + $0x70] sm:$0xff] %v5494_v31  ;;  %v5431_v8 = vmax.f32 %v5333_v11, 0.0  ;;  %v6692_v3 = vadd.f32 %v8930_v50, %v5112_v43  ;;  %v5114_v63 = vpop.f32.mrb[97].mxu1 }
 0x621   : > { %v5495_v36 = vadd.f32 %v5431_v8, %v1533_v1  ;;  %v5338_v18 = vadd.f32 %v6692_v3, %v8796_v44  ;;  %v9381_v8 = vld [vmem:[#allocation16_spill] sm:$0xff] }
 0x622   : > { %v5117_v12 = vpop.f32.mrb[98].mxu1 }
 0x623   : > { %5527 = vst [vmem:[%s8948_s18 + $0x78] sm:$0xff] %v5495_v36  ;;  %v5432_v49 = vmax.f32 %v5338_v18, 0.0  ;;  %v6693_v58 = vadd.f32 %v8930_v50, %v5117_v12  ;;  %v5119_v21 = vpop.f32.mrb[99].mxu1 }
 0x625   : > { %v5496_v47 = vadd.f32 %v5432_v49, %v9374_v46  ;;  %v5343_v53 = vadd.f32 %v6693_v58, %v8793_v40  ;;  %v9382_v49 = vld [vmem:[#allocation68_spill] sm:$0xff]  ;;  %v9383_v58 = vld [vmem:[#allocation31_spill] sm:$0xff] }
 0x626   : > { %v5122_v6 = vpop.f32.mrb[100].mxu1 }
 0x627   : > { %5528 = vst [vmem:[%s8948_s18 + $0x80] sm:$0xff] %v5496_v47  ;;  %v5433_v4 = vmax.f32 %v5343_v53, 0.0  ;;  %v6694_v48 = vadd.f32 %v8930_v50, %v5122_v6  ;;  %v5124_v52 = vpop.f32.mrb[101].mxu1 }
 0x629   : > { %v5497_v44 = vadd.f32 %v5433_v4, %v9375_v56  ;;  %v5348_v60 = vadd.f32 %v6694_v48, %v8808_v24  ;;  %v9384_v4 = vld [vmem:[#allocation15_spill] sm:$0xff]  ;;  %v9385_v48 = vld [vmem:[#allocation33_spill] sm:$0xff] }
 0x62a   : > { %v5127_v13 = vpop.f32.mrb[102].mxu1 }
 0x62b   : > { %5529 = vst [vmem:[%s8948_s18 + $0x88] sm:$0xff] %v5497_v44  ;;  %v5434_v5 = vmax.f32 %v5348_v60, 0.0  ;;  %v6695_v57 = vadd.f32 %v8930_v50, %v5127_v13  ;;  %v5129_v22 = vpop.f32.mrb[103].mxu1 }
 0x62c   : > { %v9387_v22 = vld [vmem:[#allocation34_spill] sm:$0xff] }
 0x62d   : > { %v5498_v40 = vadd.f32 %v5434_v5, %v9376_v42  ;;  %v5353_v51 = vadd.f32 %v6695_v57, %v8805_v25  ;;  %v9386_v5 = vld [vmem:[#allocation69_spill] sm:$0xff] }
 0x62e   : > { %v5132_v2 = vpop.f32.mrb[104].mxu1 }
 0x62f   : > { %5530 = vst [vmem:[%s8948_s18 + $0x90] sm:$0xff] %v5498_v40  ;;  %v5435_v45 = vmax.f32 %v5353_v51, 0.0  ;;  %v6696_v35 = vadd.f32 %v8930_v50, %v5132_v2  ;;  %v5134_v29 = vpop.f32.mrb[105].mxu1 }
 0x631   : > { %v5499_v24 = vadd.f32 %v5435_v45, %v9377_v54  ;;  %v5358_v20 = vadd.f32 %v6696_v35, %v8820_v39  ;;  %v9388_v35 = vld [vmem:[#allocation18_spill] sm:$0xff]  ;;  %v9389_v54 = vld [vmem:[#allocation35_spill] sm:$0xff] }
 0x632   : > { %v5137_v23 = vpop.f32.mrb[106].mxu1 }
 0x633   : > { %5531 = vst [vmem:[%s8948_s18 + $0x98] sm:$0xff] %v5499_v24  ;;  %v5436_v9 = vmax.f32 %v5358_v20, 0.0  ;;  %v6697_v10 = vadd.f32 %v8930_v50, %v5137_v23  ;;  %v5139_v30 = vpop.f32.mrb[107].mxu1 }
 0x634   : > { %v9390_v30 = vld [vmem:[#allocation70_spill] sm:$0xff] }
 0x635   : > { %v5500_v25 = vadd.f32 %v5436_v9, %v9378_v62  ;;  %v5363_v19 = vadd.f32 %v6697_v10, %v8817_v27 }
 0x636   : > { %v5142_v7 = vpop.f32.mrb[108].mxu1 }
 0x637   : > { %5532 = vst [vmem:[%s8948_s18 + $0xa0] sm:$0xff] %v5500_v25  ;;  %v5437_v59 = vmax.f32 %v5363_v19, 0.0  ;;  %v6698_v32 = vadd.f32 %v8930_v50, %v5142_v7  ;;  %v5144_v41 = vpop.f32.mrb[109].mxu1  ;;  %v9391_v25 = vld [vmem:[#allocation36_spill] sm:$0xff] }
 0x639   : > { %v5501_v39 = vadd.f32 %v5437_v59, %v9379_v55  ;;  %v5368_v33 = vadd.f32 %v6698_v32, %v8831_v16  ;;  %v9392_v55 = vld [vmem:[#allocation17_spill] sm:$0xff] }
 0x63a   : > { %v5147_v37 = vpop.f32.mrb[110].mxu1 }
 0x63b   : > { %5533 = vst [vmem:[%s8948_s18 + $0xa8] sm:$0xff] %v5501_v39  ;;  %v5438_v26 = vmax.f32 %v5368_v33, 0.0  ;;  %v6699_v15 = vadd.f32 %v8930_v50, %v5147_v37  ;;  %v5149_v0 = vpop.f32.mrb[111].mxu1 }
 0x63d   : > { %v5502_v27 = vadd.f32 %v5438_v26, %v9380_v14  ;;  %v5373_v31 = vadd.f32 %v6699_v15, %v8828_v38  ;;  %v9393_v14 = vld [vmem:[#allocation71_spill] sm:$0xff] }
 0x63e   : > { %v5152_v11 = vpop.f32.mrb[112].mxu1 }
 0x63f   : > { %5534 = vst [vmem:[%s8948_s18 + $0xb0] sm:$0xff] %v5502_v27  ;;  %v5439_v43 = vmax.f32 %v5373_v31, 0.0  ;;  %v6700_v34 = vadd.f32 %v8930_v50, %v5152_v11  ;;  %v5154_v1 = vpop.f32.mrb[113].mxu1 }
 0x641   : > { %v5503_v16 = vadd.f32 %v5439_v43, %v9381_v8  ;;  %v5378_v3 = vadd.f32 %v6700_v34, %v8842_v17 }
 0x642   : > { %v5157_v63 = vpop.f32.mrb[114].mxu1 }
 0x643   : > { %5535 = vst [vmem:[%s8948_s18 + $0xb8] sm:$0xff] %v5503_v16  ;;  %v5440_v36 = vmax.f32 %v5378_v3, 0.0  ;;  %v6701_v18 = vadd.f32 %v8930_v50, %v5157_v63  ;;  %v5159_v12 = vpop.f32.mrb[115].mxu1 }
 0x645   : > { %v5504_v38 = vadd.f32 %v5440_v36, %v9382_v49  ;;  %v5383_v21 = vadd.f32 %v6701_v18, %v9383_v58 }
 0x646   : > { %v5162_v46 = vpop.f32.mrb[116].mxu1 }
 0x647   : > { %5536 = vst [vmem:[%s8948_s18 + $0xc0] sm:$0xff] %v5504_v38  ;;  %v5441_v47 = vmax.f32 %v5383_v21, 0.0  ;;  %v6702_v53 = vadd.f32 %v8930_v50, %v5162_v46  ;;  %v5164_v6 = vpop.f32.mrb[117].mxu1 }
 0x649   : > { %v5505_v17 = vadd.f32 %v5441_v47, %v9384_v4  ;;  %v5388_v52 = vadd.f32 %v6702_v53, %v9385_v48 }
 0x64a   : > { %v5167_v56 = vpop.f32.mrb[118].mxu1 }
 0x64b   : > { %5537 = vst [vmem:[%s8948_s18 + $0xc8] sm:$0xff] %v5505_v17  ;;  %v5442_v44 = vmax.f32 %v5388_v52, 0.0  ;;  %v6703_v60 = vadd.f32 %v8930_v50, %v5167_v56  ;;  %v5169_v13 = vpop.f32.mrb[119].mxu1 }
 0x64d   : > { %v5506_v57 = vadd.f32 %v5442_v44, %v9386_v5  ;;  %v5393_v42 = vadd.f32 %v6703_v60, %v9387_v22 }
 0x64e   : > { %v5172_v40 = vpop.f32.mrb[120].mxu1 }
 0x64f   : > { %5538 = vst [vmem:[%s8948_s18 + $0xd0] sm:$0xff] %v5506_v57  ;;  %v5443_v51 = vmax.f32 %v5393_v42, 0.0  ;;  %v6704_v2 = vadd.f32 %v8930_v50, %v5172_v40  ;;  %v5174_v45 = vpop.f32.mrb[121].mxu1 }
 0x651   : > { %v5507_v29 = vadd.f32 %v5443_v51, %v9388_v35  ;;  %v5398_v24 = vadd.f32 %v6704_v2, %v9389_v54 }
 0x652   : > { %v5177_v20 = vpop.f32.mrb[122].mxu1 }
 0x653   : > { %5539 = vst [vmem:[%s8948_s18 + $0xd8] sm:$0xff] %v5507_v29  ;;  %v5444_v23 = vmax.f32 %v5398_v24, 0.0  ;;  %v6705_v9 = vadd.f32 %v8930_v50, %v5177_v20  ;;  %v5179_v10 = vpop.f32.mrb[123].mxu1 }
 0x655   : > { %v5508_v62 = vadd.f32 %v5444_v23, %v9390_v30  ;;  %v5403_v19 = vadd.f32 %v6705_v9, %v9391_v25 }
 0x656   : > { %v5182_v7 = vpop.f32.mrb[124].mxu1 }
 0x657   : > { %5540 = vst [vmem:[%s8948_s18 + $0xe0] sm:$0xff] %v5508_v62  ;;  %v5445_v59 = vmax.f32 %v5403_v19, 0.0  ;;  %v6706_v32 = vadd.f32 %v8930_v50, %v5182_v7  ;;  %v5184_v41 = vpop.f32.mrb[125].mxu1 }
 0x659   : > { %v5509_v39 = vadd.f32 %v5445_v59, %v9392_v55  ;;  %v5408_v33 = vadd.f32 %v6706_v32, %v8925_v61  ;;  %v9394_v61 = vld [vmem:[#allocation20_spill] sm:$0xff] }
 0x65a   : > { %v5187_v37 = vpop.f32.mrb[126].mxu1 }
 0x65b   : > { %5541 = vst [vmem:[%s8948_s18 + $0xe8] sm:$0xff] %v5509_v39  ;;  %v5446_v26 = vmax.f32 %v5408_v33, 0.0  ;;  %v6707_v15 = vadd.f32 %v8930_v50, %v5187_v37  ;;  %v5189_v0 = vpop.f32.mrb[127].mxu1 }
 0x65d   : > { %v5510_v27 = vadd.f32 %v5446_v26, %v9393_v14  ;;  %v5413_v31 = vadd.f32 %v6707_v15, %v8923_v28 }
 0x65f   : > { %5542 = vst [vmem:[%s8948_s18 + $0xf0] sm:$0xff] %v5510_v27  ;;  %v5447_v11 = vmax.f32 %v5413_v31, 0.0 }
 0x661   : > { %v5511_v50 = vadd.f32 %v5447_v11, %v9394_v61 }
 0x663   : > { %5543 = vst [vmem:[%s8948_s18 + $0xf8] sm:$0xff] %v5511_v50 }
 0x664   : > { %7234 = shalt.err (!%p7231_p11)
}
 0x665   : > { %s7235_s10 = scalar_lea.hbm %s9089_s23, 4096  ;;  %s7239_s13 = scalar_lea.hbm %s9145_s7, 8192 }
 0x666   : > { %p7236_p13 = scmp.ne.s32.totalorder %s9089_s23, %s7235_s10  ;;  %p7240_p6 = scmp.lt.u32.totalorder %s9089_s23, %s9145_s7 }
 0x667   : > { %p7241_p9 = scmp.lt.u32.totalorder %s7239_s13, %s7235_s10  ;;  %p7243_p12 = scmp.lt.u32.totalorder %s7235_s10, %s9089_s23 }
 0x668   : > { %p7237_p5 = pnand %p7236_p13, %p9395_p1 }
 0x669   : > { %p7242_p10 = por %p7241_p9, %p7240_p6 }
 0x66a   : > { %p7238_p0 = pneg %p7237_p5 }
 0x66b   : > { %p7244_p2 = por %p7243_p12, %p7242_p10 }
 0x66d   : > { %p7245_p3 = pnand %p7244_p2, %p7238_p0 }
 0x66f   : > { %7248 = shalt.err (!%p7245_p3)
}
 0x670   : > { %s7300_s14 = smov 128   ;;  %s7301_s21 = smov 8  }
 0x671   : > { %7100 = dma.vmem_to_hbm [thread:$0]  (%p9395_p1), %s9091_s20, 4096, %s9089_s23, %s9097_s29, %s7300_s14, %s7300_s14, %s7301_s21  }
 0x672 PF: > { %p7117_p4 = scmp.ge.s32.totalorder %s7291_s27, 2  ;;  %s5573_s22 = sand.u32 1, %s7279_s24  }
 0x673   : > { %p9396_p7 = scmp.ne.s32.totalorder %s9214_s12, 0  ;;  %s5574_s28 = scalar_lea.sflag [#allocation7], %s5573_s22 }
 0x675   : > { %p7110_p8 = pnand %p7117_p4, %p9396_p7 }
 0x677   : > { %7274 = dma.done.wait (!%p7110_p8), %s5574_s28, 4096  }
 0x678   : > { %7276 = vsyncadd (!%p7110_p8), %s5574_s28, 4294963200  ;;  %s9397_s8 = sld [smem:[#allocation14_spill]]  ;;  %p19_p11 = scmp.ge.s32.totalorder %s7367_s30, 4  }
 0x679   : > { %s9398_s24 = smov %s7283_s25  ;;  %s9399_s25 = smov %s7287_s26 }
 0x67a   : > { %s9401_s27 = smov %s7367_s30  ;;  %21 = sbr.rel (!%p19_p11) target bundleno = 5 (0x5), region = 94 }
 0x67e   : > { %s9400_s26 = smov %s9397_s8 }
 0x681   :  { %5579 = vsyncpa [#allocation6], 1 }
 0x682   :  { %5581 = vsyncpa [#allocation6 + $0x1], 1 }
 0x683   :  { %5582 = vsyncpa [#allocation9], 1 }
 0x684   :  { %5583 = vsyncpa [#allocation7], 1 }
 0x685   :  { %5585 = vsyncpa [#allocation7 + $0x1], 1 }

</bundles_post_ra>
